<compile_context>
chip_gen: v6e
topology: v6e:2x2x1
jax: 0.10.0
libtpu: 0.0.40
codegen_flags: <defaults>
</compile_context>

<pallas_src>
import jax
import jax.numpy as jnp
from jax.experimental import pallas as pl
from jax.experimental.pallas import tpu as pltpu

MB = 256  # M tile for the conv matmul grid (<=256 keeps v5e scoped VMEM happy)


# ----------------------------- Pallas kernels ------------------------------ #

def _conv_pool_kernel(cols_ref, w_ref, b_ref, o_ref):
    """One (MB, K) tile of im2col patches: matmul + bias + ReLU, then
    max-accumulate over the 4 pool-position banks (grid axis 1) into o_ref."""
    p = pl.program_id(1)
    y = jnp.dot(cols_ref[...], w_ref[...], preferred_element_type=jnp.float32)
    y = jnp.maximum(y + b_ref[...], 0.0).astype(o_ref.dtype)

    @pl.when(p == 0)
    def _():
        o_ref[...] = y

    @pl.when(p > 0)
    def _():
        o_ref[...] = jnp.maximum(o_ref[...], y)


def conv3x3_relu_pool(cols, w, b, *, n_m):
    """cols: (4 * n_m * MB, K) bank-major bf16 patches; w: (K, 128) bf16;
    b: (1, 128) f32.  Returns (n_m * MB, 128) bf16 = maxpool2x2(relu(conv+b))
    with Cout zero-padded to 128 (lane-dense stores)."""
    k = cols.shape[1]
    return pl.pallas_call(
        _conv_pool_kernel,
        out_shape=jax.ShapeDtypeStruct((n_m * MB, 128), jnp.bfloat16),
        grid=(n_m, 4),
        in_specs=[
            pl.BlockSpec((MB, k), lambda i, p: (p * n_m + i, 0)),
            pl.BlockSpec((k, 128), lambda i, p: (0, 0)),
            pl.BlockSpec((1, 128), lambda i, p: (0, 0)),
        ],
        out_specs=pl.BlockSpec((MB, 128), lambda i, p: (i, 0)),
        compiler_params=pltpu.CompilerParams(
            dimension_semantics=("parallel", "arbitrary")),
    )(cols, w, b)


def _mlp_kernel(x_ref, w1_ref, b1_ref, w2_ref, b2_ref, o_ref):
    h = jnp.dot(x_ref[...], w1_ref[...], preferred_element_type=jnp.float32)
    h = jnp.maximum(h + b1_ref[...], 0.0)
    y = jnp.dot(h.astype(w2_ref.dtype), w2_ref[...],
                preferred_element_type=jnp.float32)
    o_ref[...] = (y + b2_ref[...]).astype(o_ref.dtype)


def mlp_head(x, w1, b1, w2, b2):
    """Fused fc1(+ReLU)+fc2 in one pallas_call (M is tiny, weights ~1.6 MiB)."""
    m, k1 = x.shape
    n1 = w1.shape[1]
    n2 = w2.shape[1]
    return pl.pallas_call(
        _mlp_kernel,
        out_shape=jax.ShapeDtypeStruct((m, n2), jnp.float32),
        in_specs=[
            pl.BlockSpec((m, k1), lambda: (0, 0)),
            pl.BlockSpec((k1, n1), lambda: (0, 0)),
            pl.BlockSpec((1, n1), lambda: (0, 0)),
            pl.BlockSpec((n1, n2), lambda: (0, 0)),
            pl.BlockSpec((1, n2), lambda: (0, 0)),
        ],
        out_specs=pl.BlockSpec((m, n2), lambda: (0, 0)),
    )(x, w1, b1, w2, b2)


# ------------------------------ JAX glue ----------------------------------- #

def _im2col_pool_banks(x):
    """x: (B, H, W, C) NHWC, H/W even.  Returns (cols, n_m):
    cols (4 * n_m * MB, 9*C) bf16, bank-major over the 4 pool positions
    (py, px); inside each bank rows are ordered (b, h_out, w_out)."""
    b, h, w, c = x.shape
    ho, wo = h // 2, w // 2
    xp = jnp.pad(x, ((0, 0), (1, 1), (1, 1), (0, 0)))
    pch = jnp.stack([xp[:, dy:dy + h, dx:dx + w, :]
                     for dy in range(3) for dx in range(3)], axis=3)  # (B,H,W,9,C)
    pch = pch.reshape(b, ho, 2, wo, 2, 9 * c)
    pch = jnp.transpose(pch, (2, 4, 0, 1, 3, 5))          # (py, px, b, ho, wo, 9C)
    cols = pch.reshape(4, b * ho * wo, 9 * c)
    m = b * ho * wo
    n_m = -(-m // MB)
    cols = jnp.pad(cols, ((0, 0), (0, n_m * MB - m), (0, 0)))
    return cols.reshape(4 * n_m * MB, 9 * c).astype(jnp.bfloat16), n_m


def model_forward(x_nchw, p):
    b = x_nchw.shape[0]
    x = jnp.transpose(x_nchw, (0, 2, 3, 1)).astype(jnp.bfloat16)   # NHWC (B,28,28,1)

    cols1, n_m1 = _im2col_pool_banks(x)
    y1 = conv3x3_relu_pool(cols1, p["conv1_w"], p["conv1_b"], n_m=n_m1)
    a1 = y1[: b * 14 * 14].reshape(b, 14, 14, 128)[..., :32]       # real 32 channels

    cols2, n_m2 = _im2col_pool_banks(a1)
    y2 = conv3x3_relu_pool(cols2, p["conv2_w"], p["conv2_b"], n_m=n_m2)
    # Feature order is (h, w, c_pad=128); fc1_w was pre-permuted/padded to match
    # torch.flatten(NCHW) semantics, so no runtime transpose is needed.
    feat = y2[: b * 7 * 7].reshape(b, 7 * 7 * 128)

    out = mlp_head(feat, p["fc1_w"], p["fc1_b"], p["fc2_w"], p["fc2_b"])
    return out[:, :10]


def prepare_params(raw):
    """One-time weight re-layout, done outside the jit'd forward."""
    def conv_w(w_oihw):
        o, i, _, _ = w_oihw.shape
        w = jnp.transpose(w_oihw, (2, 3, 1, 0)).reshape(9 * i, o)  # (ky,kx,cin) x O
        return jnp.pad(w, ((0, 0), (0, 128 - o))).astype(jnp.bfloat16)

    def pad_bias(bvec):
        return jnp.pad(bvec, (0, 128 - bvec.shape[0])).reshape(1, 128).astype(jnp.float32)

    # fc1: torch (128, 64*7*7) with K order (c, h, w)  ->  (7*7*128, 128) with
    # K order (h, w, c_pad), zeros for the padded channels 64..127.
    fc1 = raw["fc1_w"].reshape(128, 64, 7, 7)
    fc1 = jnp.transpose(fc1, (2, 3, 1, 0))                 # (h, w, c, n)
    fc1 = jnp.pad(fc1, ((0, 0), (0, 0), (0, 64), (0, 0)))
    fc1 = fc1.reshape(7 * 7 * 128, 128).astype(jnp.bfloat16)

    fc2 = jnp.transpose(raw["fc2_w"])                      # (128, 10)
    fc2 = jnp.pad(fc2, ((0, 0), (0, 118))).astype(jnp.bfloat16)

    return {
        "conv1_w": conv_w(raw["conv1_w"]), "conv1_b": pad_bias(raw["conv1_b"]),
        "conv2_w": conv_w(raw["conv2_w"]), "conv2_b": pad_bias(raw["conv2_b"]),
        "fc1_w": fc1, "fc1_b": pad_bias(raw["fc1_b"]),
        "fc2_w": fc2, "fc2_b": pad_bias(raw["fc2_b"]),
    }


def init_params(key):
    """Deterministic synthetic params in torch layout, uniform(-1/sqrt(fan_in), +)."""
    ks = jax.random.split(key, 8)

    def u(k, shape, fan_in):
        bound = 1.0 / jnp.sqrt(fan_in)
        return jax.random.uniform(k, shape, jnp.float32, -bound, bound)

    return {
        "conv1_w": u(ks[0], (32, 1, 3, 3), 1 * 9),
        "conv1_b": u(ks[1], (32,), 1 * 9),
        "conv2_w": u(ks[2], (64, 32, 3, 3), 32 * 9),
        "conv2_b": u(ks[3], (64,), 32 * 9),
        "fc1_w": u(ks[4], (128, 64 * 7 * 7), 64 * 7 * 7),
        "fc1_b": u(ks[5], (128,), 64 * 7 * 7),
        "fc2_w": u(ks[6], (10, 128), 128),
        "fc2_b": u(ks[7], (10,), 128),
    }


if __name__ == "__main__":
    # Input must be (B, 1, 28, 28) so fc1's 64*7*7 lines up (MNIST-style).
    x = jax.random.normal(jax.random.PRNGKey(0), (2, 1, 28, 28), dtype=jnp.float32)
    raw_params = init_params(jax.random.PRNGKey(42))
    params = prepare_params(raw_params)      # one-time layout prep, outside jit

    out = jax.jit(model_forward)(x, params)
    out = jax.block_until_ready(out)

    assert out.shape == (2, 10), out.shape
    assert out.dtype == jnp.float32
    print("KERNEL_OK")
</pallas_src>

<mosaic_0001>
module attributes {stable_mosaic.version = 11 : i64} {
  func.func @_conv_pool_kernel(%arg0: i32, %arg1: i32, %arg2: memref<256x9xbf16, #tpu.memory_space<vmem>>, %arg3: memref<9x128xbf16, #tpu.memory_space<vmem>>, %arg4: memref<1x128xf32, #tpu.memory_space<vmem>>, %arg5: memref<256x128xbf16, #tpu.memory_space<vmem>>) attributes {dimension_semantics = [#tpu.dimension_semantics<parallel>, #tpu.dimension_semantics<arbitrary>], iteration_bounds = array<i64: 2, 4>, scalar_prefetch = 0 : i64, scratch_operands = 0 : i64, tpu.core_type = #tpu.core_type<tc>, window_params = [{transform_indices = @transform_0, window_bounds = array<i64: 256, 9>}, {pipeline_mode = #tpu.pipeline_mode<synchronous>, transform_indices = @transform_1, window_bounds = array<i64: 9, 128>}, {pipeline_mode = #tpu.pipeline_mode<synchronous>, transform_indices = @transform_2, window_bounds = array<i64: 1, 128>}, {transform_indices = @transform_3, window_bounds = array<i64: 256, 128>}]} {
    %c0 = arith.constant 0 : index
    %c0_0 = arith.constant 0 : index
    %0 = vector.load %arg2[%c0, %c0_0] : memref<256x9xbf16, #tpu.memory_space<vmem>>, vector<256x9xbf16>
    %c0_1 = arith.constant 0 : index
    %c0_2 = arith.constant 0 : index
    %1 = vector.load %arg3[%c0_1, %c0_2] : memref<9x128xbf16, #tpu.memory_space<vmem>>, vector<9x128xbf16>
    %cst = arith.constant dense<0.000000e+00> : vector<256x128xf32>
    %2 = tpu.matmul %0, %1, %cst {dimension_numbers = #tpu.dot_dimension_numbers<[1], [0], [0], [1], [0, 0, 1, 1], [], []>} : vector<256x9xbf16>, vector<9x128xbf16>, vector<256x128xf32> -> vector<256x128xf32>
    %c0_3 = arith.constant 0 : index
    %c0_4 = arith.constant 0 : index
    %3 = vector.load %arg4[%c0_3, %c0_4] : memref<1x128xf32, #tpu.memory_space<vmem>>, vector<1x128xf32>
    %4 = vector.broadcast %3 : vector<1x128xf32> to vector<256x128xf32>
    %5 = arith.addf %2, %4 : vector<256x128xf32>
    %cst_5 = arith.constant 0.000000e+00 : f32
    %6 = vector.broadcast %cst_5 : f32 to vector<256x128xf32>
    %7 = arith.maximumf %5, %6 : vector<256x128xf32>
    %8 = arith.truncf %7 : vector<256x128xf32> to vector<256x128xbf16>
    %c0_i32 = arith.constant 0 : i32
    %9 = arith.cmpi eq, %arg1, %c0_i32 : i32
    %10 = arith.extui %9 : i1 to i32
    %c0_i32_6 = arith.constant 0 : i32
    %11 = arith.cmpi ne, %10, %c0_i32_6 : i32
    scf.if %11 {
      %c0_9 = arith.constant 0 : index
      %c0_10 = arith.constant 0 : index
      %15 = vector.load %arg5[%c0_9, %c0_10] : memref<256x128xbf16, #tpu.memory_space<vmem>>, vector<256x128xbf16>
      tpu.vector_store %arg5[%c0_9, %c0_10], %8 {strides = array<i32>} : memref<256x128xbf16, #tpu.memory_space<vmem>>, vector<256x128xbf16>,
    } else {
    }
    %c0_i32_7 = arith.constant 0 : i32
    %12 = arith.cmpi sgt, %arg1, %c0_i32_7 : i32
    %13 = arith.extui %12 : i1 to i32
    %c0_i32_8 = arith.constant 0 : i32
    %14 = arith.cmpi ne, %13, %c0_i32_8 : i32
    scf.if %14 {
      %c0_9 = arith.constant 0 : index
      %c0_10 = arith.constant 0 : index
      %15 = vector.load %arg5[%c0_9, %c0_10] : memref<256x128xbf16, #tpu.memory_space<vmem>>, vector<256x128xbf16>
      %16 = arith.maximumf %15, %8 : vector<256x128xbf16>
      %c0_11 = arith.constant 0 : index
      %c0_12 = arith.constant 0 : index
      %17 = vector.load %arg5[%c0_11, %c0_12] : memref<256x128xbf16, #tpu.memory_space<vmem>>, vector<256x128xbf16>
      tpu.vector_store %arg5[%c0_11, %c0_12], %16 {strides = array<i32>} : memref<256x128xbf16, #tpu.memory_space<vmem>>, vector<256x128xbf16>,
    } else {
    }
    return
  }
  func.func @transform_0(%arg0: i32, %arg1: i32) -> (i32, i32) {
    %c2_i32 = arith.constant 2 : i32
    %0 = arith.muli %arg1, %c2_i32 : i32
    %1 = arith.addi %0, %arg0 : i32
    %c0_i32 = arith.constant 0 : i32
    %c0_i32_0 = arith.constant 0 : i32
    return %1, %c0_i32 : i32, i32
  }
  func.func @transform_1(%arg0: i32, %arg1: i32) -> (i32, i32) {
    %c0_i32 = arith.constant 0 : i32
    %c0_i32_0 = arith.constant 0 : i32
    %c0_i32_1 = arith.constant 0 : i32
    return %c0_i32, %c0_i32_0 : i32, i32
  }
  func.func @transform_2(%arg0: i32, %arg1: i32) -> (i32, i32) {
    %c0_i32 = arith.constant 0 : i32
    %c0_i32_0 = arith.constant 0 : i32
    %c0_i32_1 = arith.constant 0 : i32
    return %c0_i32, %c0_i32_0 : i32, i32
  }
  func.func @transform_3(%arg0: i32, %arg1: i32) -> (i32, i32) {
    %c0_i32 = arith.constant 0 : i32
    %c0_i32_0 = arith.constant 0 : i32
    return %arg0, %c0_i32 : i32, i32
  }
}

module attributes {stable_mosaic.version = 11 : i64} {
  func.func @_conv_pool_kernel(%arg0: i32, %arg1: i32, %arg2: memref<256x288xbf16, #tpu.memory_space<vmem>>, %arg3: memref<288x128xbf16, #tpu.memory_space<vmem>>, %arg4: memref<1x128xf32, #tpu.memory_space<vmem>>, %arg5: memref<256x128xbf16, #tpu.memory_space<vmem>>) attributes {dimension_semantics = [#tpu.dimension_semantics<parallel>, #tpu.dimension_semantics<arbitrary>], iteration_bounds = array<i64: 1, 4>, scalar_prefetch = 0 : i64, scratch_operands = 0 : i64, tpu.core_type = #tpu.core_type<tc>, window_params = [{transform_indices = @transform_0, window_bounds = array<i64: 256, 288>}, {pipeline_mode = #tpu.pipeline_mode<synchronous>, transform_indices = @transform_1, window_bounds = array<i64: 288, 128>}, {pipeline_mode = #tpu.pipeline_mode<synchronous>, transform_indices = @transform_2, window_bounds = array<i64: 1, 128>}, {transform_indices = @transform_3, window_bounds = array<i64: 256, 128>}]} {
    %c0 = arith.constant 0 : index
    %c0_0 = arith.constant 0 : index
    %0 = vector.load %arg2[%c0, %c0_0] : memref<256x288xbf16, #tpu.memory_space<vmem>>, vector<256x288xbf16>
    %c0_1 = arith.constant 0 : index
    %c0_2 = arith.constant 0 : index
    %1 = vector.load %arg3[%c0_1, %c0_2] : memref<288x128xbf16, #tpu.memory_space<vmem>>, vector<288x128xbf16>
    %cst = arith.constant dense<0.000000e+00> : vector<256x128xf32>
    %2 = tpu.matmul %0, %1, %cst {dimension_numbers = #tpu.dot_dimension_numbers<[1], [0], [0], [1], [0, 0, 1, 1], [], []>} : vector<256x288xbf16>, vector<288x128xbf16>, vector<256x128xf32> -> vector<256x128xf32>
    %c0_3 = arith.constant 0 : index
    %c0_4 = arith.constant 0 : index
    %3 = vector.load %arg4[%c0_3, %c0_4] : memref<1x128xf32, #tpu.memory_space<vmem>>, vector<1x128xf32>
    %4 = vector.broadcast %3 : vector<1x128xf32> to vector<256x128xf32>
    %5 = arith.addf %2, %4 : vector<256x128xf32>
    %cst_5 = arith.constant 0.000000e+00 : f32
    %6 = vector.broadcast %cst_5 : f32 to vector<256x128xf32>
    %7 = arith.maximumf %5, %6 : vector<256x128xf32>
    %8 = arith.truncf %7 : vector<256x128xf32> to vector<256x128xbf16>
    %c0_i32 = arith.constant 0 : i32
    %9 = arith.cmpi eq, %arg1, %c0_i32 : i32
    %10 = arith.extui %9 : i1 to i32
    %c0_i32_6 = arith.constant 0 : i32
    %11 = arith.cmpi ne, %10, %c0_i32_6 : i32
    scf.if %11 {
      %c0_9 = arith.constant 0 : index
      %c0_10 = arith.constant 0 : index
      %15 = vector.load %arg5[%c0_9, %c0_10] : memref<256x128xbf16, #tpu.memory_space<vmem>>, vector<256x128xbf16>
      tpu.vector_store %arg5[%c0_9, %c0_10], %8 {strides = array<i32>} : memref<256x128xbf16, #tpu.memory_space<vmem>>, vector<256x128xbf16>,
    } else {
    }
    %c0_i32_7 = arith.constant 0 : i32
    %12 = arith.cmpi sgt, %arg1, %c0_i32_7 : i32
    %13 = arith.extui %12 : i1 to i32
    %c0_i32_8 = arith.constant 0 : i32
    %14 = arith.cmpi ne, %13, %c0_i32_8 : i32
    scf.if %14 {
      %c0_9 = arith.constant 0 : index
      %c0_10 = arith.constant 0 : index
      %15 = vector.load %arg5[%c0_9, %c0_10] : memref<256x128xbf16, #tpu.memory_space<vmem>>, vector<256x128xbf16>
      %16 = arith.maximumf %15, %8 : vector<256x128xbf16>
      %c0_11 = arith.constant 0 : index
      %c0_12 = arith.constant 0 : index
      %17 = vector.load %arg5[%c0_11, %c0_12] : memref<256x128xbf16, #tpu.memory_space<vmem>>, vector<256x128xbf16>
      tpu.vector_store %arg5[%c0_11, %c0_12], %16 {strides = array<i32>} : memref<256x128xbf16, #tpu.memory_space<vmem>>, vector<256x128xbf16>,
    } else {
    }
    return
  }
  func.func @transform_0(%arg0: i32, %arg1: i32) -> (i32, i32) {
    %c1_i32 = arith.constant 1 : i32
    %0 = arith.muli %arg1, %c1_i32 : i32
    %1 = arith.addi %0, %arg0 : i32
    %c0_i32 = arith.constant 0 : i32
    %c0_i32_0 = arith.constant 0 : i32
    return %1, %c0_i32 : i32, i32
  }
  func.func @transform_1(%arg0: i32, %arg1: i32) -> (i32, i32) {
    %c0_i32 = arith.constant 0 : i32
    %c0_i32_0 = arith.constant 0 : i32
    %c0_i32_1 = arith.constant 0 : i32
    return %c0_i32, %c0_i32_0 : i32, i32
  }
  func.func @transform_2(%arg0: i32, %arg1: i32) -> (i32, i32) {
    %c0_i32 = arith.constant 0 : i32
    %c0_i32_0 = arith.constant 0 : i32
    %c0_i32_1 = arith.constant 0 : i32
    return %c0_i32, %c0_i32_0 : i32, i32
  }
  func.func @transform_3(%arg0: i32, %arg1: i32) -> (i32, i32) {
    %c0_i32 = arith.constant 0 : i32
    %c0_i32_0 = arith.constant 0 : i32
    return %arg0, %c0_i32 : i32, i32
  }
}

module attributes {stable_mosaic.version = 11 : i64} {
  func.func @_mlp_kernel(%arg0: memref<2x6272xbf16, #tpu.memory_space<vmem>>, %arg1: memref<6272x128xbf16, #tpu.memory_space<vmem>>, %arg2: memref<1x128xf32, #tpu.memory_space<vmem>>, %arg3: memref<128x128xbf16, #tpu.memory_space<vmem>>, %arg4: memref<1x128xf32, #tpu.memory_space<vmem>>, %arg5: memref<2x128xf32, #tpu.memory_space<vmem>>) attributes {dimension_semantics = [], scalar_prefetch = 0 : i64, scratch_operands = 0 : i64, tpu.core_type = #tpu.core_type<tc>} {
    %c0 = arith.constant 0 : index
    %c0_0 = arith.constant 0 : index
    %0 = vector.load %arg0[%c0, %c0_0] : memref<2x6272xbf16, #tpu.memory_space<vmem>>, vector<2x6272xbf16>
    %c0_1 = arith.constant 0 : index
    %c0_2 = arith.constant 0 : index
    %1 = vector.load %arg1[%c0_1, %c0_2] : memref<6272x128xbf16, #tpu.memory_space<vmem>>, vector<6272x128xbf16>
    %cst = arith.constant dense<0.000000e+00> : vector<2x128xf32>
    %2 = tpu.matmul %0, %1, %cst {dimension_numbers = #tpu.dot_dimension_numbers<[1], [0], [0], [1], [0, 0, 1, 1], [], []>} : vector<2x6272xbf16>, vector<6272x128xbf16>, vector<2x128xf32> -> vector<2x128xf32>
    %c0_3 = arith.constant 0 : index
    %c0_4 = arith.constant 0 : index
    %3 = vector.load %arg2[%c0_3, %c0_4] : memref<1x128xf32, #tpu.memory_space<vmem>>, vector<1x128xf32>
    %4 = vector.broadcast %3 : vector<1x128xf32> to vector<2x128xf32>
    %5 = arith.addf %2, %4 : vector<2x128xf32>
    %cst_5 = arith.constant 0.000000e+00 : f32
    %6 = vector.broadcast %cst_5 : f32 to vector<2x128xf32>
    %7 = arith.maximumf %5, %6 : vector<2x128xf32>
    %8 = arith.truncf %7 : vector<2x128xf32> to vector<2x128xbf16>
    %c0_6 = arith.constant 0 : index
    %c0_7 = arith.constant 0 : index
    %9 = vector.load %arg3[%c0_6, %c0_7] : memref<128x128xbf16, #tpu.memory_space<vmem>>, vector<128x128xbf16>
    %cst_8 = arith.constant dense<0.000000e+00> : vector<2x128xf32>
    %10 = tpu.matmul %8, %9, %cst_8 {dimension_numbers = #tpu.dot_dimension_numbers<[1], [0], [0], [1], [0, 0, 1, 1], [], []>} : vector<2x128xbf16>, vector<128x128xbf16>, vector<2x128xf32> -> vector<2x128xf32>
    %c0_9 = arith.constant 0 : index
    %c0_10 = arith.constant 0 : index
    %11 = vector.load %arg4[%c0_9, %c0_10] : memref<1x128xf32, #tpu.memory_space<vmem>>, vector<1x128xf32>
    %12 = vector.broadcast %11 : vector<1x128xf32> to vector<2x128xf32>
    %13 = arith.addf %10, %12 : vector<2x128xf32>
    %c0_11 = arith.constant 0 : index
    %c0_12 = arith.constant 0 : index
    %14 = vector.load %arg5[%c0_11, %c0_12] : memref<2x128xf32, #tpu.memory_space<vmem>>, vector<2x128xf32>
    tpu.vector_store %arg5[%c0_11, %c0_12], %13 {strides = array<i32>} : memref<2x128xf32, #tpu.memory_space<vmem>>, vector<2x128xf32>,
    return
  }
}

</mosaic_0001>

<bundles_post_ra>
// kernel: model_forward.3
= control target key start
LH: loop header
LB: loop body
LE: loop exit
PB: predicated region body
PF: predicated region fallthrough
CT: control target
= control target key end

     0   :  { %s1576_s12 = smov 0   ;;  %s1578_s13 = smov 0   ;;  %s1932_s0 = inlined_call_operand.vmem [shape: bf16[2048,9], index: 0, kind: input, shape index: {}]   ;;  %s1933_s1 = inlined_call_operand.vmem [shape: bf16[9,128], index: 1, kind: input, shape index: {}]   ;;  %s1934_s2 = inlined_call_operand.vmem [shape: f32[1,128], index: 2, kind: input, shape index: {}]   ;;  %s1935_s3 = inlined_call_operand.vmem [shape: bf16[512,128], index: 3, kind: output, shape index: {}]  }
   0x1   :  { %s1580_s14 = smov 0   ;;  %s1582_s15 = smov 0  }
   0x2   :  { %s1584_s16 = smov 0  }
   0x3 LB: > { %s22_s17 = sadd.s32 1, %s1545_s14  ;;  %s25_s18 = sadd.s32 1, %s1549_s15  ;;  %s1553_s16 = sphi %s1584_s16, %s13_s16   ;;  %s1549_s15 = sphi %s1582_s15, %s1939_s15   ;;  %s1545_s14 = sphi %s1580_s14, %s1938_s14   ;;  %s1541_s13 = sphi %s1578_s13, %s1937_s13   ;;  %s1537_s12 = sphi %s1576_s12, %s1936_s12  }
   0x4   : > { %p23_p0 = scmp.ge.s32.totalorder %s22_s17, 4  ;;  %p1026_p1 = scmp.ge.s32.totalorder %s1553_s16, 1 }
   0x5   : > { %p158_p2 = scmp.lt.s32.totalorder %s1553_s16, 9 }
   0x6   : > { %s1941_s17 = smov (%p23_p0, %s22_s17), 0  ;;  %s1943_s18 = smov (!%p23_p0, %s25_s18), %s1549_s15 }
   0x7   : > { %p159_p3 = pnand %p1026_p1, %p158_p2  ;;  %p27_p4 = scmp.ge.s32.totalorder %s1943_s18, 2 }
   0x8   : > { %s1030_s19 = sshll.u32 (!%p159_p3), %s1541_s13, 5  ;;  %s1027_s22 = sshll.u32 (!%p159_p3), %s1537_s12, 1 }
   0x9   : > { %s1945_s18 = smov (%p27_p4, %s1943_s18), 0  ;;  %162 = sbr.rel (%p159_p3) target bundleno = 291 (0x123), region = 32 }
   0xa   : > { %p195_p5 = scmp.lt.s32.totalorder (!%p159_p3), %s1030_s19, 63  ;;  %s185_s23 = sadd.s32 (!%p159_p3), %s1541_s13, %s1027_s22 }
   0xb   : > { %s1028_s24 = sshll.u32 (!%p159_p3), %s185_s23, 5  ;;  %p1066_p7 = scmp.ne.s32.totalorder (!%p159_p3), %s1537_s12, 0 }
   0xc   : > { %p187_p6 = scmp.lt.s32.totalorder (!%p159_p3), %s1028_s24, 255 }
   0xe   : > { %vm376_vm0 = vcmask 1043456   ;;  %v1498_v0 = vld [vmem:[%s1933_s1] sm:$0x1f]   ;;  %vm377_vm1 = vcmask 1044480   ;;  %v1555_v1 = vmov 65535   ;;  %s1947_s19 = smov (!%p195_p5, %s1030_s19), 63 }
   0xf   : > { %v378_v2 = vsel %vm376_vm0, 4294967295, %v1555_v1  ;;  %s1031_s25 = sshll.u32 %s1947_s19, 2  ;;  %s1949_s24 = smov (!%p187_p6, %s1028_s24), 255  ;;  %vm327_vm2 = vcmask 72704   ;;  %v1657_v21 = vld [vmem:[%s1934_s2] ss:$0 sm:$0xff] }
  0x10   : > { %v379_v3 = vsel %vm377_vm1, %v378_v2, 0  ;;  %s1615_s28 = scalar_lea.vmem %s1935_s3, %s1031_s25  ;;  %s1029_s29 = sshll.u32 %s1949_s24, 2 }
  0x11   : > { %v381_v4 = vand.u32 %v1498_v0, %v379_v3  ;;  %s1620_s5 = scalar_lea.vmem %s1932_s0, %s1029_s29 }
  0x12   : > { %v1499_v5 = vld [vmem:[%s1620_s5] sm:$0xff]   ;;  %v1501_v7 = vld [vmem:[%s1620_s5 + $0x8] sm:$0xff]   ;;  %v1503_v9 = vld [vmem:[%s1620_s5 + $0x10] sm:$0xff]  }
  0x13   : > { %1421 = vmatprep.subr.bf16.mxu0 %v381_v4  ;;  %1455 = vmatprep.subr.bf16.mxu1 %v381_v4  ;;  %v1500_v6 = vld [vmem:[%s1620_s5 + $0x40] sm:$0xff]   ;;  %v1502_v8 = vld [vmem:[%s1620_s5 + $0x48] sm:$0xff]   ;;  %v1504_v10 = vld [vmem:[%s1620_s5 + $0x50] sm:$0xff]  }
  0x14   : > { %1422 = vmatpush3.bf16.msra.mxu0 %v381_v4  ;;  %1456 = vmatpush3.bf16.msra.mxu1 %v381_v4  ;;  %v1505_v11 = vld [vmem:[%s1620_s5 + $0x18] sm:$0xff]   ;;  %v1507_v13 = vld [vmem:[%s1620_s5 + $0x20] sm:$0xff]   ;;  %v1509_v15 = vld [vmem:[%s1620_s5 + $0x28] sm:$0xff]  }
  0x15   : > { %1423 = vmatprep.mubr.msk.bf16.mxu0 %vm327_vm2, %v1499_v5  ;;  %1439 = vmatprep.mubr.msk.bf16.mxu1 %vm327_vm2, %v1500_v6  ;;  %v1506_v12 = vld [vmem:[%s1620_s5 + $0x58] sm:$0xff]   ;;  %v1508_v14 = vld [vmem:[%s1620_s5 + $0x60] sm:$0xff]   ;;  %v1510_v16 = vld [vmem:[%s1620_s5 + $0x68] sm:$0xff]  }
  0x16   : > { %v1511_v17 = vld [vmem:[%s1620_s5 + $0x30] sm:$0xff]   ;;  %v1513_v19 = vld [vmem:[%s1620_s5 + $0x38] sm:$0xff]  }
  0x17   : > { %1424 = vmatmul.mubr.msk.bf16.vlgmr.msra.gmra.mxu0 %vm327_vm2, %v1501_v7  ;;  %1440 = vmatmul.mubr.msk.bf16.vlgmr.msra.gmra.mxu1 %vm327_vm2, %v1502_v8  ;;  %v1512_v18 = vld [vmem:[%s1620_s5 + $0x70] sm:$0xff]   ;;  %v1514_v20 = vld [vmem:[%s1620_s5 + $0x78] sm:$0xff]  }
  0x18   : > { %1427 = vmatprep.mubr.msk.bf16.mxu0 %vm327_vm2, %v1503_v9  ;;  %1443 = vmatprep.mubr.msk.bf16.mxu1 %vm327_vm2, %v1504_v10 }
  0x1f   : > { %1428 = vmatmul.mubr.msk.bf16.gmra.mxu0 %vm327_vm2, %v1505_v11  ;;  %1444 = vmatmul.mubr.msk.bf16.gmra.mxu1 %vm327_vm2, %v1506_v12 }
  0x20   : > { %1431 = vmatprep.mubr.msk.bf16.mxu0 %vm327_vm2, %v1507_v13  ;;  %1447 = vmatprep.mubr.msk.bf16.mxu1 %vm327_vm2, %v1508_v14 }
  0x27   : > { %1432 = vmatmul.mubr.msk.bf16.gmra.mxu0 %vm327_vm2, %v1509_v15  ;;  %1448 = vmatmul.mubr.msk.bf16.gmra.mxu1 %vm327_vm2, %v1510_v16 }
  0x28   : > { %1435 = vmatprep.mubr.msk.bf16.mxu0 %vm327_vm2, %v1511_v17  ;;  %1451 = vmatprep.mubr.msk.bf16.mxu1 %vm327_vm2, %v1512_v18 }
  0x2f   : > { %1436 = vmatmul.mubr.msk.bf16.gmra.mxu0 %vm327_vm2, %v1513_v19  ;;  %1452 = vmatmul.mubr.msk.bf16.gmra.mxu1 %vm327_vm2, %v1514_v20 }
  0xd7   : > { %v1425_v22 = vpop.f32.mrf.mxu0  ;;  %v1441_v24 = vpop.f32.mrf.mxu1 }
  0xd8   : > { %v426_v23 = vadd.f32 %v1425_v22, %v1657_v21  ;;  %v490_v25 = vadd.f32 %v1441_v24, %v1657_v21 }
  0xd9   : > { %v417_v26 = vpop.f32.mrf.mxu0  ;;  %v481_v29 = vpop.f32.mrf.mxu1 }
  0xda   : > { %v1661_v27 = vmax.f32 %v426_v23, 0.0  ;;  %v418_v28 = vadd.f32 %v1657_v21, %v417_v26  ;;  %v1664_v30 = vmax.f32 %v490_v25, 0.0  ;;  %v482_v31 = vadd.f32 %v1657_v21, %v481_v29 }
  0xdb   : > { %v1426_v32 = vpop.f32.mrf.mxu0  ;;  %v1442_v35 = vpop.f32.mrf.mxu1 }
  0xdc   : > { %v1667_v33 = vmax.f32 %v418_v28, 0.0  ;;  %v429_v34 = vadd.f32 %v1426_v32, %v1657_v21  ;;  %v1670_v36 = vmax.f32 %v482_v31, 0.0  ;;  %v493_v37 = vadd.f32 %v1442_v35, %v1657_v21 }
  0xdd   : > { %v420_v38 = vpop.f32.mrf.mxu0  ;;  %v484_v41 = vpop.f32.mrf.mxu1 }
  0xde   : > { %v1673_v39 = vmax.f32 %v429_v34, 0.0  ;;  %v421_v40 = vadd.f32 %v1657_v21, %v420_v38  ;;  %v1676_v42 = vmax.f32 %v493_v37, 0.0  ;;  %v485_v43 = vadd.f32 %v1657_v21, %v484_v41 }
  0xdf   : > { %v1429_v44 = vpop.f32.mrf.mxu0  ;;  %v1445_v47 = vpop.f32.mrf.mxu1 }
  0xe0   : > { %v1679_v45 = vmax.f32 %v421_v40, 0.0  ;;  %v442_v46 = vadd.f32 %v1429_v44, %v1657_v21  ;;  %v1682_v48 = vmax.f32 %v485_v43, 0.0  ;;  %v506_v49 = vadd.f32 %v1445_v47, %v1657_v21 }
  0xe1   : > { %v433_v50 = vpop.f32.mrf.mxu0  ;;  %v497_v53 = vpop.f32.mrf.mxu1 }
  0xe2   : > { %v1685_v51 = vmax.f32 %v442_v46, 0.0  ;;  %v434_v52 = vadd.f32 %v1657_v21, %v433_v50  ;;  %v1688_v54 = vmax.f32 %v506_v49, 0.0  ;;  %v498_v55 = vadd.f32 %v1657_v21, %v497_v53 }
  0xe3   : > { %v1430_v56 = vpop.f32.mrf.mxu0  ;;  %v1446_v59 = vpop.f32.mrf.mxu1 }
  0xe4   : > { %v1691_v57 = vmax.f32 %v434_v52, 0.0  ;;  %v445_v58 = vadd.f32 %v1430_v56, %v1657_v21  ;;  %v1694_v60 = vmax.f32 %v498_v55, 0.0  ;;  %v509_v61 = vadd.f32 %v1446_v59, %v1657_v21 }
  0xe5   : > { %v436_v62 = vpop.f32.mrf.mxu0  ;;  %v500_v1 = vpop.f32.mrf.mxu1 }
  0xe6   : > { %v1697_v63 = vmax.f32 %v445_v58, 0.0  ;;  %v437_v0 = vadd.f32 %v1657_v21, %v436_v62  ;;  %v1700_v2 = vmax.f32 %v509_v61, 0.0  ;;  %v501_v3 = vadd.f32 %v1657_v21, %v500_v1 }
  0xe7   : > { %v1433_v4 = vpop.f32.mrf.mxu0  ;;  %v1449_v7 = vpop.f32.mrf.mxu1 }
  0xe8   : > { %v1703_v5 = vmax.f32 %v437_v0, 0.0  ;;  %v458_v6 = vadd.f32 %v1433_v4, %v1657_v21  ;;  %v1706_v8 = vmax.f32 %v501_v3, 0.0  ;;  %v522_v9 = vadd.f32 %v1449_v7, %v1657_v21 }
  0xe9   : > { %v449_v10 = vpop.f32.mrf.mxu0  ;;  %v513_v13 = vpop.f32.mrf.mxu1 }
  0xea   : > { %v1709_v11 = vmax.f32 %v458_v6, 0.0  ;;  %v450_v12 = vadd.f32 %v1657_v21, %v449_v10  ;;  %v1712_v14 = vmax.f32 %v522_v9, 0.0  ;;  %v514_v15 = vadd.f32 %v1657_v21, %v513_v13 }
  0xeb   : > { %v1434_v16 = vpop.f32.mrf.mxu0  ;;  %v1450_v19 = vpop.f32.mrf.mxu1 }
  0xec   : > { %v1715_v17 = vmax.f32 %v450_v12, 0.0  ;;  %v461_v18 = vadd.f32 %v1434_v16, %v1657_v21  ;;  %v1718_v20 = vmax.f32 %v514_v15, 0.0  ;;  %v525_v22 = vadd.f32 %v1450_v19, %v1657_v21 }
  0xed   : > { %v452_v23 = vpop.f32.mrf.mxu0  ;;  %v516_v26 = vpop.f32.mrf.mxu1 }
  0xee   : > { %v1721_v24 = vmax.f32 %v461_v18, 0.0  ;;  %v453_v25 = vadd.f32 %v1657_v21, %v452_v23  ;;  %v1724_v28 = vmax.f32 %v525_v22, 0.0  ;;  %v517_v29 = vadd.f32 %v1657_v21, %v516_v26 }
  0xef   : > { %v1437_v31 = vpop.f32.mrf.mxu0  ;;  %v1453_v35 = vpop.f32.mrf.mxu1 }
  0xf0   : > { %v1727_v32 = vmax.f32 %v453_v25, 0.0  ;;  %v474_v34 = vadd.f32 %v1437_v31, %v1657_v21  ;;  %v1730_v37 = vmax.f32 %v517_v29, 0.0  ;;  %v538_v38 = vadd.f32 %v1453_v35, %v1657_v21 }
  0xf1   : > { %v465_v40 = vpop.f32.mrf.mxu0  ;;  %v529_v44 = vpop.f32.mrf.mxu1 }
  0xf2   : > { %v1733_v41 = vmax.f32 %v474_v34, 0.0  ;;  %v466_v43 = vadd.f32 %v1657_v21, %v465_v40  ;;  %v1736_v46 = vmax.f32 %v538_v38, 0.0  ;;  %v530_v47 = vadd.f32 %v1657_v21, %v529_v44 }
  0xf3   : > { %v1438_v49 = vpop.f32.mrf.mxu0  ;;  %v1454_v53 = vpop.f32.mrf.mxu1 }
  0xf4   : > { %v1739_v50 = vmax.f32 %v466_v43, 0.0  ;;  %v477_v52 = vadd.f32 %v1438_v49, %v1657_v21  ;;  %v1742_v55 = vmax.f32 %v530_v47, 0.0  ;;  %v541_v56 = vadd.f32 %v1454_v53, %v1657_v21  ;;  %595 = sbr.rel (%p1066_p7) target bundleno = 259 (0x103), region = 36 }
  0xf5   : > { %v468_v58 = vpop.f32.mrf.mxu0  ;;  %v532_v62 = vpop.f32.mrf.mxu1 }
  0xf6   : > { %v1745_v59 = vmax.f32 %v477_v52, 0.0  ;;  %v469_v61 = vadd.f32 %v1657_v21, %v468_v58  ;;  %v1748_v0 = vmax.f32 %v541_v56, 0.0  ;;  %v533_v1 = vadd.f32 %v1657_v21, %v532_v62 }
  0xf8   : > { %v1751_v3 = vmax.f32 %v469_v61, 0.0  ;;  %v1753_v4 = vmax.f32 %v533_v1, 0.0 }
  0xf9   : > { %v1201_v6 = vpack.c.bf16 %v1679_v45, %v1667_v33  ;;  %v1206_v7 = vpack.c.bf16 %v1673_v39, %v1661_v27  ;;  %v1211_v21 = vpack.c.bf16 %v1703_v5, %v1691_v57  ;;  %v1216_v9 = vpack.c.bf16 %v1697_v63, %v1685_v51 }
  0xfa   : > { %v1221_v10 = vpack.c.bf16 %v1727_v32, %v1715_v17  ;;  %v1226_v12 = vpack.c.bf16 %v1721_v24, %v1709_v11  ;;  %v1231_v13 = vpack.c.bf16 %v1751_v3, %v1739_v50  ;;  %v1236_v15 = vpack.c.bf16 %v1745_v59, %v1733_v41 }
  0xfb   : > { %1202 = vst [vmem:[%s1615_s28] sm:$0xff] %v1201_v6   ;;  %1358 = vst [vmem:[%s1615_s28 + $0x8] sm:$0xff] %v1206_v7   ;;  %v1241_v16 = vpack.c.bf16 %v1682_v48, %v1670_v36  ;;  %v1246_v18 = vpack.c.bf16 %v1676_v42, %v1664_v30  ;;  %v1251_v19 = vpack.c.bf16 %v1706_v8, %v1694_v60 }
  0xfc   : > { %1359 = vst [vmem:[%s1615_s28 + $0x10] sm:$0xff] %v1211_v21   ;;  %1360 = vst [vmem:[%s1615_s28 + $0x18] sm:$0xff] %v1216_v9   ;;  %v1256_v22 = vpack.c.bf16 %v1700_v2, %v1688_v54  ;;  %v1261_v23 = vpack.c.bf16 %v1730_v37, %v1718_v20  ;;  %v1266_v25 = vpack.c.bf16 %v1724_v28, %v1712_v14 }
  0xfd   : > { %1361 = vst [vmem:[%s1615_s28 + $0x20] sm:$0xff] %v1221_v10   ;;  %1362 = vst [vmem:[%s1615_s28 + $0x28] sm:$0xff] %v1226_v12   ;;  %v1271_v26 = vpack.c.bf16 %v1753_v4, %v1742_v55  ;;  %v1276_v29 = vpack.c.bf16 %v1748_v0, %v1736_v46 }
  0xfe   : > { %1363 = vst [vmem:[%s1615_s28 + $0x30] sm:$0xff] %v1231_v13   ;;  %1364 = vst [vmem:[%s1615_s28 + $0x38] sm:$0xff] %v1236_v15  }
  0xff   : > { %1365 = vst [vmem:[%s1615_s28 + $0x40] sm:$0xff] %v1241_v16   ;;  %1366 = vst [vmem:[%s1615_s28 + $0x48] sm:$0xff] %v1246_v18  }
 0x100   : > { %1367 = vst [vmem:[%s1615_s28 + $0x50] sm:$0xff] %v1251_v19   ;;  %1368 = vst [vmem:[%s1615_s28 + $0x58] sm:$0xff] %v1256_v22  }
 0x101   : > { %1369 = vst [vmem:[%s1615_s28 + $0x60] sm:$0xff] %v1261_v23   ;;  %1370 = vst [vmem:[%s1615_s28 + $0x68] sm:$0xff] %v1266_v25  }
 0x102   : > { %1371 = vst [vmem:[%s1615_s28 + $0x70] sm:$0xff] %v1271_v26   ;;  %1372 = vst [vmem:[%s1615_s28 + $0x78] sm:$0xff] %v1276_v29  }
 0x103 PF: > { %p1099_p8 = scmp.le.s32.totalorder %s1537_s12, 0 }
 0x105   : > { %743 = sbr.rel (%p1099_p8) target bundleno = 291 (0x123), region = 40 }
 0x10a   : > { %v744_v31 = vld [vmem:[%s1615_s28] sm:$0xf]  ;;  %v745_v34 = vld [vmem:[%s1615_s28 + $0x4] sm:$0xf]  ;;  %v1166_v35 = vpack.c.bf16 %v1667_v33, %v1667_v33  ;;  %v1167_v38 = vpack.c.bf16 %v1679_v45, %v1679_v45  ;;  %v746_v40 = vld [vmem:[%s1615_s28 + $0x8] sm:$0xf]  ;;  %v1168_v43 = vpack.c.bf16 %v1661_v27, %v1661_v27  ;;  %v1169_v44 = vpack.c.bf16 %v1673_v39, %v1673_v39 }
 0x10b   : > { %v747_v47 = vld [vmem:[%s1615_s28 + $0xc] sm:$0xf]  ;;  %v748_v49 = vld [vmem:[%s1615_s28 + $0x10] sm:$0xf]  ;;  %v749_v52 = vld [vmem:[%s1615_s28 + $0x14] sm:$0xf]  ;;  %v1170_v33 = vpack.c.bf16 %v1691_v57, %v1691_v57  ;;  %v1171_v53 = vpack.c.bf16 %v1703_v5, %v1703_v5  ;;  %v1172_v45 = vpack.c.bf16 %v1685_v51, %v1685_v51  ;;  %v1173_v27 = vpack.c.bf16 %v1697_v63, %v1697_v63 }
 0x10c   : > { %v888_v56 = vmax.bf16 %v1166_v35, %v744_v31  ;;  %v889_v39 = vmax.bf16 %v1167_v38, %v745_v34  ;;  %v890_v58 = vmax.bf16 %v1168_v43, %v746_v40  ;;  %v891_v61 = vmax.bf16 %v1169_v44, %v747_v47  ;;  %v750_v62 = vld [vmem:[%s1615_s28 + $0x18] sm:$0xf]  ;;  %v751_v1 = vld [vmem:[%s1615_s28 + $0x1c] sm:$0xf]  ;;  %v752_v51 = vld [vmem:[%s1615_s28 + $0x20] sm:$0xf] }
 0x10d   : > { %v892_v6 = vmax.bf16 %v1170_v33, %v748_v49  ;;  %v893_v57 = vmax.bf16 %v1171_v53, %v749_v52  ;;  %v894_v7 = vmax.bf16 %v1172_v45, %v750_v62  ;;  %v895_v5 = vmax.bf16 %v1173_v27, %v751_v1  ;;  %v753_v21 = vld [vmem:[%s1615_s28 + $0x24] sm:$0xf]  ;;  %v754_v13 = vld [vmem:[%s1615_s28 + $0x28] sm:$0xf]  ;;  %v755_v15 = vld [vmem:[%s1615_s28 + $0x2c] sm:$0xf] }
 0x10e   : > { %v1373_v9 = vcombine.low %v888_v56, %v889_v39  ;;  %v1374_v63 = vcombine.low %v890_v58, %v891_v61  ;;  %v1174_v10 = vpack.c.bf16 %v1715_v17, %v1715_v17  ;;  %v1175_v12 = vpack.c.bf16 %v1727_v32, %v1727_v32  ;;  %v756_v23 = vld [vmem:[%s1615_s28 + $0x30] sm:$0xf]  ;;  %v757_v17 = vld [vmem:[%s1615_s28 + $0x34] sm:$0xf]  ;;  %v758_v31 = vld [vmem:[%s1615_s28 + $0x38] sm:$0xf] }
 0x10f   : > { %v1376_v16 = vcombine.low %v892_v6, %v893_v57  ;;  %v1378_v18 = vcombine.low %v894_v7, %v895_v5  ;;  %v1176_v19 = vpack.c.bf16 %v1709_v11, %v1709_v11  ;;  %v1177_v22 = vpack.c.bf16 %v1721_v24, %v1721_v24  ;;  %v759_v34 = vld [vmem:[%s1615_s28 + $0x3c] sm:$0xf]  ;;  %v760_v40 = vld [vmem:[%s1615_s28 + $0x40] sm:$0xf]  ;;  %v761_v44 = vld [vmem:[%s1615_s28 + $0x44] sm:$0xf] }
 0x110   : > { %1282 = vst [vmem:[%s1615_s28] sm:$0xff] %v1373_v9   ;;  %1375 = vst [vmem:[%s1615_s28 + $0x8] sm:$0xff] %v1374_v63   ;;  %v896_v25 = vmax.bf16 %v1174_v10, %v752_v51  ;;  %v897_v32 = vmax.bf16 %v1175_v12, %v753_v21  ;;  %v1178_v26 = vpack.c.bf16 %v1739_v50, %v1739_v50  ;;  %v763_v53 = vld [vmem:[%s1615_s28 + $0x4c] sm:$0xf]  ;;  %v764_v39 = vld [vmem:[%s1615_s28 + $0x50] sm:$0xf] }
 0x111   : > { %v1179_v29 = vpack.c.bf16 %v1751_v3, %v1751_v3  ;;  %1377 = vst [vmem:[%s1615_s28 + $0x10] sm:$0xff] %v1376_v16   ;;  %1379 = vst [vmem:[%s1615_s28 + $0x18] sm:$0xff] %v1378_v18   ;;  %v898_v11 = vmax.bf16 %v1176_v19, %v754_v13  ;;  %v899_v24 = vmax.bf16 %v1177_v22, %v755_v15  ;;  %v765_v58 = vld [vmem:[%s1615_s28 + $0x54] sm:$0xf]  ;;  %v766_v6 = vld [vmem:[%s1615_s28 + $0x58] sm:$0xf] }
 0x112   : > { %v1180_v35 = vpack.c.bf16 %v1733_v41, %v1733_v41  ;;  %v1181_v38 = vpack.c.bf16 %v1745_v59, %v1745_v59  ;;  %v1380_v50 = vcombine.low %v896_v25, %v897_v32  ;;  %v900_v43 = vmax.bf16 %v1178_v26, %v756_v23  ;;  %v762_v59 = vld [vmem:[%s1615_s28 + $0x48] sm:$0xf]  ;;  %v767_v57 = vld [vmem:[%s1615_s28 + $0x5c] sm:$0xf]  ;;  %v768_v51 = vld [vmem:[%s1615_s28 + $0x60] sm:$0xf] }
 0x113   : > { %v901_v3 = vmax.bf16 %v1179_v29, %v757_v17  ;;  %v1182_v47 = vpack.c.bf16 %v1670_v36, %v1670_v36  ;;  %v1382_v49 = vcombine.low %v898_v11, %v899_v24  ;;  %v1183_v41 = vpack.c.bf16 %v1682_v48, %v1682_v48  ;;  %v769_v9 = vld [vmem:[%s1615_s28 + $0x64] sm:$0xf]  ;;  %v771_v15 = vld [vmem:[%s1615_s28 + $0x6c] sm:$0xf]  ;;  %v772_v22 = vld [vmem:[%s1615_s28 + $0x70] sm:$0xf] }
 0x114   : > { %v902_v52 = vmax.bf16 %v1180_v35, %v758_v31  ;;  %v903_v33 = vmax.bf16 %v1181_v38, %v759_v34  ;;  %1381 = vst [vmem:[%s1615_s28 + $0x20] sm:$0xff] %v1380_v50   ;;  %v1184_v56 = vpack.c.bf16 %v1664_v30, %v1664_v30  ;;  %v1185_v36 = vpack.c.bf16 %v1676_v42, %v1676_v42  ;;  %v773_v23 = vld [vmem:[%s1615_s28 + $0x74] sm:$0xf]  ;;  %v774_v26 = vld [vmem:[%s1615_s28 + $0x78] sm:$0xf] }
 0x115   : > { %v1384_v45 = vcombine.low %v900_v43, %v901_v3  ;;  %v904_v27 = vmax.bf16 %v1182_v47, %v760_v40  ;;  %1383 = vst [vmem:[%s1615_s28 + $0x28] sm:$0xff] %v1382_v49   ;;  %v905_v48 = vmax.bf16 %v1183_v41, %v761_v44  ;;  %v1186_v62 = vpack.c.bf16 %v1694_v60, %v1694_v60  ;;  %v775_v29 = vld [vmem:[%s1615_s28 + $0x7c] sm:$0xf] }
 0x116   : > { %v1386_v61 = vcombine.low %v902_v52, %v903_v33  ;;  %v1187_v1 = vpack.c.bf16 %v1706_v8, %v1706_v8  ;;  %v906_v30 = vmax.bf16 %v1184_v56, %v762_v59  ;;  %v907_v42 = vmax.bf16 %v1185_v36, %v763_v53 }
 0x117   : > { %1385 = vst [vmem:[%s1615_s28 + $0x30] sm:$0xff] %v1384_v45   ;;  %v1188_v7 = vpack.c.bf16 %v1688_v54, %v1688_v54  ;;  %v1189_v5 = vpack.c.bf16 %v1700_v2, %v1700_v2  ;;  %v1388_v60 = vcombine.low %v904_v27, %v905_v48  ;;  %v908_v21 = vmax.bf16 %v1186_v62, %v764_v39  ;;  %v770_v2 = vld [vmem:[%s1615_s28 + $0x68] sm:$0xf] }
 0x118   : > { %1387 = vst [vmem:[%s1615_s28 + $0x38] sm:$0xff] %v1386_v61   ;;  %v909_v8 = vmax.bf16 %v1187_v1, %v765_v58  ;;  %v1190_v63 = vpack.c.bf16 %v1718_v20, %v1718_v20  ;;  %v1390_v10 = vcombine.low %v906_v30, %v907_v42  ;;  %v1191_v54 = vpack.c.bf16 %v1730_v37, %v1730_v37 }
 0x119   : > { %v910_v12 = vmax.bf16 %v1188_v7, %v766_v6  ;;  %v911_v13 = vmax.bf16 %v1189_v5, %v767_v57  ;;  %1389 = vst [vmem:[%s1615_s28 + $0x40] sm:$0xff] %v1388_v60   ;;  %v1192_v19 = vpack.c.bf16 %v1712_v14, %v1712_v14  ;;  %v1193_v20 = vpack.c.bf16 %v1724_v28, %v1724_v28 }
 0x11a   : > { %v1392_v16 = vcombine.low %v908_v21, %v909_v8  ;;  %v912_v18 = vmax.bf16 %v1190_v63, %v768_v51  ;;  %1391 = vst [vmem:[%s1615_s28 + $0x48] sm:$0xff] %v1390_v10   ;;  %v913_v25 = vmax.bf16 %v1191_v54, %v769_v9  ;;  %v1194_v37 = vpack.c.bf16 %v1742_v55, %v1742_v55 }
 0x11b   : > { %v1394_v17 = vcombine.low %v910_v12, %v911_v13  ;;  %v1195_v32 = vpack.c.bf16 %v1753_v4, %v1753_v4  ;;  %v914_v14 = vmax.bf16 %v1192_v19, %v770_v2  ;;  %v915_v28 = vmax.bf16 %v1193_v20, %v771_v15 }
 0x11c   : > { %1393 = vst [vmem:[%s1615_s28 + $0x50] sm:$0xff] %v1392_v16   ;;  %v1196_v31 = vpack.c.bf16 %v1736_v46, %v1736_v46  ;;  %v1197_v34 = vpack.c.bf16 %v1748_v0, %v1748_v0  ;;  %v1396_v55 = vcombine.low %v912_v18, %v913_v25  ;;  %v916_v11 = vmax.bf16 %v1194_v37, %v772_v22 }
 0x11d   : > { %1395 = vst [vmem:[%s1615_s28 + $0x58] sm:$0xff] %v1394_v17   ;;  %v917_v24 = vmax.bf16 %v1195_v32, %v773_v23  ;;  %v1398_v35 = vcombine.low %v914_v14, %v915_v28 }
 0x11e   : > { %v918_v4 = vmax.bf16 %v1196_v31, %v774_v26  ;;  %v919_v38 = vmax.bf16 %v1197_v34, %v775_v29  ;;  %1397 = vst [vmem:[%s1615_s28 + $0x60] sm:$0xff] %v1396_v55  }
 0x11f   : > { %v1400_v40 = vcombine.low %v916_v11, %v917_v24  ;;  %1399 = vst [vmem:[%s1615_s28 + $0x68] sm:$0xff] %v1398_v35  }
 0x120   : > { %v1402_v50 = vcombine.low %v918_v4, %v919_v38 }
 0x121   : > { %1401 = vst [vmem:[%s1615_s28 + $0x70] sm:$0xff] %v1400_v40  }
 0x122   : > { %1403 = vst [vmem:[%s1615_s28 + $0x78] sm:$0xff] %v1402_v50  }
 0x123 PF: > { %s13_s16 = sadd.s32 1, %s1553_s16   ;;  %s1936_s12 = smov %s1545_s14 }
 0x124   : > { %p10_p9 = scmp.ge.s32.totalorder %s13_s16, 10   ;;  %s1937_s13 = smov %s1549_s15 }
 0x125   : > { %s1938_s14 = smov %s1941_s17  ;;  %s1939_s15 = smov %s1945_s18 }
 0x126   :  { %12 = sbr.rel (!%p10_p9) target bundleno = 3 (0x3), region = 70 }

// kernel: model_forward.4
= control target key start
LH: loop header
LB: loop body
LE: loop exit
PB: predicated region body
PF: predicated region fallthrough
CT: control target
= control target key end

     0   :  { %s2255_s12 = smov 0   ;;  %s2257_s13 = smov 0   ;;  %s2832_s0 = inlined_call_operand.vmem [shape: bf16[1024,288], index: 0, kind: input, shape index: {}]   ;;  %s2833_s1 = inlined_call_operand.vmem [shape: bf16[288,128], index: 1, kind: input, shape index: {}]   ;;  %s2834_s2 = inlined_call_operand.vmem [shape: f32[1,128], index: 2, kind: input, shape index: {}]   ;;  %s2835_s3 = inlined_call_operand.vmem [shape: bf16[256,128], index: 3, kind: output, shape index: {}]  }
   0x1   :  { %s2259_s14 = smov 0  }
   0x2 LB: > { %s22_s15 = sadd.s32 1, %s2229_s13  ;;  %p1496_p0 = scmp.ge.s32.totalorder %s2233_s14, 1  ;;  %s2233_s14 = sphi %s2259_s14, %s13_s14   ;;  %s2229_s13 = sphi %s2257_s13, %s2837_s13   ;;  %s2225_s12 = sphi %s2255_s12, %s2836_s12  }
   0x3   : > { %p23_p1 = scmp.ge.s32.totalorder %s22_s15, 4  ;;  %p155_p2 = scmp.lt.s32.totalorder %s2233_s14, 5 }
   0x5   : > { %s2839_s15 = smov (%p23_p1, %s22_s15), 0  ;;  %p156_p3 = pnand %p1496_p0, %p155_p2 }
   0x6   : > { %s1497_s18 = sshll.u32 (!%p156_p3), %s2225_s12, 5  ;;  %p1582_p5 = scmp.ne.s32.totalorder (!%p156_p3), %s2225_s12, 0 }
   0x7   : > { %159 = sbr.rel (%p156_p3) target bundleno = 381 (0x17d), region = 32  ;;  %p183_p4 = scmp.lt.s32.totalorder (!%p156_p3), %s1497_s18, 127 }
   0xc   : > { %v2129_v0 = vld [vmem:[%s2833_s1 + $0x78] sm:$0xff]   ;;  %v2131_v2 = vld [vmem:[%s2833_s1 + $0x70] sm:$0xff]   ;;  %v2133_v4 = vld [vmem:[%s2833_s1 + $0x68] sm:$0xff]   ;;  %s2841_s18 = smov (!%p183_p4, %s1497_s18), 127  ;;  %vm652_vm0 = vcmask 261120  }
   0xd   : > { %v2130_v1 = vld [vmem:[%s2833_s1 + $0x38] sm:$0xff]   ;;  %1922 = vmatprep.subr.bf16.mxu0 %v2129_v0  ;;  %2088 = vmatprep.subr.bf16.mxu1 %v2129_v0  ;;  %v2132_v3 = vld [vmem:[%s2833_s1 + $0x30] sm:$0xff]   ;;  %v2134_v5 = vld [vmem:[%s2833_s1 + $0x28] sm:$0xff]   ;;  %s2104_s4 = smul.u32 12, %s2841_s18 }
   0xe   : > { %1923 = vmatpush3.bf16.msra.mxu0 %v2130_v1  ;;  %2096 = vmatpush3.bf16.msra.mxu1 %v2130_v1  ;;  %v2135_v6 = vld [vmem:[%s2833_s1 + $0x60] sm:$0xff]   ;;  %v2137_v8 = vld [vmem:[%s2833_s1 + $0x58] sm:$0xff]   ;;  %v2139_v10 = vld [vmem:[%s2833_s1 + $0x50] sm:$0xff]  }
   0xf   : > { %1924 = vmatprep.subr.bf16.mxu0 %v2131_v2  ;;  %2089 = vmatprep.subr.bf16.mxu1 %v2131_v2  ;;  %v2136_v7 = vld [vmem:[%s2833_s1 + $0x20] sm:$0xff]   ;;  %s2306_s11 = scalar_lea.vmem %s2832_s0, %s2104_s4  ;;  %v2138_v9 = vld [vmem:[%s2833_s1 + $0x18] sm:$0xff]   ;;  %v2140_v13 = vld [vmem:[%s2833_s1 + $0x10] sm:$0xff]  }
  0x10   : > { %v2147_v11 = vld [vmem:[%s2306_s11 + $0x4] ss:$12 sps:$4 sm:$0xff]   ;;  %v2141_v14 = vld [vmem:[%s2833_s1 + $0x48] sm:$0xff]   ;;  %v2158_v26 = vld [vmem:[%s2306_s11 + $0x34] ss:$12 sps:$4 sm:$0xff]  }
  0x11   : > { %v2150_v12 = vld [vmem:[%s2306_s11 + $0x124] ss:$12 sps:$4 sm:$0xff]   ;;  %733 = vmatprep.mubr.bf16.mxu0 %v2147_v11  ;;  %v2142_v15 = vld [vmem:[%s2833_s1 + $0x8] sm:$0xff]   ;;  %v2160_v27 = vld [vmem:[%s2306_s11 + $0x154] ss:$12 sps:$4 sm:$0xff]  }
  0x12   : > { %1925 = vmatpush3.bf16.msra.mxu0 %v2132_v3  ;;  %2097 = vmatpush3.bf16.msra.mxu1 %v2132_v3  ;;  %v2143_v16 = vld [vmem:[%s2833_s1 + $0x40] sm:$0xff]   ;;  %v2151_v18 = vld [vmem:[%s2833_s1 + $0x88] sm:$0xff]   ;;  %v2162_v28 = vld [vmem:[%s2306_s11 + $0x30] ss:$12 sps:$4 sm:$0xff]  }
  0x13   : > { %1926 = vmatprep.subr.bf16.mxu0 %v2133_v4  ;;  %2090 = vmatprep.subr.bf16.mxu1 %v2133_v4  ;;  %v2144_v17 = vld [vmem:[%s2833_s1] sm:$0xff]   ;;  %v2152_v21 = vld [vmem:[%s2306_s11 + $0x1c] ss:$12 sps:$4 sm:$0xff]   ;;  %v2165_v30 = vld [vmem:[%s2306_s11 + $0x4c] ss:$12 sps:$4 sm:$0xff]  }
  0x14   : > { %829 = vmatprep.mubr.bf16.mxu1 %v2150_v12  ;;  %v2145_v19 = vld [vmem:[%s2306_s11] ss:$12 sps:$4 sm:$0xff]   ;;  %v2154_v22 = vld [vmem:[%s2306_s11 + $0x13c] ss:$12 sps:$4 sm:$0xff]   ;;  %v2156_v24 = vld [vmem:[%s2306_s11 + $0x18] ss:$12 sps:$4 sm:$0xff]  }
  0x15   : > { %v2148_v20 = vld [vmem:[%s2306_s11 + $0x120] ss:$12 sps:$4 sm:$0xff]   ;;  %v2157_v25 = vld [vmem:[%s2306_s11 + $0x138] ss:$12 sps:$4 sm:$0xff]   ;;  %v2163_v29 = vld [vmem:[%s2306_s11 + $0x150] ss:$12 sps:$4 sm:$0xff]  }
  0x16   : > { %1927 = vmatpush3.bf16.msra.mxu0 %v2134_v5  ;;  %2098 = vmatpush3.bf16.msra.mxu1 %v2134_v5  ;;  %v2164_v23 = vld [vmem:[%s2833_s1 + $0x80] sm:$0xff]   ;;  %v2167_v31 = vld [vmem:[%s2306_s11 + $0x16c] ss:$12 sps:$4 sm:$0xff]   ;;  %v2169_v32 = vld [vmem:[%s2306_s11 + $0x48] ss:$12 sps:$4 sm:$0xff]  }
  0x17   : > { %1928 = vmatprep.subr.bf16.mxu0 %v2135_v6  ;;  %2091 = vmatprep.subr.bf16.mxu1 %v2135_v6  ;;  %v2170_v33 = vld [vmem:[%s2306_s11 + $0x168] ss:$12 sps:$4 sm:$0xff]   ;;  %v2171_v34 = vld [vmem:[%s2306_s11 + $0x64] ss:$12 sps:$4 sm:$0xff]   ;;  %v2174_v36 = vld [vmem:[%s2306_s11 + $0x60] ss:$12 sps:$4 sm:$0xff]  }
  0x18   : > { %v2173_v35 = vld [vmem:[%s2306_s11 + $0x8] ss:$12 sps:$4 sm:$0xff]   ;;  %v2175_v37 = vld [vmem:[%s2306_s11 + $0x20] ss:$12 sps:$4 sm:$0xff]   ;;  %v2178_v39 = vld [vmem:[%s2306_s11 + $0x38] ss:$12 sps:$4 sm:$0xff]  }
  0x19   : > { %v2176_v38 = vld [vmem:[%s2306_s11 + $0x7c] ss:$12 sps:$4 sm:$0xff]   ;;  %v2179_v40 = vld [vmem:[%s2306_s11 + $0x78] ss:$12 sps:$4 sm:$0xff]   ;;  %v2181_v42 = vld [vmem:[%s2306_s11 + $0x94] ss:$12 sps:$4 sm:$0xff]  }
  0x1a   : > { %1929 = vmatpush3.bf16.msra.mxu0 %v2136_v7  ;;  %2099 = vmatpush3.bf16.msra.mxu1 %v2136_v7  ;;  %v2180_v41 = vld [vmem:[%s2306_s11 + $0x50] ss:$12 sps:$4 sm:$0xff]   ;;  %v2183_v43 = vld [vmem:[%s2306_s11 + $0x68] ss:$12 sps:$4 sm:$0xff]   ;;  %v2185_v45 = vld [vmem:[%s2306_s11 + $0x80] ss:$12 sps:$4 sm:$0xff]  }
  0x1b   : > { %1930 = vmatprep.subr.bf16.mxu0 %v2137_v8  ;;  %2092 = vmatprep.subr.bf16.mxu1 %v2137_v8  ;;  %v2184_v44 = vld [vmem:[%s2306_s11 + $0x90] ss:$12 sps:$4 sm:$0xff]   ;;  %v2186_v46 = vld [vmem:[%s2306_s11 + $0xac] ss:$12 sps:$4 sm:$0xff]   ;;  %v2189_v48 = vld [vmem:[%s2306_s11 + $0xa8] ss:$12 sps:$4 sm:$0xff]  }
  0x1c   : > { %v2188_v47 = vld [vmem:[%s2306_s11 + $0x98] ss:$12 sps:$4 sm:$0xff]   ;;  %v2190_v49 = vld [vmem:[%s2306_s11 + $0xb0] ss:$12 sps:$4 sm:$0xff]   ;;  %v2193_v51 = vld [vmem:[%s2306_s11 + $0xc8] ss:$12 sps:$4 sm:$0xff]  }
  0x1d   : > { %v2191_v50 = vld [vmem:[%s2306_s11 + $0xc4] ss:$12 sps:$4 sm:$0xff]   ;;  %v2194_v52 = vld [vmem:[%s2306_s11 + $0xc0] ss:$12 sps:$4 sm:$0xff]   ;;  %v2196_v54 = vld [vmem:[%s2306_s11 + $0xdc] ss:$12 sps:$4 sm:$0xff]  }
  0x1e   : > { %1931 = vmatpush3.bf16.msra.mxu0 %v2138_v9  ;;  %2100 = vmatpush3.bf16.msra.mxu1 %v2138_v9  ;;  %v2195_v53 = vld [vmem:[%s2306_s11 + $0xe0] ss:$12 sps:$4 sm:$0xff]   ;;  %v2198_v55 = vld [vmem:[%s2306_s11 + $0xf8] ss:$12 sps:$4 sm:$0xff]   ;;  %v2200_v57 = vld [vmem:[%s2306_s11 + $0x110] ss:$12 sps:$4 sm:$0xff]  }
  0x1f   : > { %1932 = vmatprep.subr.bf16.mxu0 %v2139_v10  ;;  %2093 = vmatprep.subr.bf16.mxu1 %v2139_v10  ;;  %v2199_v56 = vld [vmem:[%s2306_s11 + $0xd8] ss:$12 sps:$4 sm:$0xff]   ;;  %v2201_v58 = vld [vmem:[%s2306_s11 + $0xf4] ss:$12 sps:$4 sm:$0xff]   ;;  %v2204_v60 = vld [vmem:[%s2306_s11 + $0xf0] ss:$12 sps:$4 sm:$0xff]  }
  0x20   : > { %v2203_v59 = vld [vmem:[%s2306_s11 + $0x128] ss:$12 sps:$4 sm:$0xff]   ;;  %v2205_v61 = vld [vmem:[%s2306_s11 + $0x140] ss:$12 sps:$4 sm:$0xff]   ;;  %v2208_v63 = vld [vmem:[%s2306_s11 + $0x158] ss:$12 sps:$4 sm:$0xff]  }
  0x21   : > { %v2206_v62 = vld [vmem:[%s2306_s11 + $0x10c] ss:$12 sps:$4 sm:$0xff]   ;;  %v2209_v0 = vld [vmem:[%s2306_s11 + $0x108] ss:$12 sps:$4 sm:$0xff]   ;;  %v2210_v1 = vld [vmem:[%s2306_s11 + $0x170] ss:$12 sps:$4 sm:$0xff]  }
  0x22   : > { %1933 = vmatpush3.bf16.msra.mxu0 %v2140_v13  ;;  %2101 = vmatpush3.bf16.msra.mxu1 %v2140_v13 }
  0x23   : > { %1934 = vmatprep.subr.bf16.mxu0 %v2141_v14  ;;  %2094 = vmatprep.subr.bf16.mxu1 %v2141_v14 }
  0x26   : > { %1935 = vmatpush3.bf16.msra.mxu0 %v2142_v15  ;;  %2102 = vmatpush3.bf16.msra.mxu1 %v2142_v15 }
  0x27   : > { %1936 = vmatprep.subr.bf16.mxu0 %v2143_v16  ;;  %2095 = vmatprep.subr.bf16.mxu1 %v2143_v16 }
  0x2a   : > { %1937 = vmatpush3.bf16.msra.mxu0 %v2144_v17  ;;  %2103 = vmatpush3.bf16.msra.mxu1 %v2144_v17 }
  0x2b   : > { %2052 = vmatprep.subr.bf16.mxu1 %v2151_v18 }
  0x2d   : > { %734 = vmatmul.mubr.bf16.vlgmr.msra.gmra.mxu0 %v2145_v19  ;;  %830 = vmatmul.mubr.bf16.vlgmr.msra.gmra.mxu1 %v2148_v20 }
  0x2e   : > { %2053 = vmatpush3.bf16.msra.mxu1 %v2151_v18  ;;  %741 = vmatprep.mubr.bf16.mxu0 %v2152_v21 }
  0x2f   : > { %837 = vmatprep.mubr.bf16.mxu1 %v2154_v22  ;;  %2054 = vmatprep.subr.bf16.mxu1 %v2164_v23 }
  0x32   : > { %2055 = vmatpush3.bf16.msra.mxu1 %v2164_v23 }
  0x35   : > { %742 = vmatmul.mubr.bf16.gmra.mxu0 %v2156_v24  ;;  %838 = vmatmul.mubr.bf16.gmra.mxu1 %v2157_v25 }
  0x36   : > { %749 = vmatprep.mubr.bf16.mxu0 %v2158_v26  ;;  %845 = vmatprep.mubr.bf16.mxu1 %v2160_v27 }
  0x3d   : > { %750 = vmatmul.mubr.bf16.gmra.mxu0 %v2162_v28  ;;  %846 = vmatmul.mubr.bf16.gmra.mxu1 %v2163_v29 }
  0x3e   : > { %757 = vmatprep.mubr.bf16.mxu0 %v2165_v30  ;;  %853 = vmatprep.mubr.bf16.mxu1 %v2167_v31 }
  0x45   : > { %758 = vmatmul.mubr.bf16.gmra.mxu0 %v2169_v32  ;;  %854 = vmatmul.mubr.bf16.gmra.mxu1 %v2170_v33 }
  0x46   : > { %765 = vmatprep.mubr.bf16.mxu0 %v2171_v34  ;;  %2056 = vmatprep.mubr.msk.bf16.mxu1 %vm652_vm0, %v2173_v35 }
  0x4d   : > { %766 = vmatmul.mubr.bf16.gmra.mxu0 %v2174_v36  ;;  %2057 = vmatmul.mubr.msk.bf16.vlgmr.msra.gmra.mxu1 %vm652_vm0, %v2175_v37 }
  0x4e   : > { %773 = vmatprep.mubr.bf16.mxu0 %v2176_v38  ;;  %2060 = vmatprep.mubr.msk.bf16.mxu1 %vm652_vm0, %v2178_v39 }
  0x55   : > { %774 = vmatmul.mubr.bf16.gmra.mxu0 %v2179_v40  ;;  %2061 = vmatmul.mubr.msk.bf16.gmra.mxu1 %vm652_vm0, %v2180_v41 }
  0x56   : > { %781 = vmatprep.mubr.bf16.mxu0 %v2181_v42  ;;  %2064 = vmatprep.mubr.msk.bf16.mxu1 %vm652_vm0, %v2183_v43 }
  0x5d   : > { %782 = vmatmul.mubr.bf16.gmra.mxu0 %v2184_v44  ;;  %2065 = vmatmul.mubr.msk.bf16.gmra.mxu1 %vm652_vm0, %v2185_v45 }
  0x5e   : > { %789 = vmatprep.mubr.bf16.mxu0 %v2186_v46  ;;  %2068 = vmatprep.mubr.msk.bf16.mxu1 %vm652_vm0, %v2188_v47 }
  0x65   : > { %790 = vmatmul.mubr.bf16.gmra.mxu0 %v2189_v48  ;;  %2069 = vmatmul.mubr.msk.bf16.gmra.mxu1 %vm652_vm0, %v2190_v49  ;;  %v2420_v48 = vld [vmem:[%s2834_s2] ss:$0 sm:$0xff] }
  0x66   : > { %797 = vmatprep.mubr.bf16.mxu0 %v2191_v50  ;;  %2072 = vmatprep.mubr.msk.bf16.mxu1 %vm652_vm0, %v2193_v51 }
  0x6d   : > { %798 = vmatmul.mubr.bf16.gmra.mxu0 %v2194_v52  ;;  %2073 = vmatmul.mubr.msk.bf16.gmra.mxu1 %vm652_vm0, %v2195_v53 }
  0x6e   : > { %805 = vmatprep.mubr.bf16.mxu0 %v2196_v54  ;;  %2076 = vmatprep.mubr.msk.bf16.mxu1 %vm652_vm0, %v2198_v55 }
  0x75   : > { %806 = vmatmul.mubr.bf16.gmra.mxu0 %v2199_v56  ;;  %2077 = vmatmul.mubr.msk.bf16.gmra.mxu1 %vm652_vm0, %v2200_v57 }
  0x76   : > { %813 = vmatprep.mubr.bf16.mxu0 %v2201_v58  ;;  %2080 = vmatprep.mubr.msk.bf16.mxu1 %vm652_vm0, %v2203_v59 }
  0x7d   : > { %814 = vmatmul.mubr.bf16.gmra.mxu0 %v2204_v60  ;;  %2081 = vmatmul.mubr.msk.bf16.gmra.mxu1 %vm652_vm0, %v2205_v61 }
  0x7e   : > { %821 = vmatprep.mubr.bf16.mxu0 %v2206_v62  ;;  %2084 = vmatprep.mubr.msk.bf16.mxu1 %vm652_vm0, %v2208_v63 }
  0x85   : > { %822 = vmatmul.mubr.bf16.gmra.mxu0 %v2209_v0  ;;  %2085 = vmatmul.mubr.msk.bf16.gmra.mxu1 %vm652_vm0, %v2210_v1 }
  0xed   : > { %v1938_v2 = vpop.f32.mrf.mxu0  ;;  %v2010_v3 = vpop.f32.mrf.mxu1 }
  0xef   : > { %v1939_v4 = vpop.f32.mrf.mxu0  ;;  %v2011_v5 = vpop.f32.mrf.mxu1 }
  0xf0   : > { %v1940_v6 = vadd.f32 %v1939_v4, %v1938_v2  ;;  %v2399_v7 = vadd.f32 %v2011_v5, %v2010_v3 }
  0xf1   : > { %v1941_v8 = vpop.f32.mrf.mxu0  ;;  %v2013_v9 = vpop.f32.mrf.mxu1 }
  0xf2   : > { %v736_v54 = vadd.f32 %v1940_v6, %v2420_v48 }
  0xf3   : > { %v1942_v10 = vpop.f32.mrf.mxu0  ;;  %v2014_v11 = vpop.f32.mrf.mxu1 }
  0xf4   : > { %v1943_v12 = vadd.f32 %v1942_v10, %v1941_v8  ;;  %v2401_v13 = vadd.f32 %v2014_v11, %v2013_v9 }
  0xf5   : > { %v1944_v14 = vpop.f32.mrf.mxu0  ;;  %v2016_v15 = vpop.f32.mrf.mxu1 }
  0xf6   : > { %v739_v0 = vadd.f32 %v1943_v12, %v2420_v48 }
  0xf7   : > { %v1945_v16 = vpop.f32.mrf.mxu0  ;;  %v2017_v17 = vpop.f32.mrf.mxu1 }
  0xf8   : > { %v1946_v18 = vadd.f32 %v1945_v16, %v1944_v14  ;;  %v2403_v19 = vadd.f32 %v2017_v17, %v2016_v15 }
  0xf9   : > { %v1947_v20 = vpop.f32.mrf.mxu0  ;;  %v2019_v21 = vpop.f32.mrf.mxu1 }
  0xfa   : > { %v744_v50 = vadd.f32 %v1946_v18, %v2420_v48 }
  0xfb   : > { %v1948_v22 = vpop.f32.mrf.mxu0  ;;  %v2020_v23 = vpop.f32.mrf.mxu1 }
  0xfc   : > { %v1949_v24 = vadd.f32 %v1948_v22, %v1947_v20  ;;  %v2405_v25 = vadd.f32 %v2020_v23, %v2019_v21 }
  0xfd   : > { %v1950_v26 = vpop.f32.mrf.mxu0  ;;  %v2022_v27 = vpop.f32.mrf.mxu1 }
  0xfe   : > { %v747_v59 = vadd.f32 %v1949_v24, %v2420_v48 }
  0xff   : > { %v1951_v28 = vpop.f32.mrf.mxu0  ;;  %v2023_v29 = vpop.f32.mrf.mxu1 }
 0x100   : > { %v1952_v30 = vadd.f32 %v1951_v28, %v1950_v26  ;;  %v2407_v31 = vadd.f32 %v2023_v29, %v2022_v27 }
 0x101   : > { %v1953_v32 = vpop.f32.mrf.mxu0  ;;  %v2025_v33 = vpop.f32.mrf.mxu1 }
 0x102   : > { %v752_v11 = vadd.f32 %v1952_v30, %v2420_v48 }
 0x103   : > { %v1954_v34 = vpop.f32.mrf.mxu0  ;;  %v2026_v35 = vpop.f32.mrf.mxu1 }
 0x104   : > { %v1955_v36 = vadd.f32 %v1954_v34, %v1953_v32  ;;  %v2409_v37 = vadd.f32 %v2026_v35, %v2025_v33 }
 0x105   : > { %v1956_v38 = vpop.f32.mrf.mxu0  ;;  %v2028_v39 = vpop.f32.mrf.mxu1 }
 0x106   : > { %v755_v26 = vadd.f32 %v1955_v36, %v2420_v48 }
 0x107   : > { %v1957_v40 = vpop.f32.mrf.mxu0  ;;  %v2029_v41 = vpop.f32.mrf.mxu1 }
 0x108   : > { %v1958_v42 = vadd.f32 %v1957_v40, %v1956_v38  ;;  %v2411_v43 = vadd.f32 %v2029_v41, %v2028_v39 }
 0x109   : > { %v1959_v44 = vpop.f32.mrf.mxu0  ;;  %v2413_v45 = vpop.f32.mrf.mxu1 }
 0x10a   : > { %v760_v5 = vadd.f32 %v1958_v42, %v2420_v48 }
 0x10b   : > { %v1960_v46 = vpop.f32.mrf.mxu0  ;;  %v2415_v47 = vpop.f32.mrf.mxu1 }
 0x10c   : > { %v1961_v49 = vadd.f32 %v1960_v46, %v1959_v44 }
 0x10d   : > { %v1962_v51 = vpop.f32.mrf.mxu0  ;;  %v2058_v52 = vpop.f32.mrf.mxu1 }
 0x10e   : > { %v905_v53 = vadd.f32 %v2058_v52, %v744_v50  ;;  %v763_v18 = vadd.f32 %v1961_v49, %v2420_v48 }
 0x10f   : > { %v1963_v55 = vpop.f32.mrf.mxu0  ;;  %v896_v56 = vpop.f32.mrf.mxu1 }
 0x110   : > { %v2424_v57 = vmax.f32 %v905_v53, 0.0  ;;  %v897_v58 = vadd.f32 %v896_v56, %v736_v54  ;;  %v1964_v22 = vadd.f32 %v1963_v55, %v1962_v51 }
 0x111   : > { %v1965_v60 = vpop.f32.mrf.mxu0  ;;  %v2059_v61 = vpop.f32.mrf.mxu1 }
 0x112   : > { %v2427_v62 = vmax.f32 %v897_v58, 0.0  ;;  %v908_v63 = vadd.f32 %v2059_v61, %v747_v59  ;;  %v768_v41 = vadd.f32 %v1964_v22, %v2420_v48 }
 0x113   : > { %v1966_v1 = vpop.f32.mrf.mxu0  ;;  %v899_v2 = vpop.f32.mrf.mxu1 }
 0x114   : > { %v2430_v3 = vmax.f32 %v908_v63, 0.0  ;;  %v900_v4 = vadd.f32 %v899_v2, %v739_v0  ;;  %v1967_v38 = vadd.f32 %v1966_v1, %v1965_v60 }
 0x115   : > { %v1968_v6 = vpop.f32.mrf.mxu0  ;;  %v2062_v8 = vpop.f32.mrf.mxu1 }
 0x116   : > { %v2433_v9 = vmax.f32 %v900_v4, 0.0  ;;  %v921_v10 = vadd.f32 %v2062_v8, %v760_v5  ;;  %v771_v55 = vadd.f32 %v1967_v38, %v2420_v48 }
 0x117   : > { %v1969_v14 = vpop.f32.mrf.mxu0  ;;  %v912_v15 = vpop.f32.mrf.mxu1 }
 0x118   : > { %v2436_v16 = vmax.f32 %v921_v10, 0.0  ;;  %v1970_v17 = vadd.f32 %v1969_v14, %v1968_v6  ;;  %v913_v12 = vadd.f32 %v912_v15, %v752_v11 }
 0x119   : > { %v1971_v20 = vpop.f32.mrf.mxu0  ;;  %v2063_v21 = vpop.f32.mrf.mxu1 }
 0x11a   : > { %v2439_v23 = vmax.f32 %v913_v12, 0.0  ;;  %v924_v24 = vadd.f32 %v2063_v21, %v763_v18  ;;  %v776_v33 = vadd.f32 %v1970_v17, %v2420_v48 }
 0x11b   : > { %v1972_v27 = vpop.f32.mrf.mxu0  ;;  %v915_v28 = vpop.f32.mrf.mxu1 }
 0x11c   : > { %v2442_v29 = vmax.f32 %v924_v24, 0.0  ;;  %v1973_v30 = vadd.f32 %v1972_v27, %v1971_v20  ;;  %v916_v32 = vadd.f32 %v915_v28, %v755_v26 }
 0x11d   : > { %v1974_v34 = vpop.f32.mrf.mxu0  ;;  %v2066_v35 = vpop.f32.mrf.mxu1 }
 0x11e   : > { %v2445_v39 = vmax.f32 %v916_v32, 0.0  ;;  %v937_v40 = vadd.f32 %v2066_v35, %v776_v33  ;;  %v779_v49 = vadd.f32 %v1973_v30, %v2420_v48 }
 0x11f   : > { %v1975_v42 = vpop.f32.mrf.mxu0  ;;  %v928_v44 = vpop.f32.mrf.mxu1 }
 0x120   : > { %v2448_v46 = vmax.f32 %v937_v40, 0.0  ;;  %v929_v36 = vadd.f32 %v928_v44, %v768_v41  ;;  %v1976_v52 = vadd.f32 %v1975_v42, %v1974_v34 }
 0x121   : > { %v1977_v50 = vpop.f32.mrf.mxu0  ;;  %v2067_v51 = vpop.f32.mrf.mxu1 }
 0x122   : > { %v2451_v53 = vmax.f32 %v929_v36, 0.0  ;;  %v940_v54 = vadd.f32 %v2067_v51, %v779_v49  ;;  %v784_v2 = vadd.f32 %v1976_v52, %v2420_v48 }
 0x123   : > { %v1978_v56 = vpop.f32.mrf.mxu0  ;;  %v931_v58 = vpop.f32.mrf.mxu1 }
 0x124   : > { %v2454_v59 = vmax.f32 %v940_v54, 0.0  ;;  %v932_v60 = vadd.f32 %v931_v58, %v771_v55  ;;  %v1979_v0 = vadd.f32 %v1978_v56, %v1977_v50 }
 0x125   : > { %v1980_v61 = vpop.f32.mrf.mxu0  ;;  %v2070_v63 = vpop.f32.mrf.mxu1 }
 0x126   : > { %v2456_v1 = vmax.f32 %v932_v60, 0.0  ;;  %v787_v17 = vadd.f32 %v1979_v0, %v2420_v48 }
 0x127   : > { %v1981_v4 = vpop.f32.mrf.mxu0  ;;  %v944_v5 = vpop.f32.mrf.mxu1 }
 0x128   : > { %v1982_v6 = vadd.f32 %v1981_v4, %v1980_v61  ;;  %v945_v8 = vadd.f32 %v944_v5, %v784_v2 }
 0x129   : > { %v1983_v10 = vpop.f32.mrf.mxu0  ;;  %v2071_v11 = vpop.f32.mrf.mxu1 }
 0x12a   : > { %v792_v14 = vadd.f32 %v1982_v6, %v2420_v48  ;;  %v2460_v15 = vmax.f32 %v945_v8, 0.0 }
 0x12b   : > { %v1984_v12 = vpop.f32.mrf.mxu0  ;;  %v947_v18 = vpop.f32.mrf.mxu1 }
 0x12c   : > { %v953_v20 = vadd.f32 %v2070_v63, %v792_v14  ;;  %v1985_v21 = vadd.f32 %v1984_v12, %v1983_v10  ;;  %v948_v22 = vadd.f32 %v947_v18, %v787_v17 }
 0x12d   : > { %v1986_v24 = vpop.f32.mrf.mxu0  ;;  %v2074_v26 = vpop.f32.mrf.mxu1 }
 0x12e   : > { %v2463_v27 = vmax.f32 %v953_v20, 0.0  ;;  %v795_v28 = vadd.f32 %v1985_v21, %v2420_v48  ;;  %v2466_v30 = vmax.f32 %v948_v22, 0.0  ;;  %v832_v21 = vadd.f32 %v2399_v7, %v2420_v48 }
 0x12f   : > { %v1987_v32 = vpop.f32.mrf.mxu0  ;;  %v960_v33 = vpop.f32.mrf.mxu1 }
 0x130   : > { %v956_v34 = vadd.f32 %v2071_v11, %v795_v28  ;;  %v1988_v35 = vadd.f32 %v1987_v32, %v1986_v24  ;;  %v840_v11 = vadd.f32 %v2403_v19, %v2420_v48  ;;  %v843_v28 = vadd.f32 %v2405_v25, %v2420_v48 }
 0x131   : > { %v1989_v38 = vpop.f32.mrf.mxu0  ;;  %v2075_v40 = vpop.f32.mrf.mxu1  ;;  %v2033_v25 = vadd.f32 %v2415_v47, %v2413_v45 }
 0x132   : > { %v2468_v41 = vmax.f32 %v956_v34, 0.0  ;;  %v800_v42 = vadd.f32 %v1988_v35, %v2420_v48 }
 0x133   : > { %v1990_v44 = vpop.f32.mrf.mxu0  ;;  %v963_v36 = vpop.f32.mrf.mxu1 }
 0x134   : > { %v961_v49 = vadd.f32 %v960_v33, %v800_v42  ;;  %v1991_v50 = vadd.f32 %v1990_v44, %v1989_v38  ;;  %v835_v38 = vadd.f32 %v2401_v13, %v2420_v48 }
 0x135   : > { %v1992_v51 = vpop.f32.mrf.mxu0  ;;  %v2471_v52 = vpop.f32.mrf.mxu1 }
 0x136   : > { %v2473_v54 = vmax.f32 %v961_v49, 0.0  ;;  %v803_v55 = vadd.f32 %v1991_v50, %v2420_v48  ;;  %v856_v50 = vadd.f32 %v2411_v43, %v2420_v48  ;;  %v859_v43 = vadd.f32 %v2033_v25, %v2420_v48 }
 0x137   : > { %v1993_v56 = vpop.f32.mrf.mxu0  ;;  %v976_v58 = vpop.f32.mrf.mxu1 }
 0x138   : > { %v964_v60 = vadd.f32 %v963_v36, %v803_v55  ;;  %v1994_v61 = vadd.f32 %v1993_v56, %v1992_v51 }
 0x139   : > { %v1995_v63 = vpop.f32.mrf.mxu0  ;;  %v2476_v0 = vpop.f32.mrf.mxu1 }
 0x13a   : > { %v2478_v2 = vmax.f32 %v964_v60, 0.0  ;;  %v808_v4 = vadd.f32 %v1994_v61, %v2420_v48 }
 0x13b   : > { %v1996_v5 = vpop.f32.mrf.mxu0  ;;  %v979_v6 = vpop.f32.mrf.mxu1 }
 0x13c   : > { %v969_v8 = vadd.f32 %v2074_v26, %v808_v4  ;;  %v1997_v10 = vadd.f32 %v1996_v5, %v1995_v63  ;;  %v848_v63 = vadd.f32 %v2407_v31, %v2420_v48  ;;  %v851_v31 = vadd.f32 %v2409_v37, %v2420_v48 }
 0x13d   : > { %v1998_v14 = vpop.f32.mrf.mxu0  ;;  %v2082_v17 = vpop.f32.mrf.mxu1 }
 0x13e   : > { %v2483_v12 = vmax.f32 %v969_v8, 0.0  ;;  %v811_v18 = vadd.f32 %v1997_v10, %v2420_v48  ;;  %v1001_v20 = vadd.f32 %v2082_v17, %v840_v11 }
 0x13f   : > { %v1999_v22 = vpop.f32.mrf.mxu0  ;;  %v992_v24 = vpop.f32.mrf.mxu1 }
 0x140   : > { %v972_v26 = vadd.f32 %v2075_v40, %v811_v18  ;;  %v2490_v32 = vmax.f32 %v1001_v20, 0.0  ;;  %v2000_v33 = vadd.f32 %v1999_v22, %v1998_v14  ;;  %v993_v19 = vadd.f32 %v992_v24, %v832_v21 }
 0x141   : > { %v2001_v34 = vpop.f32.mrf.mxu0  ;;  %v2083_v35 = vpop.f32.mrf.mxu1 }
 0x142   : > { %v2494_v42 = vmax.f32 %v972_v26, 0.0  ;;  %v816_v44 = vadd.f32 %v2000_v33, %v2420_v48  ;;  %v2497_v7 = vmax.f32 %v993_v19, 0.0  ;;  %v1004_v36 = vadd.f32 %v2083_v35, %v843_v28 }
 0x143   : > { %v2002_v40 = vpop.f32.mrf.mxu0  ;;  %v995_v49 = vpop.f32.mrf.mxu1 }
 0x144   : > { %v977_v51 = vadd.f32 %v976_v58, %v816_v44  ;;  %v2503_v55 = vmax.f32 %v1004_v36, 0.0  ;;  %v2003_v56 = vadd.f32 %v2002_v40, %v2001_v34  ;;  %v996_v13 = vadd.f32 %v995_v49, %v835_v38 }
 0x145   : > { %v2004_v60 = vpop.f32.mrf.mxu0  ;;  %v2086_v61 = vpop.f32.mrf.mxu1 }
 0x146   : > { %v2507_v4 = vmax.f32 %v977_v51, 0.0  ;;  %v819_v5 = vadd.f32 %v2003_v56, %v2420_v48  ;;  %v2510_v45 = vmax.f32 %v996_v13, 0.0  ;;  %v1017_v47 = vadd.f32 %v2086_v61, %v856_v50 }
 0x147   : > { %v2005_v8 = vpop.f32.mrf.mxu0  ;;  %v1008_v10 = vpop.f32.mrf.mxu1 }
 0x148   : > { %v980_v58 = vadd.f32 %v979_v6, %v819_v5  ;;  %v2513_v11 = vmax.f32 %v1017_v47, 0.0  ;;  %v2006_v14 = vadd.f32 %v2005_v8, %v2004_v60  ;;  %v1009_v17 = vadd.f32 %v1008_v10, %v848_v63 }
 0x149   : > { %v2007_v18 = vpop.f32.mrf.mxu0  ;;  %v2087_v20 = vpop.f32.mrf.mxu1 }
 0x14a   : > { %v2517_v21 = vmax.f32 %v980_v58, 0.0  ;;  %v824_v22 = vadd.f32 %v2006_v14, %v2420_v48  ;;  %v2520_v24 = vmax.f32 %v1009_v17, 0.0  ;;  %v1020_v28 = vadd.f32 %v2087_v20, %v859_v43 }
 0x14b   : > { %v2008_v26 = vpop.f32.mrf.mxu0  ;;  %v1011_v33 = vpop.f32.mrf.mxu1 }
 0x14c   : > { %v985_v6 = vadd.f32 %v2471_v52, %v824_v22  ;;  %v2523_v19 = vmax.f32 %v1020_v28, 0.0  ;;  %v2009_v34 = vadd.f32 %v2008_v26, %v2007_v18  ;;  %v1012_v35 = vadd.f32 %v1011_v33, %v851_v31 }
 0x14e   : > { %v2525_v38 = vmax.f32 %v985_v6, 0.0  ;;  %v827_v44 = vadd.f32 %v2009_v34, %v2420_v48  ;;  %v2528_v37 = vmax.f32 %v1012_v35, 0.0  ;;  %1074 = sbr.rel (%p1582_p5) target bundleno = 349 (0x15d), region = 36 }
 0x150   : > { %v988_v36 = vadd.f32 %v2476_v0, %v827_v44 }
 0x152   : > { %v2531_v25 = vmax.f32 %v988_v36, 0.0 }
 0x153   : > { %v1719_v52 = vpack.c.bf16 %v2433_v9, %v2427_v62  ;;  %v1724_v40 = vpack.c.bf16 %v2430_v3, %v2424_v57  ;;  %v1729_v49 = vpack.c.bf16 %v2445_v39, %v2439_v23  ;;  %v1734_v48 = vpack.c.bf16 %v2442_v29, %v2436_v16 }
 0x154   : > { %v1739_v0 = vpack.c.bf16 %v2456_v1, %v2451_v53  ;;  %v1744_v50 = vpack.c.bf16 %v2454_v59, %v2448_v46  ;;  %v1749_v51 = vpack.c.bf16 %v2466_v30, %v2460_v15  ;;  %v1754_v56 = vpack.c.bf16 %v2468_v41, %v2463_v27 }
 0x155   : > { %1720 = vst [vmem:[%s2835_s3] sm:$0xff] %v1719_v52   ;;  %1876 = vst [vmem:[%s2835_s3 + $0x8] sm:$0xff] %v1724_v40   ;;  %v1759_v13 = vpack.c.bf16 %v2478_v2, %v2473_v54  ;;  %v1764_v60 = vpack.c.bf16 %v2494_v42, %v2483_v12  ;;  %v1769_v61 = vpack.c.bf16 %v2517_v21, %v2507_v4 }
 0x156   : > { %1877 = vst [vmem:[%s2835_s3 + $0x10] sm:$0xff] %v1729_v49   ;;  %1878 = vst [vmem:[%s2835_s3 + $0x18] sm:$0xff] %v1734_v48   ;;  %v1774_v63 = vpack.c.bf16 %v2531_v25, %v2525_v38  ;;  %v1779_v5 = vpack.c.bf16 %v2510_v45, %v2497_v7  ;;  %v1784_v47 = vpack.c.bf16 %v2503_v55, %v2490_v32 }
 0x157   : > { %1879 = vst [vmem:[%s2835_s3 + $0x20] sm:$0xff] %v1739_v0   ;;  %1880 = vst [vmem:[%s2835_s3 + $0x28] sm:$0xff] %v1744_v50   ;;  %v1789_v8 = vpack.c.bf16 %v2528_v37, %v2520_v24  ;;  %v1794_v10 = vpack.c.bf16 %v2523_v19, %v2513_v11 }
 0x158   : > { %1881 = vst [vmem:[%s2835_s3 + $0x30] sm:$0xff] %v1749_v51   ;;  %1882 = vst [vmem:[%s2835_s3 + $0x38] sm:$0xff] %v1754_v56  }
 0x159   : > { %1883 = vst [vmem:[%s2835_s3 + $0x40] sm:$0xff] %v1759_v13   ;;  %1884 = vst [vmem:[%s2835_s3 + $0x48] sm:$0xff] %v1764_v60  }
 0x15a   : > { %1885 = vst [vmem:[%s2835_s3 + $0x50] sm:$0xff] %v1769_v61   ;;  %1886 = vst [vmem:[%s2835_s3 + $0x58] sm:$0xff] %v1774_v63  }
 0x15b   : > { %1887 = vst [vmem:[%s2835_s3 + $0x60] sm:$0xff] %v1779_v5   ;;  %1888 = vst [vmem:[%s2835_s3 + $0x68] sm:$0xff] %v1784_v47  }
 0x15c   : > { %1889 = vst [vmem:[%s2835_s3 + $0x70] sm:$0xff] %v1789_v8   ;;  %1890 = vst [vmem:[%s2835_s3 + $0x78] sm:$0xff] %v1794_v10  }
 0x15d PF: > { %p1615_p6 = scmp.le.s32.totalorder %s2225_s12, 0 }
 0x15f   : > { %1222 = sbr.rel (%p1615_p6) target bundleno = 381 (0x17d), region = 40 }
 0x164   : > { %v1223_v43 = vld [vmem:[%s2835_s3] sm:$0xf]  ;;  %v1224_v58 = vld [vmem:[%s2835_s3 + $0x4] sm:$0xf]  ;;  %v1684_v14 = vpack.c.bf16 %v2427_v62, %v2427_v62  ;;  %v1685_v17 = vpack.c.bf16 %v2433_v9, %v2433_v9  ;;  %v1225_v18 = vld [vmem:[%s2835_s3 + $0x8] sm:$0xf]  ;;  %v1686_v20 = vpack.c.bf16 %v2424_v57, %v2424_v57  ;;  %v1687_v31 = vpack.c.bf16 %v2430_v3, %v2430_v3 }
 0x165   : > { %v1226_v22 = vld [vmem:[%s2835_s3 + $0xc] sm:$0xf]  ;;  %v1227_v62 = vld [vmem:[%s2835_s3 + $0x10] sm:$0xf]  ;;  %v1228_v9 = vld [vmem:[%s2835_s3 + $0x14] sm:$0xf]  ;;  %v1688_v28 = vpack.c.bf16 %v2439_v23, %v2439_v23  ;;  %v1689_v57 = vpack.c.bf16 %v2445_v39, %v2445_v39  ;;  %v1690_v3 = vpack.c.bf16 %v2436_v16, %v2436_v16  ;;  %v1691_v26 = vpack.c.bf16 %v2442_v29, %v2442_v29 }
 0x166   : > { %v1367_v33 = vmax.bf16 %v1684_v14, %v1223_v43  ;;  %v1368_v6 = vmax.bf16 %v1685_v17, %v1224_v58  ;;  %v1369_v34 = vmax.bf16 %v1686_v20, %v1225_v18  ;;  %v1370_v35 = vmax.bf16 %v1687_v31, %v1226_v22  ;;  %v1229_v44 = vld [vmem:[%s2835_s3 + $0x18] sm:$0xf]  ;;  %v1230_v23 = vld [vmem:[%s2835_s3 + $0x1c] sm:$0xf]  ;;  %v1231_v16 = vld [vmem:[%s2835_s3 + $0x20] sm:$0xf] }
 0x167   : > { %v1371_v36 = vmax.bf16 %v1688_v28, %v1227_v62  ;;  %v1372_v39 = vmax.bf16 %v1689_v57, %v1228_v9  ;;  %v1373_v52 = vmax.bf16 %v1690_v3, %v1229_v44  ;;  %v1374_v40 = vmax.bf16 %v1691_v26, %v1230_v23  ;;  %v1232_v29 = vld [vmem:[%s2835_s3 + $0x24] sm:$0xf]  ;;  %v1233_v51 = vld [vmem:[%s2835_s3 + $0x28] sm:$0xf]  ;;  %v1234_v56 = vld [vmem:[%s2835_s3 + $0x2c] sm:$0xf] }
 0x168   : > { %v1891_v49 = vcombine.low %v1367_v33, %v1368_v6  ;;  %v1892_v48 = vcombine.low %v1369_v34, %v1370_v35  ;;  %v1692_v0 = vpack.c.bf16 %v2451_v53, %v2451_v53  ;;  %v1693_v50 = vpack.c.bf16 %v2456_v1, %v2456_v1  ;;  %v1235_v53 = vld [vmem:[%s2835_s3 + $0x30] sm:$0xf]  ;;  %v1236_v1 = vld [vmem:[%s2835_s3 + $0x34] sm:$0xf]  ;;  %v1237_v8 = vld [vmem:[%s2835_s3 + $0x38] sm:$0xf] }
 0x169   : > { %v1894_v13 = vcombine.low %v1371_v36, %v1372_v39  ;;  %v1896_v60 = vcombine.low %v1373_v52, %v1374_v40  ;;  %v1694_v61 = vpack.c.bf16 %v2448_v46, %v2448_v46  ;;  %v1695_v63 = vpack.c.bf16 %v2454_v59, %v2454_v59  ;;  %v1238_v10 = vld [vmem:[%s2835_s3 + $0x3c] sm:$0xf]  ;;  %v1239_v14 = vld [vmem:[%s2835_s3 + $0x40] sm:$0xf]  ;;  %v1240_v31 = vld [vmem:[%s2835_s3 + $0x44] sm:$0xf] }
 0x16a   : > { %1800 = vst [vmem:[%s2835_s3] sm:$0xff] %v1891_v49   ;;  %1893 = vst [vmem:[%s2835_s3 + $0x8] sm:$0xff] %v1892_v48   ;;  %v1375_v46 = vmax.bf16 %v1692_v0, %v1231_v16  ;;  %v1376_v5 = vmax.bf16 %v1693_v50, %v1232_v29  ;;  %v1696_v59 = vpack.c.bf16 %v2460_v15, %v2460_v15  ;;  %v1241_v28 = vld [vmem:[%s2835_s3 + $0x48] sm:$0xf]  ;;  %v1242_v57 = vld [vmem:[%s2835_s3 + $0x4c] sm:$0xf] }
 0x16b   : > { %v1697_v47 = vpack.c.bf16 %v2466_v30, %v2466_v30  ;;  %1895 = vst [vmem:[%s2835_s3 + $0x10] sm:$0xff] %v1894_v13   ;;  %1897 = vst [vmem:[%s2835_s3 + $0x18] sm:$0xff] %v1896_v60   ;;  %v1377_v15 = vmax.bf16 %v1694_v61, %v1233_v51  ;;  %v1378_v43 = vmax.bf16 %v1695_v63, %v1234_v56  ;;  %v1243_v33 = vld [vmem:[%s2835_s3 + $0x50] sm:$0xf]  ;;  %v1244_v6 = vld [vmem:[%s2835_s3 + $0x54] sm:$0xf] }
 0x16c   : > { %v1698_v30 = vpack.c.bf16 %v2463_v27, %v2463_v27  ;;  %v1699_v58 = vpack.c.bf16 %v2468_v41, %v2468_v41  ;;  %v1898_v17 = vcombine.low %v1375_v46, %v1376_v5  ;;  %v1379_v18 = vmax.bf16 %v1696_v59, %v1235_v53  ;;  %v1245_v44 = vld [vmem:[%s2835_s3 + $0x58] sm:$0xf]  ;;  %v1246_v23 = vld [vmem:[%s2835_s3 + $0x5c] sm:$0xf]  ;;  %v1247_v52 = vld [vmem:[%s2835_s3 + $0x60] sm:$0xf] }
 0x16d   : > { %v1380_v20 = vmax.bf16 %v1697_v47, %v1236_v1  ;;  %v1700_v22 = vpack.c.bf16 %v2473_v54, %v2473_v54  ;;  %v1900_v62 = vcombine.low %v1377_v15, %v1378_v43  ;;  %v1701_v41 = vpack.c.bf16 %v2478_v2, %v2478_v2  ;;  %v1248_v49 = vld [vmem:[%s2835_s3 + $0x64] sm:$0xf]  ;;  %v1249_v51 = vld [vmem:[%s2835_s3 + $0x68] sm:$0xf]  ;;  %v1250_v56 = vld [vmem:[%s2835_s3 + $0x6c] sm:$0xf] }
 0x16e   : > { %v1381_v9 = vmax.bf16 %v1698_v30, %v1237_v8  ;;  %v1382_v27 = vmax.bf16 %v1699_v58, %v1238_v10  ;;  %1899 = vst [vmem:[%s2835_s3 + $0x20] sm:$0xff] %v1898_v17   ;;  %v1702_v26 = vpack.c.bf16 %v2483_v12, %v2483_v12  ;;  %v1703_v2 = vpack.c.bf16 %v2494_v42, %v2494_v42  ;;  %v1251_v61 = vld [vmem:[%s2835_s3 + $0x70] sm:$0xf]  ;;  %v1252_v63 = vld [vmem:[%s2835_s3 + $0x74] sm:$0xf] }
 0x16f   : > { %v1902_v3 = vcombine.low %v1379_v18, %v1380_v20  ;;  %v1383_v54 = vmax.bf16 %v1700_v22, %v1239_v14  ;;  %1901 = vst [vmem:[%s2835_s3 + $0x28] sm:$0xff] %v1900_v62   ;;  %v1384_v35 = vmax.bf16 %v1701_v41, %v1240_v31  ;;  %v1704_v12 = vpack.c.bf16 %v2507_v4, %v2507_v4  ;;  %v1253_v46 = vld [vmem:[%s2835_s3 + $0x78] sm:$0xf]  ;;  %v1254_v5 = vld [vmem:[%s2835_s3 + $0x7c] sm:$0xf] }
 0x170   : > { %v1904_v34 = vcombine.low %v1381_v9, %v1382_v27  ;;  %v1705_v42 = vpack.c.bf16 %v2517_v21, %v2517_v21  ;;  %v1385_v36 = vmax.bf16 %v1702_v26, %v1241_v28  ;;  %v1386_v39 = vmax.bf16 %v1703_v2, %v1242_v57 }
 0x171   : > { %1903 = vst [vmem:[%s2835_s3 + $0x30] sm:$0xff] %v1902_v3   ;;  %v1706_v4 = vpack.c.bf16 %v2525_v38, %v2525_v38  ;;  %v1707_v21 = vpack.c.bf16 %v2531_v25, %v2531_v25  ;;  %v1906_v40 = vcombine.low %v1383_v54, %v1384_v35  ;;  %v1387_v16 = vmax.bf16 %v1704_v12, %v1243_v33 }
 0x172   : > { %1905 = vst [vmem:[%s2835_s3 + $0x38] sm:$0xff] %v1904_v34   ;;  %v1388_v29 = vmax.bf16 %v1705_v42, %v1244_v6  ;;  %v1708_v38 = vpack.c.bf16 %v2497_v7, %v2497_v7  ;;  %v1908_v48 = vcombine.low %v1385_v36, %v1386_v39  ;;  %v1709_v50 = vpack.c.bf16 %v2510_v45, %v2510_v45 }
 0x173   : > { %v1389_v25 = vmax.bf16 %v1706_v4, %v1245_v44  ;;  %v1390_v0 = vmax.bf16 %v1707_v21, %v1246_v23  ;;  %1907 = vst [vmem:[%s2835_s3 + $0x40] sm:$0xff] %v1906_v40   ;;  %v1710_v60 = vpack.c.bf16 %v2490_v32, %v2490_v32  ;;  %v1711_v45 = vpack.c.bf16 %v2503_v55, %v2503_v55 }
 0x174   : > { %v1910_v13 = vcombine.low %v1387_v16, %v1388_v29  ;;  %v1391_v7 = vmax.bf16 %v1708_v38, %v1247_v52  ;;  %1909 = vst [vmem:[%s2835_s3 + $0x48] sm:$0xff] %v1908_v48   ;;  %v1392_v1 = vmax.bf16 %v1709_v50, %v1248_v49  ;;  %v1712_v32 = vpack.c.bf16 %v2520_v24, %v2520_v24 }
 0x175   : > { %v1912_v53 = vcombine.low %v1389_v25, %v1390_v0  ;;  %v1713_v55 = vpack.c.bf16 %v2528_v37, %v2528_v37  ;;  %v1393_v59 = vmax.bf16 %v1710_v60, %v1249_v51  ;;  %v1394_v47 = vmax.bf16 %v1711_v45, %v1250_v56 }
 0x176   : > { %1911 = vst [vmem:[%s2835_s3 + $0x50] sm:$0xff] %v1910_v13   ;;  %v1714_v24 = vpack.c.bf16 %v2513_v11, %v2513_v11  ;;  %v1715_v37 = vpack.c.bf16 %v2523_v19, %v2523_v19  ;;  %v1914_v8 = vcombine.low %v1391_v7, %v1392_v1  ;;  %v1395_v10 = vmax.bf16 %v1712_v32, %v1251_v61 }
 0x177   : > { %1913 = vst [vmem:[%s2835_s3 + $0x58] sm:$0xff] %v1912_v53   ;;  %v1396_v15 = vmax.bf16 %v1713_v55, %v1252_v63  ;;  %v1916_v43 = vcombine.low %v1393_v59, %v1394_v47 }
 0x178   : > { %v1397_v30 = vmax.bf16 %v1714_v24, %v1253_v46  ;;  %v1398_v58 = vmax.bf16 %v1715_v37, %v1254_v5  ;;  %1915 = vst [vmem:[%s2835_s3 + $0x60] sm:$0xff] %v1914_v8  }
 0x179   : > { %v1918_v14 = vcombine.low %v1395_v10, %v1396_v15  ;;  %1917 = vst [vmem:[%s2835_s3 + $0x68] sm:$0xff] %v1916_v43  }
 0x17a   : > { %v1920_v11 = vcombine.low %v1397_v30, %v1398_v58 }
 0x17b   : > { %1919 = vst [vmem:[%s2835_s3 + $0x70] sm:$0xff] %v1918_v14  }
 0x17c   : > { %1921 = vst [vmem:[%s2835_s3 + $0x78] sm:$0xff] %v1920_v11  }
 0x17d PF: > { %s13_s14 = sadd.s32 1, %s2233_s14   ;;  %s2836_s12 = smov %s2229_s13 }
 0x17e   : > { %p10_p7 = scmp.ge.s32.totalorder %s13_s14, 6   ;;  %s2837_s13 = smov %s2839_s15 }
 0x180   :  { %12 = sbr.rel (!%p10_p7) target bundleno = 2 (0x2), region = 70 }

// kernel: model_forward.5
= control target key start
LH: loop header
LB: loop body
LE: loop exit
PB: predicated region body
PF: predicated region fallthrough
CT: control target
= control target key end

     0   :  { %v831_v27 = vlaneseq  ;;  %v6085_v35 = vmov 1966171168   ;;  %vm6087_vm0 = vmmov 0   ;;  %s7451_s0 = inlined_call_operand.vmem [shape: bf16[2,6272], index: 0, kind: input, shape index: {}]   ;;  %s7452_s1 = inlined_call_operand.vmem [shape: bf16[6272,128], index: 1, kind: input, shape index: {}]   ;;  %s7453_s2 = inlined_call_operand.vmem [shape: f32[1,128], index: 2, kind: input, shape index: {}]   ;;  %s7454_s3 = inlined_call_operand.vmem [shape: bf16[128,128], index: 3, kind: input, shape index: {}]   ;;  %s7455_s4 = inlined_call_operand.vmem [shape: f32[1,128], index: 4, kind: input, shape index: {}]   ;;  %s7456_s5 = inlined_call_operand.hbm [shape: f32[2,128], index: 5, kind: output, shape index: {}]  }
   0x1   :  { %v5657_v0 = vld [vmem:[%s7452_s1 + $0x78] sm:$0xff]   ;;  %v5661_v4 = vld [vmem:[%s7452_s1 + $0x70] sm:$0xff]   ;;  %v5665_v8 = vld [vmem:[%s7452_s1 + $0x68] sm:$0xff]   ;;  %v829_v36 = vunpack.c.l.s4 %v6085_v35 }
   0x2   :  { %v5658_v1 = vld [vmem:[%s7452_s1 + $0x38] sm:$0xff]   ;;  %5067 = vmatprep.subr.bf16.mxu0 %v5657_v0  ;;  %v5662_v5 = vld [vmem:[%s7452_s1 + $0x30] sm:$0xff]   ;;  %v5666_v9 = vld [vmem:[%s7452_s1 + $0x28] sm:$0xff]   ;;  %v832_v32 = vshrl.u32 %v831_v27, 7 }
   0x3   :  { %v5659_v2 = vld [vmem:[%s7452_s1 + $0xf8] sm:$0xff]   ;;  %5068 = vmatpush3.bf16.msra.mxu0 %v5658_v1  ;;  %v5663_v6 = vld [vmem:[%s7452_s1 + $0xf0] sm:$0xff]   ;;  %v5667_v10 = vld [vmem:[%s7452_s1 + $0xe8] sm:$0xff]   ;;  %v830_v39 = vunpack.c.0.s8 %v829_v36 }
   0x4   :  { %v5660_v3 = vld [vmem:[%s7452_s1 + $0xb8] sm:$0xff]   ;;  %5089 = vmatprep.subr.bf16.mxu1 %v5659_v2  ;;  %5069 = vmatprep.subr.bf16.mxu0 %v5661_v4  ;;  %v5664_v7 = vld [vmem:[%s7452_s1 + $0xb0] sm:$0xff]   ;;  %v5668_v11 = vld [vmem:[%s7452_s1 + $0xa8] sm:$0xff]  }
   0x5   :  { %5090 = vmatpush3.bf16.msra.mxu1 %v5660_v3  ;;  %v5669_v12 = vld [vmem:[%s7452_s1 + $0x60] sm:$0xff]   ;;  %v5673_v16 = vld [vmem:[%s7452_s1 + $0x58] sm:$0xff]   ;;  %v5677_v20 = vld [vmem:[%s7452_s1 + $0x50] sm:$0xff]   ;;  %v6224_v41 = vsub.s32 %v830_v39, %v832_v32 }
   0x6   :  { %5091 = vmatprep.subr.bf16.mxu1 %v5663_v6  ;;  %v5670_v13 = vld [vmem:[%s7452_s1 + $0x20] sm:$0xff]   ;;  %v5674_v17 = vld [vmem:[%s7452_s1 + $0x18] sm:$0xff]   ;;  %v5678_v21 = vld [vmem:[%s7452_s1 + $0x10] sm:$0xff]  }
   0x7   :  { %5070 = vmatpush3.bf16.msra.mxu0 %v5662_v5  ;;  %v5671_v14 = vld [vmem:[%s7452_s1 + $0xe0] sm:$0xff]   ;;  %v5675_v18 = vld [vmem:[%s7452_s1 + $0xd8] sm:$0xff]   ;;  %v5679_v22 = vld [vmem:[%s7452_s1 + $0xd0] sm:$0xff]  }
   0x8   :  { %5071 = vmatprep.subr.bf16.mxu0 %v5665_v8  ;;  %v5672_v15 = vld [vmem:[%s7452_s1 + $0xa0] sm:$0xff]   ;;  %v5676_v19 = vld [vmem:[%s7452_s1 + $0x98] sm:$0xff]   ;;  %v5680_v23 = vld [vmem:[%s7452_s1 + $0x90] sm:$0xff]  }
   0x9   :  { %5092 = vmatpush3.bf16.msra.mxu1 %v5664_v7  ;;  %v5681_v24 = vld [vmem:[%s7452_s1 + $0x48] sm:$0xff]   ;;  %v5685_v29 = vld [vmem:[%s7452_s1 + $0x40] sm:$0xff]   ;;  %v5690_v37 = vld [vmem:[%s7452_s1 + $0x178] sm:$0xff]  }
   0xa   :  { %5093 = vmatprep.subr.bf16.mxu1 %v5667_v10  ;;  %v5682_v25 = vld [vmem:[%s7452_s1 + $0x8] sm:$0xff]   ;;  %v5686_v30 = vld [vmem:[%s7452_s1] sm:$0xff]   ;;  %v5692_v40 = vld [vmem:[%s7452_s1 + $0x1f8] sm:$0xff]  }
   0xb   :  { %5072 = vmatpush3.bf16.msra.mxu0 %v5666_v9  ;;  %v5683_v26 = vld [vmem:[%s7452_s1 + $0xc8] sm:$0xff]   ;;  %v5687_v31 = vld [vmem:[%s7452_s1 + $0xc0] sm:$0xff]   ;;  %v5691_v47 = vld [vmem:[%s7452_s1 + $0x138] sm:$0xff]  }
   0xc   :  { %5073 = vmatprep.subr.bf16.mxu0 %v5669_v12  ;;  %v5684_v28 = vld [vmem:[%s7452_s1 + $0x88] sm:$0xff]   ;;  %v22_v33 = vld [vmem:[%s7451_s0] sm:$0xff]  ;;  %v5693_v49 = vld [vmem:[%s7452_s1 + $0x1b8] sm:$0xff]  }
   0xd   :  { %5094 = vmatpush3.bf16.msra.mxu1 %v5668_v11  ;;  %v5689_v34 = vld [vmem:[%s7452_s1 + $0x80] sm:$0xff]   ;;  %v827_v38 = vcombine.high %v22_v33, %v22_v33  ;;  %v834_v42 = vrot.slane %v22_v33, %v6224_v41  ;;  %v5694_v52 = vld [vmem:[%s7452_s1 + $0x170] sm:$0xff]   ;;  %v5698_v58 = vld [vmem:[%s7452_s1 + $0x168] sm:$0xff]  }
   0xe   :  { %5095 = vmatprep.subr.bf16.mxu1 %v5671_v14  ;;  %v5695_v54 = vld [vmem:[%s7452_s1 + $0x130] sm:$0xff]   ;;  %v5699_v59 = vld [vmem:[%s7452_s1 + $0x128] sm:$0xff]   ;;  %v5702_v62 = vld [vmem:[%s7452_s1 + $0x160] sm:$0xff]  }
   0xf   :  { %5074 = vmatpush3.bf16.msra.mxu0 %v5670_v13  ;;  %v6228_v43 = vrot.slane %v827_v38, %v6224_v41  ;;  %v842_v44 = vcombine.high %v834_v42, %v834_v42  ;;  %v850_v45 = vrot.slane %v834_v42, %v6224_v41  ;;  %v5696_v55 = vld [vmem:[%s7452_s1 + $0x1f0] sm:$0xff]   ;;  %v5700_v60 = vld [vmem:[%s7452_s1 + $0x1e8] sm:$0xff]   ;;  %v5703_v63 = vld [vmem:[%s7452_s1 + $0x120] sm:$0xff]  }
  0x10   :  { %5075 = vmatprep.subr.bf16.mxu0 %v5673_v16  ;;  %v5697_v57 = vld [vmem:[%s7452_s1 + $0x1b0] sm:$0xff]   ;;  %v5701_v61 = vld [vmem:[%s7452_s1 + $0x1a8] sm:$0xff]   ;;  %v5704_v0 = vld [vmem:[%s7452_s1 + $0x1e0] sm:$0xff]  }
  0x11   :  { %5096 = vmatpush3.bf16.msra.mxu1 %v5672_v15  ;;  %v843_v46 = vcombine.high %v6228_v43, %v6228_v43  ;;  %v864_v48 = vrot.slane %v842_v44, %v6224_v41  ;;  %v872_v51 = vcombine.high %v850_v45, %v850_v45  ;;  %v5705_v1 = vld [vmem:[%s7452_s1 + $0x1a0] sm:$0xff]   ;;  %v5706_v2 = vld [vmem:[%s7452_s1 + $0x158] sm:$0xff]   ;;  %v5710_v6 = vld [vmem:[%s7452_s1 + $0x150] sm:$0xff]  }
  0x12   :  { %5097 = vmatprep.subr.bf16.mxu1 %v5675_v18  ;;  %v5707_v3 = vld [vmem:[%s7452_s1 + $0x118] sm:$0xff]   ;;  %v5711_v7 = vld [vmem:[%s7452_s1 + $0x110] sm:$0xff]   ;;  %v5714_v10 = vld [vmem:[%s7452_s1 + $0x148] sm:$0xff]   ;;  %v857_v18 = vrot.slane %v6228_v43, %v6224_v41 }
  0x13   :  { %5076 = vmatpush3.bf16.msra.mxu0 %v5674_v17  ;;  %v871_v50 = vrot.slane %v843_v46, %v6224_v41  ;;  %3568 = vmatprep.mubr.bf16.mxu0 %v864_v48  ;;  %v874_v53 = vcombine.high %v864_v48, %v864_v48  ;;  %v5708_v4 = vld [vmem:[%s7452_s1 + $0x1d8] sm:$0xff]   ;;  %v5712_v8 = vld [vmem:[%s7452_s1 + $0x1d0] sm:$0xff]   ;;  %v5715_v11 = vld [vmem:[%s7452_s1 + $0x108] sm:$0xff]  }
  0x14   :  { %5077 = vmatprep.subr.bf16.mxu0 %v5677_v20  ;;  %v5709_v5 = vld [vmem:[%s7452_s1 + $0x198] sm:$0xff]   ;;  %v5713_v9 = vld [vmem:[%s7452_s1 + $0x190] sm:$0xff]   ;;  %v5716_v12 = vld [vmem:[%s7452_s1 + $0x1c8] sm:$0xff]  }
  0x15   :  { %5098 = vmatpush3.bf16.msra.mxu1 %v5676_v19  ;;  %v875_v56 = vcombine.high %v871_v50, %v871_v50  ;;  %3608 = vmatprep.mubr.bf16.mxu1 %v874_v53  ;;  %v5717_v13 = vld [vmem:[%s7452_s1 + $0x188] sm:$0xff]   ;;  %v5718_v14 = vld [vmem:[%s7452_s1 + $0x140] sm:$0xff]   ;;  %v5722_v19 = vld [vmem:[%s7452_s1 + $0x278] sm:$0xff]  }
  0x16   :  { %5099 = vmatprep.subr.bf16.mxu1 %v5679_v22  ;;  %v5719_v15 = vld [vmem:[%s7452_s1 + $0x100] sm:$0xff]   ;;  %v5723_v20 = vld [vmem:[%s7452_s1 + $0x238] sm:$0xff]   ;;  %v5729_v27 = vld [vmem:[%s7452_s1 + $0x2b0] sm:$0xff]  }
  0x17   :  { %5078 = vmatpush3.bf16.msra.mxu0 %v5678_v21  ;;  %v5720_v16 = vld [vmem:[%s7452_s1 + $0x1c0] sm:$0xff]   ;;  %v5724_v21 = vld [vmem:[%s7452_s1 + $0x2f8] sm:$0xff]   ;;  %v5743_v42 = vld [vmem:[%s7452_s1 + $0x210] sm:$0xff]  }
  0x18   :  { %5079 = vmatprep.subr.bf16.mxu0 %v5681_v24  ;;  %v5721_v17 = vld [vmem:[%s7452_s1 + $0x180] sm:$0xff]   ;;  %v5725_v22 = vld [vmem:[%s7452_s1 + $0x2b8] sm:$0xff]   ;;  %v5726_v24 = vld [vmem:[%s7452_s1 + $0x270] sm:$0xff]  }
  0x19   :  { %5100 = vmatpush3.bf16.msra.mxu1 %v5680_v23  ;;  %v873_v23 = vcombine.high %v857_v18, %v857_v18  ;;  %v5734_v32 = vld [vmem:[%s7452_s1 + $0x260] sm:$0xff]   ;;  %v5738_v36 = vld [vmem:[%s7452_s1 + $0x258] sm:$0xff]   ;;  %v5744_v43 = vld [vmem:[%s7452_s1 + $0x2d0] sm:$0xff]  }
  0x1a   :  { %5101 = vmatprep.subr.bf16.mxu1 %v5683_v26  ;;  %v5728_v26 = vld [vmem:[%s7452_s1 + $0x2f0] sm:$0xff]   ;;  %v5735_v33 = vld [vmem:[%s7452_s1 + $0x220] sm:$0xff]   ;;  %v5740_v38 = vld [vmem:[%s7452_s1 + $0x2d8] sm:$0xff]  }
  0x1b   :  { %5080 = vmatpush3.bf16.msra.mxu0 %v5682_v25  ;;  %v5727_v25 = vld [vmem:[%s7452_s1 + $0x230] sm:$0xff]   ;;  %v5737_v35 = vld [vmem:[%s7452_s1 + $0x2a0] sm:$0xff]   ;;  %v5741_v39 = vld [vmem:[%s7452_s1 + $0x298] sm:$0xff]  }
  0x1c   :  { %5081 = vmatprep.subr.bf16.mxu0 %v5685_v29  ;;  %v5731_v29 = vld [vmem:[%s7452_s1 + $0x228] sm:$0xff]   ;;  %v5745_v44 = vld [vmem:[%s7452_s1 + $0x290] sm:$0xff]  }
  0x1d   :  { %5102 = vmatpush3.bf16.msra.mxu1 %v5684_v28  ;;  %v5730_v28 = vld [vmem:[%s7452_s1 + $0x268] sm:$0xff]  }
  0x1e   :  { %5103 = vmatprep.subr.bf16.mxu1 %v5687_v31  ;;  %v5733_v31 = vld [vmem:[%s7452_s1 + $0x2a8] sm:$0xff]  }
  0x1f   :  { %5082 = vmatpush3.bf16.msra.mxu0 %v5686_v30  ;;  %v5732_v30 = vld [vmem:[%s7452_s1 + $0x2e8] sm:$0xff]  }
  0x20   :  { %5111 = vmatprep.subr.bf16.mxu0 %v5690_v37  ;;  %v5739_v37 = vld [vmem:[%s7452_s1 + $0x218] sm:$0xff]   ;;  %v23_v46 = vld [vmem:[%s7451_s0 + $0x8] sm:$0xff] }
  0x21   :  { %5104 = vmatpush3.bf16.msra.mxu1 %v5689_v34  ;;  %v5736_v34 = vld [vmem:[%s7452_s1 + $0x2e0] sm:$0xff]   ;;  %v883_v48 = vrot.slane %v23_v46, %v6224_v41 }
  0x22   :  { %5133 = vmatprep.subr.bf16.mxu1 %v5692_v40  ;;  %3569 = vmatmul.mubr.bf16.vlgmr.msra.gmra.mxu0 %v850_v45  ;;  %v5742_v40 = vld [vmem:[%s7452_s1 + $0x250] sm:$0xff]   ;;  %v5746_v45 = vld [vmem:[%s7452_s1 + $0x248] sm:$0xff]  }
  0x23   :  { %5112 = vmatpush3.bf16.msra.mxu0 %v5691_v47  ;;  %3648 = vmatprep.mubr.bf16.mxu0 %v871_v50  ;;  %v5747_v47 = vld [vmem:[%s7452_s1 + $0x208] sm:$0xff]  }
  0x24   :  { %3609 = vmatmul.mubr.bf16.vlgmr.msra.gmra.mxu1 %v872_v51  ;;  %5113 = vmatprep.subr.bf16.mxu0 %v5694_v52  ;;  %v5748_v50 = vld [vmem:[%s7452_s1 + $0x2c8] sm:$0xff]   ;;  %v891_v52 = vcombine.high %v883_v48, %v883_v48 }
  0x25   :  { %5134 = vmatpush3.bf16.msra.mxu1 %v5693_v49  ;;  %3688 = vmatprep.mubr.bf16.mxu1 %v875_v56  ;;  %v876_v49 = vcombine.high %v23_v46, %v23_v46  ;;  %v5749_v51 = vld [vmem:[%s7452_s1 + $0x288] sm:$0xff]  }
  0x26   :  { %5135 = vmatprep.subr.bf16.mxu1 %v5696_v55  ;;  %v5751_v55 = vld [vmem:[%s7452_s1 + $0x200] sm:$0xff]   ;;  %v913_v56 = vrot.slane %v891_v52, %v6224_v41  ;;  %v5797_v46 = vld [vmem:[%s7452_s1 + $0x4e8] sm:$0xff]   ;;  %v5803_v52 = vld [vmem:[%s7452_s1 + $0x458] sm:$0xff]  }
  0x27   :  { %5114 = vmatpush3.bf16.msra.mxu0 %v5695_v54  ;;  %v6416_v53 = vrot.slane %v876_v49, %v6224_v41  ;;  %v5750_v54 = vld [vmem:[%s7452_s1 + $0x240] sm:$0xff]  }
  0x28   :  { %5115 = vmatprep.subr.bf16.mxu0 %v5698_v58  ;;  %v5752_v58 = vld [vmem:[%s7452_s1 + $0x2c0] sm:$0xff]  }
  0x29   :  { %5136 = vmatpush3.bf16.msra.mxu1 %v5697_v57  ;;  %v892_v57 = vcombine.high %v6416_v53, %v6416_v53  ;;  %v5800_v49 = vld [vmem:[%s7452_s1 + $0x420] sm:$0xff]  }
  0x2a   :  { %5137 = vmatprep.subr.bf16.mxu1 %v5700_v60  ;;  %v923_v60 = vcombine.high %v913_v56, %v913_v56 }
  0x2b   :  { %5116 = vmatpush3.bf16.msra.mxu0 %v5699_v59  ;;  %v5753_v59 = vld [vmem:[%s7452_s1 + $0x280] sm:$0xff]  }
  0x2c   :  { %5117 = vmatprep.subr.bf16.mxu0 %v5702_v62  ;;  %v5754_v62 = vld [vmem:[%s7452_s1 + $0x378] sm:$0xff]  }
  0x2d   :  { %5138 = vmatpush3.bf16.msra.mxu1 %v5701_v61  ;;  %v899_v61 = vrot.slane %v883_v48, %v6224_v41  ;;  %v5799_v48 = vld [vmem:[%s7452_s1 + $0x460] sm:$0xff]  }
  0x2e   :  { %5139 = vmatprep.subr.bf16.mxu1 %v5704_v0  ;;  %v920_v0 = vrot.slane %v892_v57, %v6224_v41  ;;  %v5808_v57 = vld [vmem:[%s7452_s1 + $0x410] sm:$0xff]  }
  0x2f   :  { %5118 = vmatpush3.bf16.msra.mxu0 %v5703_v63  ;;  %v5755_v63 = vld [vmem:[%s7452_s1 + $0x338] sm:$0xff]  }
  0x30   :  { %5119 = vmatprep.subr.bf16.mxu0 %v5706_v2  ;;  %v5757_v2 = vld [vmem:[%s7452_s1 + $0x3b8] sm:$0xff]  }
  0x31   :  { %5140 = vmatpush3.bf16.msra.mxu1 %v5705_v1  ;;  %v5756_v1 = vld [vmem:[%s7452_s1 + $0x3f8] sm:$0xff]  }
  0x32   :  { %5141 = vmatprep.subr.bf16.mxu1 %v5708_v4  ;;  %v5758_v4 = vld [vmem:[%s7452_s1 + $0x370] sm:$0xff]  }
  0x33   :  { %5120 = vmatpush3.bf16.msra.mxu0 %v5707_v3  ;;  %v921_v3 = vcombine.high %v899_v61, %v899_v61 }
  0x34   :  { %5121 = vmatprep.subr.bf16.mxu0 %v5710_v6  ;;  %v924_v6 = vcombine.high %v920_v0, %v920_v0 }
  0x35   :  { %5142 = vmatpush3.bf16.msra.mxu1 %v5709_v5  ;;  %v5759_v5 = vld [vmem:[%s7452_s1 + $0x330] sm:$0xff]  }
  0x36   :  { %5143 = vmatprep.subr.bf16.mxu1 %v5712_v8  ;;  %v5761_v8 = vld [vmem:[%s7452_s1 + $0x3b0] sm:$0xff]  }
  0x37   :  { %5122 = vmatpush3.bf16.msra.mxu0 %v5711_v7  ;;  %v5760_v7 = vld [vmem:[%s7452_s1 + $0x3f0] sm:$0xff]  }
  0x38   :  { %5123 = vmatprep.subr.bf16.mxu0 %v5714_v10  ;;  %v5763_v10 = vld [vmem:[%s7452_s1 + $0x328] sm:$0xff]  }
  0x39   :  { %5144 = vmatpush3.bf16.msra.mxu1 %v5713_v9  ;;  %v5762_v9 = vld [vmem:[%s7452_s1 + $0x368] sm:$0xff]  }
  0x3a   :  { %5145 = vmatprep.subr.bf16.mxu1 %v5716_v12  ;;  %v5765_v12 = vld [vmem:[%s7452_s1 + $0x3a8] sm:$0xff]  }
  0x3b   :  { %5124 = vmatpush3.bf16.msra.mxu0 %v5715_v11  ;;  %v5764_v11 = vld [vmem:[%s7452_s1 + $0x3e8] sm:$0xff]  }
  0x3c   :  { %5125 = vmatprep.subr.bf16.mxu0 %v5718_v14  ;;  %v5767_v14 = vld [vmem:[%s7452_s1 + $0x320] sm:$0xff]  }
  0x3d   :  { %5146 = vmatpush3.bf16.msra.mxu1 %v5717_v13  ;;  %v5766_v13 = vld [vmem:[%s7452_s1 + $0x360] sm:$0xff]  }
  0x3e   :  { %5147 = vmatprep.subr.bf16.mxu1 %v5720_v16  ;;  %v5769_v16 = vld [vmem:[%s7452_s1 + $0x3a0] sm:$0xff]  }
  0x3f   :  { %5126 = vmatpush3.bf16.msra.mxu0 %v5719_v15  ;;  %v5768_v15 = vld [vmem:[%s7452_s1 + $0x3e0] sm:$0xff]  }
  0x40   :  { %5155 = vmatprep.subr.bf16.mxu0 %v5722_v19  ;;  %v5772_v19 = vld [vmem:[%s7452_s1 + $0x3d8] sm:$0xff]  }
  0x41   :  { %5148 = vmatpush3.bf16.msra.mxu1 %v5721_v17  ;;  %v5770_v17 = vld [vmem:[%s7452_s1 + $0x358] sm:$0xff]  }
  0x42   :  { %3649 = vmatmul.mubr.bf16.vlgmr.msra.gmra.mxu0 %v857_v18  ;;  %5177 = vmatprep.subr.bf16.mxu1 %v5724_v21  ;;  %v5771_v18 = vld [vmem:[%s7452_s1 + $0x318] sm:$0xff]   ;;  %v5774_v21 = vld [vmem:[%s7452_s1 + $0x350] sm:$0xff]  }
  0x43   :  { %5156 = vmatpush3.bf16.msra.mxu0 %v5723_v20  ;;  %3728 = vmatprep.mubr.bf16.mxu0 %v913_v56  ;;  %v5773_v20 = vld [vmem:[%s7452_s1 + $0x398] sm:$0xff]   ;;  %v5807_v56 = vld [vmem:[%s7452_s1 + $0x450] sm:$0xff]  }
  0x44   :  { %3689 = vmatmul.mubr.bf16.vlgmr.msra.gmra.mxu1 %v873_v23  ;;  %5157 = vmatprep.subr.bf16.mxu0 %v5726_v24  ;;  %v5776_v23 = vld [vmem:[%s7452_s1 + $0x3d0] sm:$0xff]  }
  0x45   :  { %5178 = vmatpush3.bf16.msra.mxu1 %v5725_v22  ;;  %3768 = vmatprep.mubr.bf16.mxu1 %v923_v60  ;;  %v5775_v22 = vld [vmem:[%s7452_s1 + $0x310] sm:$0xff]   ;;  %v5811_v60 = vld [vmem:[%s7452_s1 + $0x448] sm:$0xff]  }
  0x46   :  { %5179 = vmatprep.subr.bf16.mxu1 %v5728_v26  ;;  %v5777_v24 = vld [vmem:[%s7452_s1 + $0x390] sm:$0xff]   ;;  %v5779_v26 = vld [vmem:[%s7452_s1 + $0x308] sm:$0xff]  }
  0x47   :  { %5158 = vmatpush3.bf16.msra.mxu0 %v5727_v25  ;;  %v5778_v25 = vld [vmem:[%s7452_s1 + $0x348] sm:$0xff]  }
  0x48   :  { %5159 = vmatprep.subr.bf16.mxu0 %v5730_v28  ;;  %v5781_v28 = vld [vmem:[%s7452_s1 + $0x388] sm:$0xff]  }
  0x49   :  { %5180 = vmatpush3.bf16.msra.mxu1 %v5729_v27  ;;  %v5780_v27 = vld [vmem:[%s7452_s1 + $0x3c8] sm:$0xff]  }
  0x4a   :  { %5181 = vmatprep.subr.bf16.mxu1 %v5732_v30  ;;  %v5783_v30 = vld [vmem:[%s7452_s1 + $0x300] sm:$0xff]  }
  0x4b   :  { %5160 = vmatpush3.bf16.msra.mxu0 %v5731_v29  ;;  %v5782_v29 = vld [vmem:[%s7452_s1 + $0x340] sm:$0xff]  }
  0x4c   :  { %5161 = vmatprep.subr.bf16.mxu0 %v5734_v32  ;;  %v5786_v32 = vld [vmem:[%s7452_s1 + $0x380] sm:$0xff]  }
  0x4d   :  { %5182 = vmatpush3.bf16.msra.mxu1 %v5733_v31  ;;  %v5784_v31 = vld [vmem:[%s7452_s1 + $0x3c0] sm:$0xff]  }
  0x4e   :  { %5183 = vmatprep.subr.bf16.mxu1 %v5736_v34  ;;  %v5787_v34 = vld [vmem:[%s7452_s1 + $0x478] sm:$0xff]  }
  0x4f   :  { %5162 = vmatpush3.bf16.msra.mxu0 %v5735_v33  ;;  %v906_v33 = vrot.slane %v6416_v53, %v6224_v41  ;;  %v5804_v53 = vld [vmem:[%s7452_s1 + $0x418] sm:$0xff]  }
  0x50   :  { %5163 = vmatprep.subr.bf16.mxu0 %v5738_v36  ;;  %v5789_v36 = vld [vmem:[%s7452_s1 + $0x4f8] sm:$0xff]  }
  0x51   :  { %5184 = vmatpush3.bf16.msra.mxu1 %v5737_v35  ;;  %v5788_v35 = vld [vmem:[%s7452_s1 + $0x438] sm:$0xff]  }
  0x52   :  { %5185 = vmatprep.subr.bf16.mxu1 %v5740_v38  ;;  %v922_v38 = vcombine.high %v906_v33, %v906_v33 }
  0x53   :  { %5164 = vmatpush3.bf16.msra.mxu0 %v5739_v37  ;;  %v5790_v37 = vld [vmem:[%s7452_s1 + $0x4b8] sm:$0xff]  }
  0x54   :  { %5165 = vmatprep.subr.bf16.mxu0 %v5742_v40  ;;  %v5792_v40 = vld [vmem:[%s7452_s1 + $0x430] sm:$0xff]  }
  0x55   :  { %5186 = vmatpush3.bf16.msra.mxu1 %v5741_v39  ;;  %v5791_v39 = vld [vmem:[%s7452_s1 + $0x470] sm:$0xff]  }
  0x56   :  { %5187 = vmatprep.subr.bf16.mxu1 %v5744_v43  ;;  %v5794_v43 = vld [vmem:[%s7452_s1 + $0x4b0] sm:$0xff]  }
  0x57   :  { %5166 = vmatpush3.bf16.msra.mxu0 %v5743_v42  ;;  %v5793_v42 = vld [vmem:[%s7452_s1 + $0x4f0] sm:$0xff]  }
  0x58   :  { %5167 = vmatprep.subr.bf16.mxu0 %v5746_v45  ;;  %v5796_v45 = vld [vmem:[%s7452_s1 + $0x428] sm:$0xff]  }
  0x59   :  { %5188 = vmatpush3.bf16.msra.mxu1 %v5745_v44  ;;  %v5795_v44 = vld [vmem:[%s7452_s1 + $0x468] sm:$0xff]  }
  0x5a   :  { %5189 = vmatprep.subr.bf16.mxu1 %v5748_v50  ;;  %v5801_v50 = vld [vmem:[%s7452_s1 + $0x4e0] sm:$0xff]  }
  0x5b   :  { %5168 = vmatpush3.bf16.msra.mxu0 %v5747_v47  ;;  %v5798_v47 = vld [vmem:[%s7452_s1 + $0x4a8] sm:$0xff]  }
  0x5c   :  { %5169 = vmatprep.subr.bf16.mxu0 %v5750_v54  ;;  %v5805_v54 = vld [vmem:[%s7452_s1 + $0x4d8] sm:$0xff]  }
  0x5d   :  { %5190 = vmatpush3.bf16.msra.mxu1 %v5749_v51  ;;  %v5802_v51 = vld [vmem:[%s7452_s1 + $0x4a0] sm:$0xff]  }
  0x5e   :  { %5191 = vmatprep.subr.bf16.mxu1 %v5752_v58  ;;  %v5809_v58 = vld [vmem:[%s7452_s1 + $0x4d0] sm:$0xff]  }
  0x5f   :  { %5170 = vmatpush3.bf16.msra.mxu0 %v5751_v55  ;;  %v5806_v55 = vld [vmem:[%s7452_s1 + $0x498] sm:$0xff]  }
  0x60   :  { %5199 = vmatprep.subr.bf16.mxu0 %v5754_v62  ;;  %v5812_v62 = vld [vmem:[%s7452_s1 + $0x408] sm:$0xff]  }
  0x61   :  { %5192 = vmatpush3.bf16.msra.mxu1 %v5753_v59  ;;  %v5810_v59 = vld [vmem:[%s7452_s1 + $0x490] sm:$0xff]  }
  0x62   :  { %3729 = vmatmul.mubr.bf16.vlgmr.msra.gmra.mxu0 %v899_v61  ;;  %5221 = vmatprep.subr.bf16.mxu1 %v5756_v1  ;;  %v24_v61 = vld [vmem:[%s7451_s0 + $0x10] sm:$0xff]  ;;  %v5813_v1 = vld [vmem:[%s7452_s1 + $0x4c8] sm:$0xff]  }
  0x63   :  { %5200 = vmatpush3.bf16.msra.mxu0 %v5755_v63  ;;  %3808 = vmatprep.mubr.bf16.mxu0 %v920_v0  ;;  %v932_v63 = vrot.slane %v24_v61, %v6224_v41  ;;  %v925_v0 = vcombine.high %v24_v61, %v24_v61  ;;  %v5862_v61 = vld [vmem:[%s7452_s1 + $0x6e8] sm:$0xff]  }
  0x64   :  { %3769 = vmatmul.mubr.bf16.vlgmr.msra.gmra.mxu1 %v921_v3  ;;  %5201 = vmatprep.subr.bf16.mxu0 %v5758_v4 }
  0x65   :  { %5222 = vmatpush3.bf16.msra.mxu1 %v5757_v2  ;;  %3848 = vmatprep.mubr.bf16.mxu1 %v924_v6  ;;  %v5814_v2 = vld [vmem:[%s7452_s1 + $0x488] sm:$0xff]   ;;  %v940_v3 = vcombine.high %v932_v63, %v932_v63  ;;  %v6622_v4 = vrot.slane %v925_v0, %v6224_v41  ;;  %v5816_v6 = vld [vmem:[%s7452_s1 + $0x400] sm:$0xff]  }
  0x66   :  { %5223 = vmatprep.subr.bf16.mxu1 %v5760_v7  ;;  %v5865_v0 = vld [vmem:[%s7452_s1 + $0x620] sm:$0xff]  }
  0x67   :  { %5202 = vmatpush3.bf16.msra.mxu0 %v5759_v5  ;;  %v5815_v5 = vld [vmem:[%s7452_s1 + $0x440] sm:$0xff]   ;;  %v962_v7 = vrot.slane %v940_v3, %v6224_v41  ;;  %v5868_v3 = vld [vmem:[%s7452_s1 + $0x658] sm:$0xff]  }
  0x68   :  { %5203 = vmatprep.subr.bf16.mxu0 %v5762_v9  ;;  %v5817_v9 = vld [vmem:[%s7452_s1 + $0x4c0] sm:$0xff]  }
  0x69   :  { %5224 = vmatpush3.bf16.msra.mxu1 %v5761_v8  ;;  %v941_v8 = vcombine.high %v6622_v4, %v6622_v4 }
  0x6a   :  { %5225 = vmatprep.subr.bf16.mxu1 %v5764_v11  ;;  %v972_v11 = vcombine.high %v962_v7, %v962_v7 }
  0x6b   :  { %5204 = vmatpush3.bf16.msra.mxu0 %v5763_v10  ;;  %v5818_v10 = vld [vmem:[%s7452_s1 + $0x480] sm:$0xff]  }
  0x6c   :  { %5205 = vmatprep.subr.bf16.mxu0 %v5766_v13  ;;  %v5819_v13 = vld [vmem:[%s7452_s1 + $0x578] sm:$0xff]  }
  0x6d   :  { %5226 = vmatpush3.bf16.msra.mxu1 %v5765_v12  ;;  %v948_v12 = vrot.slane %v932_v63, %v6224_v41  ;;  %v5864_v63 = vld [vmem:[%s7452_s1 + $0x660] sm:$0xff]  }
  0x6e   :  { %5227 = vmatprep.subr.bf16.mxu1 %v5768_v15  ;;  %v969_v15 = vrot.slane %v941_v8, %v6224_v41  ;;  %v5873_v8 = vld [vmem:[%s7452_s1 + $0x610] sm:$0xff]  }
  0x6f   :  { %5206 = vmatpush3.bf16.msra.mxu0 %v5767_v14  ;;  %v5820_v14 = vld [vmem:[%s7452_s1 + $0x538] sm:$0xff]  }
  0x70   :  { %5207 = vmatprep.subr.bf16.mxu0 %v5770_v17  ;;  %v5822_v17 = vld [vmem:[%s7452_s1 + $0x5b8] sm:$0xff]  }
  0x71   :  { %5228 = vmatpush3.bf16.msra.mxu1 %v5769_v16  ;;  %v5821_v16 = vld [vmem:[%s7452_s1 + $0x5f8] sm:$0xff]  }
  0x72   :  { %5229 = vmatprep.subr.bf16.mxu1 %v5772_v19  ;;  %v5823_v19 = vld [vmem:[%s7452_s1 + $0x570] sm:$0xff]  }
  0x73   :  { %5208 = vmatpush3.bf16.msra.mxu0 %v5771_v18  ;;  %v970_v18 = vcombine.high %v948_v12, %v948_v12 }
  0x74   :  { %5209 = vmatprep.subr.bf16.mxu0 %v5774_v21  ;;  %v973_v21 = vcombine.high %v969_v15, %v969_v15 }
  0x75   :  { %5230 = vmatpush3.bf16.msra.mxu1 %v5773_v20  ;;  %v5824_v20 = vld [vmem:[%s7452_s1 + $0x530] sm:$0xff]  }
  0x76   :  { %5231 = vmatprep.subr.bf16.mxu1 %v5776_v23  ;;  %v5826_v23 = vld [vmem:[%s7452_s1 + $0x5b0] sm:$0xff]  }
  0x77   :  { %5210 = vmatpush3.bf16.msra.mxu0 %v5775_v22  ;;  %v5825_v22 = vld [vmem:[%s7452_s1 + $0x5f0] sm:$0xff]  }
  0x78   :  { %5211 = vmatprep.subr.bf16.mxu0 %v5778_v25  ;;  %v5828_v25 = vld [vmem:[%s7452_s1 + $0x528] sm:$0xff]  }
  0x79   :  { %5232 = vmatpush3.bf16.msra.mxu1 %v5777_v24  ;;  %v5827_v24 = vld [vmem:[%s7452_s1 + $0x568] sm:$0xff]  }
  0x7a   :  { %5233 = vmatprep.subr.bf16.mxu1 %v5780_v27  ;;  %v5830_v27 = vld [vmem:[%s7452_s1 + $0x5a8] sm:$0xff]  }
  0x7b   :  { %5212 = vmatpush3.bf16.msra.mxu0 %v5779_v26  ;;  %v5829_v26 = vld [vmem:[%s7452_s1 + $0x5e8] sm:$0xff]  }
  0x7c   :  { %5213 = vmatprep.subr.bf16.mxu0 %v5782_v29  ;;  %v5832_v29 = vld [vmem:[%s7452_s1 + $0x520] sm:$0xff]  }
  0x7d   :  { %5234 = vmatpush3.bf16.msra.mxu1 %v5781_v28  ;;  %v5831_v28 = vld [vmem:[%s7452_s1 + $0x560] sm:$0xff]  }
  0x7e   :  { %5235 = vmatprep.subr.bf16.mxu1 %v5784_v31  ;;  %v5834_v31 = vld [vmem:[%s7452_s1 + $0x5a0] sm:$0xff]  }
  0x7f   :  { %5214 = vmatpush3.bf16.msra.mxu0 %v5783_v30  ;;  %v5833_v30 = vld [vmem:[%s7452_s1 + $0x5e0] sm:$0xff]  }
  0x80   :  { %5243 = vmatprep.subr.bf16.mxu0 %v5787_v34  ;;  %v5837_v34 = vld [vmem:[%s7452_s1 + $0x5d8] sm:$0xff]  }
  0x81   :  { %5236 = vmatpush3.bf16.msra.mxu1 %v5786_v32  ;;  %v5835_v32 = vld [vmem:[%s7452_s1 + $0x558] sm:$0xff]  }
  0x82   :  { %3809 = vmatmul.mubr.bf16.vlgmr.msra.gmra.mxu0 %v906_v33  ;;  %5265 = vmatprep.subr.bf16.mxu1 %v5789_v36  ;;  %v5836_v33 = vld [vmem:[%s7452_s1 + $0x518] sm:$0xff]   ;;  %v5839_v36 = vld [vmem:[%s7452_s1 + $0x550] sm:$0xff]  }
  0x83   :  { %5244 = vmatpush3.bf16.msra.mxu0 %v5788_v35  ;;  %3888 = vmatprep.mubr.bf16.mxu0 %v962_v7  ;;  %v5838_v35 = vld [vmem:[%s7452_s1 + $0x598] sm:$0xff]   ;;  %v5872_v7 = vld [vmem:[%s7452_s1 + $0x650] sm:$0xff]  }
  0x84   :  { %3849 = vmatmul.mubr.bf16.vlgmr.msra.gmra.mxu1 %v922_v38  ;;  %5245 = vmatprep.subr.bf16.mxu0 %v5791_v39  ;;  %v5841_v38 = vld [vmem:[%s7452_s1 + $0x5d0] sm:$0xff]  }
  0x85   :  { %5266 = vmatpush3.bf16.msra.mxu1 %v5790_v37  ;;  %3928 = vmatprep.mubr.bf16.mxu1 %v972_v11  ;;  %v5840_v37 = vld [vmem:[%s7452_s1 + $0x510] sm:$0xff]   ;;  %v5876_v11 = vld [vmem:[%s7452_s1 + $0x648] sm:$0xff]  }
  0x86   :  { %5267 = vmatprep.subr.bf16.mxu1 %v5793_v42  ;;  %v5842_v39 = vld [vmem:[%s7452_s1 + $0x590] sm:$0xff]   ;;  %v5844_v42 = vld [vmem:[%s7452_s1 + $0x508] sm:$0xff]  }
  0x87   :  { %5246 = vmatpush3.bf16.msra.mxu0 %v5792_v40  ;;  %v5843_v40 = vld [vmem:[%s7452_s1 + $0x548] sm:$0xff]  }
  0x88   :  { %5247 = vmatprep.subr.bf16.mxu0 %v5795_v44  ;;  %v5846_v44 = vld [vmem:[%s7452_s1 + $0x588] sm:$0xff]  }
  0x89   :  { %5268 = vmatpush3.bf16.msra.mxu1 %v5794_v43  ;;  %v5845_v43 = vld [vmem:[%s7452_s1 + $0x5c8] sm:$0xff]  }
  0x8a   :  { %5269 = vmatprep.subr.bf16.mxu1 %v5797_v46  ;;  %v5848_v46 = vld [vmem:[%s7452_s1 + $0x500] sm:$0xff]  }
  0x8b   :  { %5248 = vmatpush3.bf16.msra.mxu0 %v5796_v45  ;;  %v5847_v45 = vld [vmem:[%s7452_s1 + $0x540] sm:$0xff]  }
  0x8c   :  { %5249 = vmatprep.subr.bf16.mxu0 %v5799_v48  ;;  %v5851_v48 = vld [vmem:[%s7452_s1 + $0x580] sm:$0xff]  }
  0x8d   :  { %5270 = vmatpush3.bf16.msra.mxu1 %v5798_v47  ;;  %v5849_v47 = vld [vmem:[%s7452_s1 + $0x5c0] sm:$0xff]  }
  0x8e   :  { %5271 = vmatprep.subr.bf16.mxu1 %v5801_v50  ;;  %v5852_v50 = vld [vmem:[%s7452_s1 + $0x678] sm:$0xff]  }
  0x8f   :  { %5250 = vmatpush3.bf16.msra.mxu0 %v5800_v49  ;;  %v955_v49 = vrot.slane %v6622_v4, %v6224_v41  ;;  %v5869_v4 = vld [vmem:[%s7452_s1 + $0x618] sm:$0xff]  }
  0x90   :  { %5251 = vmatprep.subr.bf16.mxu0 %v5803_v52  ;;  %v5854_v52 = vld [vmem:[%s7452_s1 + $0x6f8] sm:$0xff]  }
  0x91   :  { %5272 = vmatpush3.bf16.msra.mxu1 %v5802_v51  ;;  %v5853_v51 = vld [vmem:[%s7452_s1 + $0x638] sm:$0xff]  }
  0x92   :  { %5273 = vmatprep.subr.bf16.mxu1 %v5805_v54  ;;  %v971_v54 = vcombine.high %v955_v49, %v955_v49 }
  0x93   :  { %5252 = vmatpush3.bf16.msra.mxu0 %v5804_v53  ;;  %v5855_v53 = vld [vmem:[%s7452_s1 + $0x6b8] sm:$0xff]  }
  0x94   :  { %5253 = vmatprep.subr.bf16.mxu0 %v5807_v56  ;;  %v5857_v56 = vld [vmem:[%s7452_s1 + $0x630] sm:$0xff]  }
  0x95   :  { %5274 = vmatpush3.bf16.msra.mxu1 %v5806_v55  ;;  %v5856_v55 = vld [vmem:[%s7452_s1 + $0x670] sm:$0xff]  }
  0x96   :  { %5275 = vmatprep.subr.bf16.mxu1 %v5809_v58  ;;  %v5859_v58 = vld [vmem:[%s7452_s1 + $0x6b0] sm:$0xff]  }
  0x97   :  { %5254 = vmatpush3.bf16.msra.mxu0 %v5808_v57  ;;  %v5858_v57 = vld [vmem:[%s7452_s1 + $0x6f0] sm:$0xff]  }
  0x98   :  { %5255 = vmatprep.subr.bf16.mxu0 %v5811_v60  ;;  %v5861_v60 = vld [vmem:[%s7452_s1 + $0x628] sm:$0xff]  }
  0x99   :  { %5276 = vmatpush3.bf16.msra.mxu1 %v5810_v59  ;;  %v5860_v59 = vld [vmem:[%s7452_s1 + $0x668] sm:$0xff]  }
  0x9a   :  { %5277 = vmatprep.subr.bf16.mxu1 %v5813_v1  ;;  %v5866_v1 = vld [vmem:[%s7452_s1 + $0x6e0] sm:$0xff]  }
  0x9b   :  { %5256 = vmatpush3.bf16.msra.mxu0 %v5812_v62  ;;  %v5863_v62 = vld [vmem:[%s7452_s1 + $0x6a8] sm:$0xff]  }
  0x9c   :  { %5257 = vmatprep.subr.bf16.mxu0 %v5815_v5  ;;  %v5870_v5 = vld [vmem:[%s7452_s1 + $0x6d8] sm:$0xff]  }
  0x9d   :  { %5278 = vmatpush3.bf16.msra.mxu1 %v5814_v2  ;;  %v5867_v2 = vld [vmem:[%s7452_s1 + $0x6a0] sm:$0xff]  }
  0x9e   :  { %5279 = vmatprep.subr.bf16.mxu1 %v5817_v9  ;;  %v5874_v9 = vld [vmem:[%s7452_s1 + $0x6d0] sm:$0xff]  }
  0x9f   :  { %5258 = vmatpush3.bf16.msra.mxu0 %v5816_v6  ;;  %v5871_v6 = vld [vmem:[%s7452_s1 + $0x698] sm:$0xff]  }
  0xa0   :  { %5287 = vmatprep.subr.bf16.mxu0 %v5819_v13  ;;  %v5878_v13 = vld [vmem:[%s7452_s1 + $0x6c8] sm:$0xff]  }
  0xa1   :  { %5280 = vmatpush3.bf16.msra.mxu1 %v5818_v10  ;;  %v5875_v10 = vld [vmem:[%s7452_s1 + $0x690] sm:$0xff]  }
  0xa2   :  { %3889 = vmatmul.mubr.bf16.vlgmr.msra.gmra.mxu0 %v948_v12  ;;  %5309 = vmatprep.subr.bf16.mxu1 %v5821_v16  ;;  %v25_v12 = vld [vmem:[%s7451_s0 + $0x18] sm:$0xff]  ;;  %v5877_v16 = vld [vmem:[%s7452_s1 + $0x608] sm:$0xff]  }
  0xa3   :  { %5288 = vmatpush3.bf16.msra.mxu0 %v5820_v14  ;;  %3968 = vmatprep.mubr.bf16.mxu0 %v969_v15  ;;  %v981_v14 = vrot.slane %v25_v12, %v6224_v41  ;;  %v974_v15 = vcombine.high %v25_v12, %v25_v12  ;;  %v5916_v12 = vld [vmem:[%s7452_s1 + $0x780] sm:$0xff]  }
  0xa4   :  { %3929 = vmatmul.mubr.bf16.vlgmr.msra.gmra.mxu1 %v970_v18  ;;  %5289 = vmatprep.subr.bf16.mxu0 %v5823_v19  ;;  %v5880_v18 = vld [vmem:[%s7452_s1 + $0x640] sm:$0xff]  }
  0xa5   :  { %5310 = vmatpush3.bf16.msra.mxu1 %v5822_v17  ;;  %4008 = vmatprep.mubr.bf16.mxu1 %v973_v21  ;;  %v5879_v17 = vld [vmem:[%s7452_s1 + $0x688] sm:$0xff]   ;;  %v989_v19 = vcombine.high %v981_v14, %v981_v14  ;;  %v5881_v21 = vld [vmem:[%s7452_s1 + $0x600] sm:$0xff]  }
  0xa6   :  { %5311 = vmatprep.subr.bf16.mxu1 %v5825_v22  ;;  %v5882_v22 = vld [vmem:[%s7452_s1 + $0x6c0] sm:$0xff]  }
  0xa7   :  { %5290 = vmatpush3.bf16.msra.mxu0 %v5824_v20  ;;  %v6831_v20 = vrot.slane %v974_v15, %v6224_v41  ;;  %v5918_v15 = vld [vmem:[%s7452_s1 + $0x838] sm:$0xff]  }
  0xa8   :  { %5291 = vmatprep.subr.bf16.mxu0 %v5827_v24 }
  0xa9   :  { %5312 = vmatpush3.bf16.msra.mxu1 %v5826_v23  ;;  %v1011_v23 = vrot.slane %v989_v19, %v6224_v41  ;;  %v990_v24 = vcombine.high %v6831_v20, %v6831_v20  ;;  %v5921_v19 = vld [vmem:[%s7452_s1 + $0x870] sm:$0xff]  }
  0xaa   :  { %5313 = vmatprep.subr.bf16.mxu1 %v5829_v26  ;;  %v997_v26 = vrot.slane %v981_v14, %v6224_v41  ;;  %v5917_v14 = vld [vmem:[%s7452_s1 + $0x878] sm:$0xff]  }
  0xab   :  { %5292 = vmatpush3.bf16.msra.mxu0 %v5828_v25  ;;  %v5883_v25 = vld [vmem:[%s7452_s1 + $0x680] sm:$0xff]  }
  0xac   :  { %5293 = vmatprep.subr.bf16.mxu0 %v5831_v28  ;;  %v1021_v28 = vcombine.high %v1011_v23, %v1011_v23 }
  0xad   :  { %5314 = vmatpush3.bf16.msra.mxu1 %v5830_v27  ;;  %v5884_v27 = vld [vmem:[%s7452_s1 + $0x778] sm:$0xff]  }
  0xae   :  { %5315 = vmatprep.subr.bf16.mxu1 %v5833_v30  ;;  %v1018_v30 = vrot.slane %v990_v24, %v6224_v41 }
  0xaf   :  { %5294 = vmatpush3.bf16.msra.mxu0 %v5832_v29  ;;  %v5885_v29 = vld [vmem:[%s7452_s1 + $0x738] sm:$0xff]  }
  0xb0   :  { %5295 = vmatprep.subr.bf16.mxu0 %v5835_v32  ;;  %v5887_v32 = vld [vmem:[%s7452_s1 + $0x7b8] sm:$0xff]  }
  0xb1   :  { %5316 = vmatpush3.bf16.msra.mxu1 %v5834_v31  ;;  %v5886_v31 = vld [vmem:[%s7452_s1 + $0x7f8] sm:$0xff]  }
  0xb2   :  { %5317 = vmatprep.subr.bf16.mxu1 %v5837_v34  ;;  %v5888_v34 = vld [vmem:[%s7452_s1 + $0x770] sm:$0xff]  }
  0xb3   :  { %5296 = vmatpush3.bf16.msra.mxu0 %v5836_v33  ;;  %v1019_v33 = vcombine.high %v997_v26, %v997_v26 }
  0xb4   :  { %5297 = vmatprep.subr.bf16.mxu0 %v5839_v36  ;;  %v1022_v36 = vcombine.high %v1018_v30, %v1018_v30 }
  0xb5   :  { %5318 = vmatpush3.bf16.msra.mxu1 %v5838_v35  ;;  %v5889_v35 = vld [vmem:[%s7452_s1 + $0x730] sm:$0xff]  }
  0xb6   :  { %5319 = vmatprep.subr.bf16.mxu1 %v5841_v38  ;;  %v4664_v38 = vld [vmem:[%s7453_s2] ss:$0 sm:$0xff] }
  0xb7   :  { %5298 = vmatpush3.bf16.msra.mxu0 %v5840_v37 }
  0xb8   :  { %5299 = vmatprep.subr.bf16.mxu0 %v5843_v40  ;;  %v5891_v40 = vld [vmem:[%s7452_s1 + $0x7b0] sm:$0xff]  }
  0xb9   :  { %5320 = vmatpush3.bf16.msra.mxu1 %v5842_v39  ;;  %v5890_v39 = vld [vmem:[%s7452_s1 + $0x7f0] sm:$0xff]  }
  0xba   :  { %5321 = vmatprep.subr.bf16.mxu1 %v5845_v43 }
  0xbb   :  { %5300 = vmatpush3.bf16.msra.mxu0 %v5844_v42 }
  0xbc   :  { %5301 = vmatprep.subr.bf16.mxu0 %v5847_v45 }
  0xbd   :  { %5322 = vmatpush3.bf16.msra.mxu1 %v5846_v44  ;;  %v5892_v44 = vld [vmem:[%s7452_s1 + $0x768] sm:$0xff]  }
  0xbe   :  { %5323 = vmatprep.subr.bf16.mxu1 %v5849_v47 }
  0xbf   :  { %5302 = vmatpush3.bf16.msra.mxu0 %v5848_v46  ;;  %v5893_v46 = vld [vmem:[%s7452_s1 + $0x728] sm:$0xff]  }
  0xc0   :  { %5331 = vmatprep.subr.bf16.mxu0 %v5852_v50 }
  0xc1   :  { %5324 = vmatpush3.bf16.msra.mxu1 %v5851_v48 }
  0xc2   :  { %3969 = vmatmul.mubr.bf16.vlgmr.msra.gmra.mxu0 %v955_v49  ;;  %5353 = vmatprep.subr.bf16.mxu1 %v5854_v52  ;;  %v5894_v49 = vld [vmem:[%s7452_s1 + $0x7e8] sm:$0xff]  }
  0xc3   :  { %5332 = vmatpush3.bf16.msra.mxu0 %v5853_v51  ;;  %4048 = vmatprep.mubr.bf16.mxu0 %v1011_v23  ;;  %v5895_v52 = vld [vmem:[%s7452_s1 + $0x7a8] sm:$0xff]   ;;  %v5924_v23 = vld [vmem:[%s7452_s1 + $0x8b0] sm:$0xff]  }
  0xc4   :  { %4009 = vmatmul.mubr.bf16.vlgmr.msra.gmra.mxu1 %v971_v54  ;;  %5333 = vmatprep.subr.bf16.mxu0 %v5856_v55  ;;  %v5896_v54 = vld [vmem:[%s7452_s1 + $0x760] sm:$0xff]  }
  0xc5   :  { %5354 = vmatpush3.bf16.msra.mxu1 %v5855_v53  ;;  %4088 = vmatprep.mubr.bf16.mxu1 %v1021_v28  ;;  %v5926_v28 = vld [vmem:[%s7452_s1 + $0x828] sm:$0xff]  }
  0xc6   :  { %5355 = vmatprep.subr.bf16.mxu1 %v5858_v57  ;;  %v5897_v57 = vld [vmem:[%s7452_s1 + $0x720] sm:$0xff]  }
  0xc7   :  { %5334 = vmatpush3.bf16.msra.mxu0 %v5857_v56 }
  0xc8   :  { %5335 = vmatprep.subr.bf16.mxu0 %v5860_v59 }
  0xc9   :  { %5356 = vmatpush3.bf16.msra.mxu1 %v5859_v58  ;;  %v5898_v58 = vld [vmem:[%s7452_s1 + $0x7e0] sm:$0xff]  }
  0xca   :  { %5357 = vmatprep.subr.bf16.mxu1 %v5862_v61  ;;  %v5900_v61 = vld [vmem:[%s7452_s1 + $0x758] sm:$0xff]  }
  0xcb   :  { %5336 = vmatpush3.bf16.msra.mxu0 %v5861_v60  ;;  %v5899_v60 = vld [vmem:[%s7452_s1 + $0x7a0] sm:$0xff]  }
  0xcc   :  { %5337 = vmatprep.subr.bf16.mxu0 %v5864_v63  ;;  %v5902_v63 = vld [vmem:[%s7452_s1 + $0x7d8] sm:$0xff]  }
  0xcd   :  { %5358 = vmatpush3.bf16.msra.mxu1 %v5863_v62  ;;  %v5901_v62 = vld [vmem:[%s7452_s1 + $0x718] sm:$0xff]  }
  0xce   :  { %5359 = vmatprep.subr.bf16.mxu1 %v5866_v1  ;;  %v5904_v1 = vld [vmem:[%s7452_s1 + $0x750] sm:$0xff]  }
  0xcf   :  { %5338 = vmatpush3.bf16.msra.mxu0 %v5865_v0  ;;  %v5903_v0 = vld [vmem:[%s7452_s1 + $0x798] sm:$0xff]  }
  0xd0   :  { %5339 = vmatprep.subr.bf16.mxu0 %v5868_v3  ;;  %v5906_v3 = vld [vmem:[%s7452_s1 + $0x7d0] sm:$0xff]  }
  0xd1   :  { %5360 = vmatpush3.bf16.msra.mxu1 %v5867_v2  ;;  %v5905_v2 = vld [vmem:[%s7452_s1 + $0x710] sm:$0xff]  }
  0xd2   :  { %5361 = vmatprep.subr.bf16.mxu1 %v5870_v5  ;;  %v5908_v5 = vld [vmem:[%s7452_s1 + $0x748] sm:$0xff]  }
  0xd3   :  { %5340 = vmatpush3.bf16.msra.mxu0 %v5869_v4  ;;  %v5907_v4 = vld [vmem:[%s7452_s1 + $0x790] sm:$0xff]  }
  0xd4   :  { %5341 = vmatprep.subr.bf16.mxu0 %v5872_v7  ;;  %v5910_v7 = vld [vmem:[%s7452_s1 + $0x7c8] sm:$0xff]  }
  0xd5   :  { %5362 = vmatpush3.bf16.msra.mxu1 %v5871_v6  ;;  %v5909_v6 = vld [vmem:[%s7452_s1 + $0x708] sm:$0xff]  }
  0xd6   :  { %5363 = vmatprep.subr.bf16.mxu1 %v5874_v9  ;;  %v5912_v9 = vld [vmem:[%s7452_s1 + $0x740] sm:$0xff]  }
  0xd7   :  { %5342 = vmatpush3.bf16.msra.mxu0 %v5873_v8  ;;  %v5911_v8 = vld [vmem:[%s7452_s1 + $0x788] sm:$0xff]  }
  0xd8   :  { %5343 = vmatprep.subr.bf16.mxu0 %v5876_v11  ;;  %v5914_v11 = vld [vmem:[%s7452_s1 + $0x7c0] sm:$0xff]  }
  0xd9   :  { %5364 = vmatpush3.bf16.msra.mxu1 %v5875_v10  ;;  %v5913_v10 = vld [vmem:[%s7452_s1 + $0x700] sm:$0xff]  }
  0xda   :  { %5365 = vmatprep.subr.bf16.mxu1 %v5878_v13  ;;  %v1004_v13 = vrot.slane %v6831_v20, %v6224_v41  ;;  %v5922_v20 = vld [vmem:[%s7452_s1 + $0x830] sm:$0xff]  }
  0xdb   :  { %5344 = vmatpush3.bf16.msra.mxu0 %v5877_v16  ;;  %v5919_v16 = vld [vmem:[%s7452_s1 + $0x8f8] sm:$0xff]  }
  0xdc   :  { %5345 = vmatprep.subr.bf16.mxu0 %v5880_v18  ;;  %v1020_v18 = vcombine.high %v1004_v13, %v1004_v13 }
  0xdd   :  { %5366 = vmatpush3.bf16.msra.mxu1 %v5879_v17  ;;  %v5920_v17 = vld [vmem:[%s7452_s1 + $0x8b8] sm:$0xff]  }
  0xde   :  { %5367 = vmatprep.subr.bf16.mxu1 %v5882_v22  ;;  %v5923_v22 = vld [vmem:[%s7452_s1 + $0x8f0] sm:$0xff]  }
  0xdf   :  { %5346 = vmatpush3.bf16.msra.mxu0 %v5881_v21 }
  0xe0   :  { %5375 = vmatprep.subr.bf16.mxu0 %v5884_v27 }
  0xe1   :  { %5368 = vmatpush3.bf16.msra.mxu1 %v5883_v25 }
  0xe2   :  { %v5083_v37 = vpop.f32.mrf.mxu0  ;;  %4049 = vmatmul.mubr.bf16.vlgmr.msra.gmra.mxu0 %v997_v26  ;;  %5397 = vmatprep.subr.bf16.mxu1 %v5886_v31  ;;  %v5925_v26 = vld [vmem:[%s7452_s1 + $0x868] sm:$0xff]  }
  0xe3   :  { %5376 = vmatpush3.bf16.msra.mxu0 %v5885_v29  ;;  %4128 = vmatprep.mubr.bf16.mxu0 %v1018_v30  ;;  %v5927_v31 = vld [vmem:[%s7452_s1 + $0x8e8] sm:$0xff]  }
  0xe4   :  { %v5084_v42 = vpop.f32.mrf.mxu0  ;;  %v5105_v43 = vpop.f32.mrf.mxu1  ;;  %4089 = vmatmul.mubr.bf16.vlgmr.msra.gmra.mxu1 %v1019_v33  ;;  %5377 = vmatprep.subr.bf16.mxu0 %v5888_v34  ;;  %v5928_v34 = vld [vmem:[%s7452_s1 + $0x8a8] sm:$0xff]  }
  0xe5   :  { %v5085_v45 = vadd.f32 %v5084_v42, %v5083_v37  ;;  %5398 = vmatpush3.bf16.msra.mxu1 %v5887_v32  ;;  %4168 = vmatprep.mubr.bf16.mxu1 %v1022_v36  ;;  %v5929_v36 = vld [vmem:[%s7452_s1 + $0x860] sm:$0xff]  }
  0xe6   :  { %v5086_v47 = vpop.f32.mrf.mxu0  ;;  %v5106_v48 = vpop.f32.mrf.mxu1  ;;  %5399 = vmatprep.subr.bf16.mxu1 %v5890_v39  ;;  %v5930_v39 = vld [vmem:[%s7452_s1 + $0x820] sm:$0xff]  }
  0xe7   :  { %v3571_v50 = vadd.f32 %v5085_v45, %v4664_v38  ;;  %v5107_v51 = vadd.f32 %v5106_v48, %v5105_v43  ;;  %5378 = vmatpush3.bf16.msra.mxu0 %v5889_v35  ;;  %v5932_v43 = vld [vmem:[%s7452_s1 + $0x8a0] sm:$0xff]   ;;  %v5934_v45 = vld [vmem:[%s7452_s1 + $0x818] sm:$0xff]   ;;  %v5937_v48 = vld [vmem:[%s7452_s1 + $0x850] sm:$0xff]  }
  0xe8   :  { %v5087_v53 = vpop.f32.mrf.mxu0  ;;  %5379 = vmatprep.subr.bf16.mxu0 %v5892_v44  ;;  %v5108_v55 = vpop.f32.mrf.mxu1  ;;  %v5933_v44 = vld [vmem:[%s7452_s1 + $0x858] sm:$0xff]  }
  0xe9   :  { %v6889_v56 = vadd.f32 %v5107_v51, %v3571_v50  ;;  %5400 = vmatpush3.bf16.msra.mxu1 %v5891_v40  ;;  %v5931_v40 = vld [vmem:[%s7452_s1 + $0x8e0] sm:$0xff]   ;;  %v5936_v47 = vld [vmem:[%s7452_s1 + $0x898] sm:$0xff]   ;;  %v5939_v50 = vld [vmem:[%s7452_s1 + $0x8d0] sm:$0xff]  }
  0xea   :  { %5401 = vmatprep.subr.bf16.mxu1 %v5894_v49  ;;  %v5109_v59 = vpop.f32.mrf.mxu1  ;;  %v5938_v49 = vld [vmem:[%s7452_s1 + $0x810] sm:$0xff]   ;;  %v5942_v53 = vld [vmem:[%s7452_s1 + $0x808] sm:$0xff]  }
  0xeb   :  { %5380 = vmatpush3.bf16.msra.mxu0 %v5893_v46  ;;  %v5935_v46 = vld [vmem:[%s7452_s1 + $0x8d8] sm:$0xff]   ;;  %v5940_v51 = vld [vmem:[%s7452_s1 + $0x890] sm:$0xff]   ;;  %v5943_v55 = vld [vmem:[%s7452_s1 + $0x8c8] sm:$0xff]  }
  0xec   :  { %5381 = vmatprep.subr.bf16.mxu0 %v5896_v54  ;;  %v26_v54 = vld [vmem:[%s7451_s0 + $0x20] sm:$0xff] }
  0xed   :  { %5402 = vmatpush3.bf16.msra.mxu1 %v5895_v52  ;;  %v5941_v52 = vld [vmem:[%s7452_s1 + $0x848] sm:$0xff]   ;;  %v5945_v59 = vld [vmem:[%s7452_s1 + $0x840] sm:$0xff]  }
  0xee   :  { %5403 = vmatprep.subr.bf16.mxu1 %v5898_v58  ;;  %v5944_v58 = vld [vmem:[%s7452_s1 + $0x888] sm:$0xff]  }
  0xef   :  { %5382 = vmatpush3.bf16.msra.mxu0 %v5897_v57  ;;  %v1023_v57 = vcombine.high %v26_v54, %v26_v54 }
  0xf0   :  { %5383 = vmatprep.subr.bf16.mxu0 %v5900_v61 }
  0xf1   :  { %5404 = vmatpush3.bf16.msra.mxu1 %v5899_v60  ;;  %v7045_v61 = vrot.slane %v1023_v57, %v6224_v41  ;;  %v5985_v57 = vld [vmem:[%s7452_s1 + $0xab8] sm:$0xff]  }
  0xf2   :  { %5405 = vmatprep.subr.bf16.mxu1 %v5902_v63  ;;  %v5947_v63 = vld [vmem:[%s7452_s1 + $0x8c0] sm:$0xff]  }
  0xf3   :  { %5384 = vmatpush3.bf16.msra.mxu0 %v5901_v62  ;;  %v5946_v62 = vld [vmem:[%s7452_s1 + $0x800] sm:$0xff]  }
  0xf4   :  { %5385 = vmatprep.subr.bf16.mxu0 %v5904_v1  ;;  %v1039_v1 = vcombine.high %v7045_v61, %v7045_v61 }
  0xf5   :  { %5406 = vmatpush3.bf16.msra.mxu1 %v5903_v0 }
  0xf6   :  { %5407 = vmatprep.subr.bf16.mxu1 %v5906_v3 }
  0xf7   :  { %5386 = vmatpush3.bf16.msra.mxu0 %v5905_v2  ;;  %v5948_v2 = vld [vmem:[%s7452_s1 + $0x880] sm:$0xff]  }
  0xf8   :  { %5387 = vmatprep.subr.bf16.mxu0 %v5908_v5 }
  0xf9   :  { %5408 = vmatpush3.bf16.msra.mxu1 %v5907_v4  ;;  %v5949_v4 = vld [vmem:[%s7452_s1 + $0x978] sm:$0xff]  }
  0xfa   :  { %5409 = vmatprep.subr.bf16.mxu1 %v5910_v7  ;;  %v1067_v7 = vrot.slane %v1039_v1, %v6224_v41 }
  0xfb   :  { %5388 = vmatpush3.bf16.msra.mxu0 %v5909_v6  ;;  %v5950_v6 = vld [vmem:[%s7452_s1 + $0x938] sm:$0xff]  }
  0xfc   :  { %5389 = vmatprep.subr.bf16.mxu0 %v5912_v9  ;;  %v5952_v9 = vld [vmem:[%s7452_s1 + $0x9b8] sm:$0xff]  }
  0xfd   :  { %5410 = vmatpush3.bf16.msra.mxu1 %v5911_v8  ;;  %v5951_v8 = vld [vmem:[%s7452_s1 + $0x9f8] sm:$0xff]  }
  0xfe   :  { %5411 = vmatprep.subr.bf16.mxu1 %v5914_v11  ;;  %v5953_v11 = vld [vmem:[%s7452_s1 + $0x970] sm:$0xff]  }
  0xff   :  { %5390 = vmatpush3.bf16.msra.mxu0 %v5913_v10 }
 0x100   :  { %5419 = vmatprep.subr.bf16.mxu0 %v5917_v14 }
 0x101   :  { %5412 = vmatpush3.bf16.msra.mxu1 %v5916_v12  ;;  %v5954_v12 = vld [vmem:[%s7452_s1 + $0x930] sm:$0xff]  }
 0x102   :  { %v5127_v21 = vpop.f32.mrf.mxu0  ;;  %4129 = vmatmul.mubr.bf16.vlgmr.msra.gmra.mxu0 %v1004_v13  ;;  %5441 = vmatprep.subr.bf16.mxu1 %v5919_v16  ;;  %v1071_v13 = vcombine.high %v1067_v7, %v1067_v7  ;;  %v5956_v16 = vld [vmem:[%s7452_s1 + $0x9b0] sm:$0xff]  }
 0x103   :  { %5420 = vmatpush3.bf16.msra.mxu0 %v5918_v15  ;;  %v5955_v15 = vld [vmem:[%s7452_s1 + $0x9f0] sm:$0xff]  }
 0x104   :  { %v5128_v24 = vpop.f32.mrf.mxu0  ;;  %v5149_v25 = vpop.f32.mrf.mxu1  ;;  %4169 = vmatmul.mubr.bf16.vlgmr.msra.gmra.mxu1 %v1020_v18  ;;  %5421 = vmatprep.subr.bf16.mxu0 %v5921_v19  ;;  %v5957_v19 = vld [vmem:[%s7452_s1 + $0x968] sm:$0xff]  }
 0x105   :  { %v5129_v27 = vadd.f32 %v5128_v24, %v5127_v21  ;;  %5442 = vmatpush3.bf16.msra.mxu1 %v5920_v17  ;;  %v5958_v21 = vld [vmem:[%s7452_s1 + $0x928] sm:$0xff]  }
 0x106   :  { %v5130_v29 = vpop.f32.mrf.mxu0  ;;  %v5150_v30 = vpop.f32.mrf.mxu1  ;;  %5443 = vmatprep.subr.bf16.mxu1 %v5923_v22  ;;  %v5959_v24 = vld [vmem:[%s7452_s1 + $0x9e8] sm:$0xff]  }
 0x107   :  { %v3651_v32 = vadd.f32 %v5129_v27, %v6889_v56  ;;  %v5151_v33 = vadd.f32 %v5150_v30, %v5149_v25  ;;  %5422 = vmatpush3.bf16.msra.mxu0 %v5922_v20  ;;  %v1030_v56 = vrot.slane %v26_v54, %v6224_v41  ;;  %v5960_v27 = vld [vmem:[%s7452_s1 + $0x9a8] sm:$0xff]   ;;  %v5961_v29 = vld [vmem:[%s7452_s1 + $0x960] sm:$0xff]   ;;  %v5982_v54 = vld [vmem:[%s7452_s1 + $0xa78] sm:$0xff]  }
 0x108   :  { %v5131_v35 = vpop.f32.mrf.mxu0  ;;  %5423 = vmatprep.subr.bf16.mxu0 %v5925_v26  ;;  %v5152_v37 = vpop.f32.mrf.mxu1 }
 0x109   :  { %v6990_v38 = vadd.f32 %v5151_v33, %v3651_v32  ;;  %5444 = vmatpush3.bf16.msra.mxu1 %v5924_v23  ;;  %v1038_v60 = vcombine.high %v1030_v56, %v1030_v56  ;;  %v1046_v3 = vrot.slane %v1030_v56, %v6224_v41  ;;  %v5962_v32 = vld [vmem:[%s7452_s1 + $0x920] sm:$0xff]   ;;  %v5966_v37 = vld [vmem:[%s7452_s1 + $0x918] sm:$0xff]  }
 0x10a   :  { %5445 = vmatprep.subr.bf16.mxu1 %v5927_v31  ;;  %v5153_v42 = vpop.f32.mrf.mxu1  ;;  %v5963_v33 = vld [vmem:[%s7452_s1 + $0x9e0] sm:$0xff]   ;;  %v5984_v56 = vld [vmem:[%s7452_s1 + $0xaf8] sm:$0xff]  }
 0x10b   :  { %5424 = vmatpush3.bf16.msra.mxu0 %v5926_v28  ;;  %v1060_v0 = vrot.slane %v1038_v60, %v6224_v41  ;;  %v1068_v10 = vcombine.high %v1046_v3, %v1046_v3  ;;  %v5964_v35 = vld [vmem:[%s7452_s1 + $0x9a0] sm:$0xff]   ;;  %v5970_v42 = vld [vmem:[%s7452_s1 + $0x910] sm:$0xff]  }
 0x10c   :  { %5425 = vmatprep.subr.bf16.mxu0 %v5929_v36  ;;  %v5965_v36 = vld [vmem:[%s7452_s1 + $0x958] sm:$0xff]   ;;  %v5987_v60 = vld [vmem:[%s7452_s1 + $0xa30] sm:$0xff]  }
 0x10d   :  { %5446 = vmatpush3.bf16.msra.mxu1 %v5928_v34  ;;  %4208 = vmatprep.mubr.bf16.mxu0 %v1060_v0  ;;  %v1070_v5 = vcombine.high %v1060_v0, %v1060_v0 }
 0x10e   :  { %5447 = vmatprep.subr.bf16.mxu1 %v5931_v40  ;;  %v5969_v40 = vld [vmem:[%s7452_s1 + $0x950] sm:$0xff]  }
 0x10f   :  { %5426 = vmatpush3.bf16.msra.mxu0 %v5930_v39  ;;  %4248 = vmatprep.mubr.bf16.mxu1 %v1070_v5  ;;  %v5968_v39 = vld [vmem:[%s7452_s1 + $0x998] sm:$0xff]  }
 0x110   :  { %5427 = vmatprep.subr.bf16.mxu0 %v5933_v44  ;;  %v5972_v44 = vld [vmem:[%s7452_s1 + $0x990] sm:$0xff]  }
 0x111   :  { %5448 = vmatpush3.bf16.msra.mxu1 %v5932_v43  ;;  %v5971_v43 = vld [vmem:[%s7452_s1 + $0x9d0] sm:$0xff]  }
 0x112   :  { %5449 = vmatprep.subr.bf16.mxu1 %v5935_v46  ;;  %v5974_v46 = vld [vmem:[%s7452_s1 + $0x908] sm:$0xff]  }
 0x113   :  { %5428 = vmatpush3.bf16.msra.mxu0 %v5934_v45  ;;  %v5973_v45 = vld [vmem:[%s7452_s1 + $0x948] sm:$0xff]  }
 0x114   :  { %5429 = vmatprep.subr.bf16.mxu0 %v5937_v48  ;;  %v5976_v48 = vld [vmem:[%s7452_s1 + $0x988] sm:$0xff]  }
 0x115   :  { %5450 = vmatpush3.bf16.msra.mxu1 %v5936_v47  ;;  %v5975_v47 = vld [vmem:[%s7452_s1 + $0x9c8] sm:$0xff]  }
 0x116   :  { %5451 = vmatprep.subr.bf16.mxu1 %v5939_v50  ;;  %v5978_v50 = vld [vmem:[%s7452_s1 + $0x900] sm:$0xff]  }
 0x117   :  { %5430 = vmatpush3.bf16.msra.mxu0 %v5938_v49  ;;  %v5977_v49 = vld [vmem:[%s7452_s1 + $0x940] sm:$0xff]  }
 0x118   :  { %5431 = vmatprep.subr.bf16.mxu0 %v5941_v52  ;;  %v5981_v52 = vld [vmem:[%s7452_s1 + $0x980] sm:$0xff]  }
 0x119   :  { %5452 = vmatpush3.bf16.msra.mxu1 %v5940_v51  ;;  %v5979_v51 = vld [vmem:[%s7452_s1 + $0x9c0] sm:$0xff]  }
 0x11a   :  { %5453 = vmatprep.subr.bf16.mxu1 %v5943_v55  ;;  %v5983_v55 = vld [vmem:[%s7452_s1 + $0xa38] sm:$0xff]  }
 0x11b   :  { %5432 = vmatpush3.bf16.msra.mxu0 %v5942_v53  ;;  %v1053_v53 = vrot.slane %v7045_v61, %v6224_v41 }
 0x11c   :  { %5433 = vmatprep.subr.bf16.mxu0 %v5945_v59  ;;  %v5986_v59 = vld [vmem:[%s7452_s1 + $0xa70] sm:$0xff]  }
 0x11d   :  { %5454 = vmatpush3.bf16.msra.mxu1 %v5944_v58  ;;  %v1069_v58 = vcombine.high %v1053_v53, %v1053_v53 }
 0x11e   :  { %5455 = vmatprep.subr.bf16.mxu1 %v5947_v63  ;;  %v5989_v63 = vld [vmem:[%s7452_s1 + $0xab0] sm:$0xff]  }
 0x11f   :  { %5434 = vmatpush3.bf16.msra.mxu0 %v5946_v62  ;;  %v5988_v62 = vld [vmem:[%s7452_s1 + $0xaf0] sm:$0xff]  }
 0x120   :  { %5463 = vmatprep.subr.bf16.mxu0 %v5949_v4  ;;  %v5991_v4 = vld [vmem:[%s7452_s1 + $0xa28] sm:$0xff]  }
 0x121   :  { %5456 = vmatpush3.bf16.msra.mxu1 %v5948_v2  ;;  %v5990_v2 = vld [vmem:[%s7452_s1 + $0xa68] sm:$0xff]  }
 0x122   :  { %v5171_v14 = vpop.f32.mrf.mxu0  ;;  %4209 = vmatmul.mubr.bf16.vlgmr.msra.gmra.mxu0 %v1046_v3  ;;  %5485 = vmatprep.subr.bf16.mxu1 %v5951_v8 }
 0x123   :  { %5464 = vmatpush3.bf16.msra.mxu0 %v5950_v6  ;;  %4288 = vmatprep.mubr.bf16.mxu0 %v1067_v7  ;;  %v5992_v7 = vld [vmem:[%s7452_s1 + $0xae8] sm:$0xff]  }
 0x124   :  { %v5172_v17 = vpop.f32.mrf.mxu0  ;;  %v5193_v18 = vpop.f32.mrf.mxu1  ;;  %4249 = vmatmul.mubr.bf16.vlgmr.msra.gmra.mxu1 %v1068_v10  ;;  %5465 = vmatprep.subr.bf16.mxu0 %v5953_v11  ;;  %v5993_v10 = vld [vmem:[%s7452_s1 + $0xaa8] sm:$0xff]  }
 0x125   :  { %v5173_v20 = vadd.f32 %v5172_v17, %v5171_v14  ;;  %5486 = vmatpush3.bf16.msra.mxu1 %v5952_v9  ;;  %4328 = vmatprep.mubr.bf16.mxu1 %v1071_v13 }
 0x126   :  { %v5174_v22 = vpop.f32.mrf.mxu0  ;;  %v5194_v23 = vpop.f32.mrf.mxu1  ;;  %5487 = vmatprep.subr.bf16.mxu1 %v5955_v15  ;;  %v5995_v15 = vld [vmem:[%s7452_s1 + $0xa20] sm:$0xff]  }
 0x127   :  { %v3731_v25 = vadd.f32 %v5173_v20, %v6990_v38  ;;  %v5195_v26 = vadd.f32 %v5194_v23, %v5193_v18  ;;  %5466 = vmatpush3.bf16.msra.mxu0 %v5954_v12  ;;  %v5967_v38 = vld [vmem:[%s7452_s1 + $0x9d8] sm:$0xff]   ;;  %v5994_v12 = vld [vmem:[%s7452_s1 + $0xa60] sm:$0xff]   ;;  %v6002_v23 = vld [vmem:[%s7452_s1 + $0xa50] sm:$0xff]  }
 0x128   :  { %v5175_v28 = vpop.f32.mrf.mxu0  ;;  %5467 = vmatprep.subr.bf16.mxu0 %v5957_v19  ;;  %v5196_v30 = vpop.f32.mrf.mxu1  ;;  %v5997_v18 = vld [vmem:[%s7452_s1 + $0xaa0] sm:$0xff]   ;;  %v5998_v19 = vld [vmem:[%s7452_s1 + $0xa58] sm:$0xff]  }
 0x129   :  { %v7101_v31 = vadd.f32 %v5195_v26, %v3731_v25  ;;  %5488 = vmatpush3.bf16.msra.mxu1 %v5956_v16  ;;  %v5996_v16 = vld [vmem:[%s7452_s1 + $0xae0] sm:$0xff]   ;;  %v5999_v20 = vld [vmem:[%s7452_s1 + $0xa18] sm:$0xff]   ;;  %v6004_v25 = vld [vmem:[%s7452_s1 + $0xad0] sm:$0xff]  }
 0x12a   :  { %5489 = vmatprep.subr.bf16.mxu1 %v5959_v24  ;;  %v5197_v34 = vpop.f32.mrf.mxu1  ;;  %v6001_v22 = vld [vmem:[%s7452_s1 + $0xa98] sm:$0xff]   ;;  %v6003_v24 = vld [vmem:[%s7452_s1 + $0xa10] sm:$0xff]   ;;  %v6008_v28 = vld [vmem:[%s7452_s1 + $0xac8] sm:$0xff]  }
 0x12b   :  { %5468 = vmatpush3.bf16.msra.mxu0 %v5958_v21  ;;  %v6000_v21 = vld [vmem:[%s7452_s1 + $0xad8] sm:$0xff]   ;;  %v6005_v26 = vld [vmem:[%s7452_s1 + $0xa90] sm:$0xff]   ;;  %v6007_v30 = vld [vmem:[%s7452_s1 + $0xa08] sm:$0xff]  }
 0x12c   :  { %5469 = vmatprep.subr.bf16.mxu0 %v5961_v29  ;;  %v27_v29 = vld [vmem:[%s7451_s0 + $0x28] sm:$0xff] }
 0x12d   :  { %5490 = vmatpush3.bf16.msra.mxu1 %v5960_v27  ;;  %v6006_v27 = vld [vmem:[%s7452_s1 + $0xa48] sm:$0xff]  }
 0x12e   :  { %5491 = vmatprep.subr.bf16.mxu1 %v5963_v33  ;;  %v6010_v33 = vld [vmem:[%s7452_s1 + $0xa40] sm:$0xff]   ;;  %v6009_v34 = vld [vmem:[%s7452_s1 + $0xa88] sm:$0xff]  }
 0x12f   :  { %5470 = vmatpush3.bf16.msra.mxu0 %v5962_v32  ;;  %v1072_v32 = vcombine.high %v27_v29, %v27_v29 }
 0x130   :  { %5471 = vmatprep.subr.bf16.mxu0 %v5965_v36 }
 0x131   :  { %5492 = vmatpush3.bf16.msra.mxu1 %v5964_v35  ;;  %v7257_v36 = vrot.slane %v1072_v32, %v6224_v41  ;;  %v6048_v32 = vld [vmem:[%s7452_s1 + $0xc30] sm:$0xff]  }
 0x132   :  { %5493 = vmatprep.subr.bf16.mxu1 %v5967_v38  ;;  %v6011_v38 = vld [vmem:[%s7452_s1 + $0xa00] sm:$0xff]  }
 0x133   :  { %5472 = vmatpush3.bf16.msra.mxu0 %v5966_v37  ;;  %v6012_v37 = vld [vmem:[%s7452_s1 + $0xac0] sm:$0xff]  }
 0x134   :  { %5473 = vmatprep.subr.bf16.mxu0 %v5969_v40  ;;  %v1088_v40 = vcombine.high %v7257_v36, %v7257_v36 }
 0x135   :  { %5494 = vmatpush3.bf16.msra.mxu1 %v5968_v39 }
 0x136   :  { %5495 = vmatprep.subr.bf16.mxu1 %v5971_v43  ;;  %v6014_v43 = vld [vmem:[%s7452_s1 + $0xb78] sm:$0xff]  }
 0x137   :  { %5474 = vmatpush3.bf16.msra.mxu0 %v5970_v42 }
 0x138   :  { %5475 = vmatprep.subr.bf16.mxu0 %v5973_v45 }
 0x139   :  { %5496 = vmatpush3.bf16.msra.mxu1 %v5972_v44  ;;  %v6013_v44 = vld [vmem:[%s7452_s1 + $0xa80] sm:$0xff]  }
 0x13a   :  { %5497 = vmatprep.subr.bf16.mxu1 %v5975_v47  ;;  %v6016_v47 = vld [vmem:[%s7452_s1 + $0xbf8] sm:$0xff]  }
 0x13b   :  { %5476 = vmatpush3.bf16.msra.mxu0 %v5974_v46  ;;  %v1116_v46 = vrot.slane %v1088_v40, %v6224_v41 }
 0x13c   :  { %5477 = vmatprep.subr.bf16.mxu0 %v5977_v49 }
 0x13d   :  { %5498 = vmatpush3.bf16.msra.mxu1 %v5976_v48  ;;  %v6015_v48 = vld [vmem:[%s7452_s1 + $0xb38] sm:$0xff]  }
 0x13e   :  { %5499 = vmatprep.subr.bf16.mxu1 %v5979_v51  ;;  %v6017_v51 = vld [vmem:[%s7452_s1 + $0xbb8] sm:$0xff]  }
 0x13f   :  { %5478 = vmatpush3.bf16.msra.mxu0 %v5978_v50  ;;  %v6018_v50 = vld [vmem:[%s7452_s1 + $0xb70] sm:$0xff]  }
 0x140   :  { %5507 = vmatprep.subr.bf16.mxu0 %v5982_v54  ;;  %v6020_v54 = vld [vmem:[%s7452_s1 + $0xbf0] sm:$0xff]  }
 0x141   :  { %5500 = vmatpush3.bf16.msra.mxu1 %v5981_v52  ;;  %v1120_v52 = vcombine.high %v1116_v46, %v1116_v46 }
 0x142   :  { %v5215_v61 = vpop.f32.mrf.mxu0  ;;  %4289 = vmatmul.mubr.bf16.vlgmr.msra.gmra.mxu0 %v1053_v53  ;;  %5529 = vmatprep.subr.bf16.mxu1 %v5984_v56 }
 0x143   :  { %5508 = vmatpush3.bf16.msra.mxu0 %v5983_v55  ;;  %v6019_v55 = vld [vmem:[%s7452_s1 + $0xb30] sm:$0xff]  }
 0x144   :  { %v5216_v0 = vpop.f32.mrf.mxu0  ;;  %v5237_v1 = vpop.f32.mrf.mxu1  ;;  %4329 = vmatmul.mubr.bf16.vlgmr.msra.gmra.mxu1 %v1069_v58  ;;  %5509 = vmatprep.subr.bf16.mxu0 %v5986_v59  ;;  %v6022_v58 = vld [vmem:[%s7452_s1 + $0xb68] sm:$0xff]  }
 0x145   :  { %v5217_v3 = vadd.f32 %v5216_v0, %v5215_v61  ;;  %5530 = vmatpush3.bf16.msra.mxu1 %v5985_v57 }
 0x146   :  { %v5218_v5 = vpop.f32.mrf.mxu0  ;;  %v5238_v6 = vpop.f32.mrf.mxu1  ;;  %5531 = vmatprep.subr.bf16.mxu1 %v5988_v62 }
 0x147   :  { %v3811_v8 = vadd.f32 %v5217_v3, %v7101_v31  ;;  %v5239_v9 = vadd.f32 %v5238_v6, %v5237_v1  ;;  %5510 = vmatpush3.bf16.msra.mxu0 %v5987_v60  ;;  %v1079_v31 = vrot.slane %v27_v29, %v6224_v41  ;;  %v6021_v60 = vld [vmem:[%s7452_s1 + $0xbb0] sm:$0xff]   ;;  %v6047_v29 = vld [vmem:[%s7452_s1 + $0xc38] sm:$0xff]  }
 0x148   :  { %v5219_v11 = vpop.f32.mrf.mxu0  ;;  %5511 = vmatprep.subr.bf16.mxu0 %v5990_v2  ;;  %v5240_v13 = vpop.f32.mrf.mxu1  ;;  %v6023_v2 = vld [vmem:[%s7452_s1 + $0xb28] sm:$0xff]  }
 0x149   :  { %v7202_v14 = vadd.f32 %v5239_v9, %v3811_v8  ;;  %5532 = vmatpush3.bf16.msra.mxu1 %v5989_v63  ;;  %v1087_v35 = vcombine.high %v1079_v31, %v1079_v31  ;;  %v1095_v42 = vrot.slane %v1079_v31, %v6224_v41  ;;  %v6024_v63 = vld [vmem:[%s7452_s1 + $0xbe8] sm:$0xff]   ;;  %v6028_v8 = vld [vmem:[%s7452_s1 + $0xbe0] sm:$0xff]   ;;  %v6030_v11 = vld [vmem:[%s7452_s1 + $0xb58] sm:$0xff]  }
 0x14a   :  { %5533 = vmatprep.subr.bf16.mxu1 %v5992_v7  ;;  %v5241_v17 = vpop.f32.mrf.mxu1  ;;  %v6025_v7 = vld [vmem:[%s7452_s1 + $0xba8] sm:$0xff]   ;;  %v6032_v13 = vld [vmem:[%s7452_s1 + $0xbd8] sm:$0xff]  }
 0x14b   :  { %5512 = vmatpush3.bf16.msra.mxu0 %v5991_v4  ;;  %v1109_v39 = vrot.slane %v1087_v35, %v6224_v41  ;;  %v1117_v49 = vcombine.high %v1095_v42, %v1095_v42  ;;  %v6026_v4 = vld [vmem:[%s7452_s1 + $0xb60] sm:$0xff]   ;;  %v6036_v17 = vld [vmem:[%s7452_s1 + $0xbd0] sm:$0xff]  }
 0x14c   :  { %5513 = vmatprep.subr.bf16.mxu0 %v5994_v12  ;;  %v6029_v12 = vld [vmem:[%s7452_s1 + $0xba0] sm:$0xff]  }
 0x14d   :  { %5534 = vmatpush3.bf16.msra.mxu1 %v5993_v10  ;;  %4368 = vmatprep.mubr.bf16.mxu0 %v1109_v39  ;;  %v1119_v45 = vcombine.high %v1109_v39, %v1109_v39  ;;  %v6027_v10 = vld [vmem:[%s7452_s1 + $0xb20] sm:$0xff]  }
 0x14e   :  { %5535 = vmatprep.subr.bf16.mxu1 %v5996_v16  ;;  %v6033_v16 = vld [vmem:[%s7452_s1 + $0xb98] sm:$0xff]  }
 0x14f   :  { %5514 = vmatpush3.bf16.msra.mxu0 %v5995_v15  ;;  %4408 = vmatprep.mubr.bf16.mxu1 %v1119_v45  ;;  %v6034_v15 = vld [vmem:[%s7452_s1 + $0xb50] sm:$0xff]  }
 0x150   :  { %5515 = vmatprep.subr.bf16.mxu0 %v5998_v19  ;;  %v6038_v19 = vld [vmem:[%s7452_s1 + $0xb48] sm:$0xff]  }
 0x151   :  { %5536 = vmatpush3.bf16.msra.mxu1 %v5997_v18  ;;  %v6035_v18 = vld [vmem:[%s7452_s1 + $0xb10] sm:$0xff]  }
 0x152   :  { %5537 = vmatprep.subr.bf16.mxu1 %v6000_v21  ;;  %v6040_v21 = vld [vmem:[%s7452_s1 + $0xbc8] sm:$0xff]  }
 0x153   :  { %5516 = vmatpush3.bf16.msra.mxu0 %v5999_v20  ;;  %v6037_v20 = vld [vmem:[%s7452_s1 + $0xb90] sm:$0xff]  }
 0x154   :  { %5517 = vmatprep.subr.bf16.mxu0 %v6002_v23  ;;  %v6042_v23 = vld [vmem:[%s7452_s1 + $0xb40] sm:$0xff]  }
 0x155   :  { %5538 = vmatpush3.bf16.msra.mxu1 %v6001_v22  ;;  %v6039_v22 = vld [vmem:[%s7452_s1 + $0xb08] sm:$0xff]  }
 0x156   :  { %5539 = vmatprep.subr.bf16.mxu1 %v6004_v25  ;;  %v6044_v25 = vld [vmem:[%s7452_s1 + $0xbc0] sm:$0xff]  }
 0x157   :  { %5518 = vmatpush3.bf16.msra.mxu0 %v6003_v24  ;;  %v6041_v24 = vld [vmem:[%s7452_s1 + $0xb88] sm:$0xff]  }
 0x158   :  { %5519 = vmatprep.subr.bf16.mxu0 %v6006_v27  ;;  %v1102_v27 = vrot.slane %v7257_v36, %v6224_v41 }
 0x159   :  { %5540 = vmatpush3.bf16.msra.mxu1 %v6005_v26  ;;  %v6043_v26 = vld [vmem:[%s7452_s1 + $0xb00] sm:$0xff]  }
 0x15a   :  { %5541 = vmatprep.subr.bf16.mxu1 %v6008_v28  ;;  %v6046_v28 = vld [vmem:[%s7452_s1 + $0xb80] sm:$0xff]   ;;  %v1118_v31 = vcombine.high %v1102_v27, %v1102_v27 }
 0x15b   :  { %5520 = vmatpush3.bf16.msra.mxu0 %v6007_v30  ;;  %v6086_v30 = vmov 0.0  }
 0x15c   :  { %5521 = vmatprep.subr.bf16.mxu0 %v6010_v33 }
 0x15d   :  { %5542 = vmatpush3.bf16.msra.mxu1 %v6009_v34 }
 0x15e   :  { %5543 = vmatprep.subr.bf16.mxu1 %v6012_v37 }
 0x15f   :  { %5522 = vmatpush3.bf16.msra.mxu0 %v6011_v38 }
 0x160   :  { %5551 = vmatprep.subr.bf16.mxu0 %v6014_v43 }
 0x161   :  { %5544 = vmatpush3.bf16.msra.mxu1 %v6013_v44 }
 0x162   :  { %v5259_v53 = vpop.f32.mrf.mxu0  ;;  %4369 = vmatmul.mubr.bf16.vlgmr.msra.gmra.mxu0 %v1095_v42  ;;  %5573 = vmatprep.subr.bf16.mxu1 %v6016_v47 }
 0x163   :  { %5552 = vmatpush3.bf16.msra.mxu0 %v6015_v48  ;;  %4448 = vmatprep.mubr.bf16.mxu0 %v1116_v46 }
 0x164   :  { %v5260_v56 = vpop.f32.mrf.mxu0  ;;  %v5281_v57 = vpop.f32.mrf.mxu1  ;;  %4409 = vmatmul.mubr.bf16.vlgmr.msra.gmra.mxu1 %v1117_v49  ;;  %5553 = vmatprep.subr.bf16.mxu0 %v6018_v50 }
 0x165   :  { %v5261_v59 = vadd.f32 %v5260_v56, %v5259_v53  ;;  %5574 = vmatpush3.bf16.msra.mxu1 %v6017_v51  ;;  %4488 = vmatprep.mubr.bf16.mxu1 %v1120_v52 }
 0x166   :  { %v5262_v61 = vpop.f32.mrf.mxu0  ;;  %v5282_v62 = vpop.f32.mrf.mxu1  ;;  %5575 = vmatprep.subr.bf16.mxu1 %v6020_v54 }
 0x167   :  { %v3891_v0 = vadd.f32 %v5261_v59, %v7202_v14  ;;  %v5283_v1 = vadd.f32 %v5282_v62, %v5281_v57  ;;  %5554 = vmatpush3.bf16.msra.mxu0 %v6019_v55  ;;  %v6031_v14 = vld [vmem:[%s7452_s1 + $0xb18] sm:$0xff]  }
 0x168   :  { %v5263_v3 = vpop.f32.mrf.mxu0  ;;  %5555 = vmatprep.subr.bf16.mxu0 %v6022_v58  ;;  %v5284_v5 = vpop.f32.mrf.mxu1 }
 0x169   :  { %v7310_v6 = vadd.f32 %v5283_v1, %v3891_v0  ;;  %5576 = vmatpush3.bf16.msra.mxu1 %v6021_v60 }
 0x16a   :  { %5577 = vmatprep.subr.bf16.mxu1 %v6024_v63  ;;  %v5285_v9 = vpop.f32.mrf.mxu1 }
 0x16b   :  { %5556 = vmatpush3.bf16.msra.mxu0 %v6023_v2 }
 0x16c   :  { %5557 = vmatprep.subr.bf16.mxu0 %v6026_v4 }
 0x16d   :  { %5578 = vmatpush3.bf16.msra.mxu1 %v6025_v7 }
 0x16e   :  { %5579 = vmatprep.subr.bf16.mxu1 %v6028_v8 }
 0x16f   :  { %5558 = vmatpush3.bf16.msra.mxu0 %v6027_v10 }
 0x170   :  { %5559 = vmatprep.subr.bf16.mxu0 %v6030_v11 }
 0x171   :  { %5580 = vmatpush3.bf16.msra.mxu1 %v6029_v12 }
 0x172   :  { %5581 = vmatprep.subr.bf16.mxu1 %v6032_v13 }
 0x173   :  { %5560 = vmatpush3.bf16.msra.mxu0 %v6031_v14 }
 0x174   :  { %5561 = vmatprep.subr.bf16.mxu0 %v6034_v15 }
 0x175   :  { %5582 = vmatpush3.bf16.msra.mxu1 %v6033_v16 }
 0x176   :  { %5583 = vmatprep.subr.bf16.mxu1 %v6036_v17 }
 0x177   :  { %5562 = vmatpush3.bf16.msra.mxu0 %v6035_v18 }
 0x178   :  { %5563 = vmatprep.subr.bf16.mxu0 %v6038_v19 }
 0x179   :  { %5584 = vmatpush3.bf16.msra.mxu1 %v6037_v20 }
 0x17a   :  { %5585 = vmatprep.subr.bf16.mxu1 %v6040_v21 }
 0x17b   :  { %5564 = vmatpush3.bf16.msra.mxu0 %v6039_v22 }
 0x17c   :  { %5565 = vmatprep.subr.bf16.mxu0 %v6042_v23 }
 0x17d   :  { %5586 = vmatpush3.bf16.msra.mxu1 %v6041_v24 }
 0x17e   :  { %5587 = vmatprep.subr.bf16.mxu1 %v6044_v25 }
 0x17f   :  { %5566 = vmatpush3.bf16.msra.mxu0 %v6043_v26 }
 0x180   :  { %5613 = vmatprep.subr.bf16.mxu0 %v6086_v30 }
 0x181   :  { %5588 = vmatpush3.bf16.msra.mxu1 %v6046_v28 }
 0x182   :  { %v5303_v33 = vpop.f32.mrf.mxu0  ;;  %4449 = vmatmul.mubr.bf16.vlgmr.msra.gmra.mxu0 %v1102_v27  ;;  %5633 = vmatprep.subr.bf16.mxu1 %v6086_v30 }
 0x183   :  { %5614 = vmatpush3.bf16.msra.mxu0 %v6047_v29  ;;  %5629 = vmatprep.mubr.msk.bf16.mxu0 %vm6087_vm0, %v6086_v30 }
 0x184   :  { %v5304_v34 = vpop.f32.mrf.mxu0  ;;  %v5325_v35 = vpop.f32.mrf.mxu1  ;;  %4489 = vmatmul.mubr.bf16.vlgmr.msra.gmra.mxu1 %v1118_v31  ;;  %5615 = vmatprep.subr.bf16.mxu0 %v6086_v30 }
 0x185   :  { %v5305_v36 = vadd.f32 %v5304_v34, %v5303_v33  ;;  %5649 = vmatprep.mubr.msk.bf16.mxu1 %vm6087_vm0, %v6086_v30 }
 0x186   :  { %10 = vsyncpa [#allocation3], 0  ;;  %v5306_v37 = vpop.f32.mrf.mxu0  ;;  %v5326_v38 = vpop.f32.mrf.mxu1  ;;  %v6049_v42 = vld [vmem:[%s7452_s1 + $0xc28] sm:$0xff]   ;;  %v6050_v47 = vld [vmem:[%s7452_s1 + $0xc20] sm:$0xff]   ;;  %s6088_s19 = smov [#allocation2]  }
 0x187   :  { %v3971_v39 = vadd.f32 %v5305_v36, %v7310_v6  ;;  %v5327_v40 = vadd.f32 %v5326_v38, %v5325_v35  ;;  %5616 = vmatpush3.bf16.msra.mxu0 %v6048_v32  ;;  %v6051_v48 = vld [vmem:[%s7452_s1 + $0xc18] sm:$0xff]   ;;  %v6052_v49 = vld [vmem:[%s7452_s1 + $0xc10] sm:$0xff]   ;;  %v6053_v50 = vld [vmem:[%s7452_s1 + $0xc08] sm:$0xff]   ;;  %s4656_s20 = sshll.u32 %s6088_s19, 4  ;;  %s4657_s20 = int_to_ptr.vmem [resolvable:$true] %s4656_s20 }
 0x188   :  { %v5307_v43 = vpop.f32.mrf.mxu0  ;;  %5617 = vmatprep.subr.bf16.mxu0 %v6086_v30  ;;  %v5328_v44 = vpop.f32.mrf.mxu1  ;;  %v6054_v51 = vld [vmem:[%s7452_s1 + $0xc00] sm:$0xff]   ;;  %v4665_v52 = vld.sshfl [vmem:[%s7451_s0 + $0x30] sm:$0x1 pattern:$0x75316420]  ;;  %v6055_v11 = vld [vmem:[%s7454_s3 + $0x38] sm:$0xff]   ;;  %p6068_p1 = scmp.lt.s32.totalorder %s4657_s20, %s4657_s20 }
 0x189   :  { %v4011_v45 = vadd.f32 %v5327_v40, %v3971_v39  ;;  %v1134_v53 = vrot.slane %v4665_v52, %v6224_v41  ;;  %5634 = vmatpush3.bf16.msra.mxu1 %v6055_v11  ;;  %v6056_v14 = vld [vmem:[%s7454_s3 + $0x30] sm:$0xff]   ;;  %v6057_v15 = vld [vmem:[%s7454_s3 + $0x28] sm:$0xff]   ;;  %v6058_v16 = vld [vmem:[%s7454_s3 + $0x20] sm:$0xff]   ;;  %s6063_s21 = scalar_lea.vmem %s4657_s20, 32 }
 0x18a   :  { %v5329_v46 = vpop.f32.mrf.mxu1  ;;  %5635 = vmatprep.subr.bf16.mxu1 %v6086_v30  ;;  %v6059_v17 = vld [vmem:[%s7454_s3 + $0x18] sm:$0xff]   ;;  %v6060_v18 = vld [vmem:[%s7454_s3 + $0x10] sm:$0xff]   ;;  %v6061_v19 = vld [vmem:[%s7454_s3 + $0x8] sm:$0xff]   ;;  %p6064_p0 = scmp.ne.s32.totalorder %s4657_s20, %s6063_s21  ;;  %p6069_p2 = scmp.lt.s32.totalorder %s6063_s21, %s6063_s21 }
 0x18b   :  { %5618 = vmatpush3.bf16.msra.mxu0 %v6049_v42  ;;  %v6062_v23 = vld [vmem:[%s7454_s3] sm:$0xff]  }
 0x18c   :  { %5619 = vmatprep.subr.bf16.mxu0 %v6086_v30  ;;  %p6070_p3 = por %p6069_p2, %p6068_p1 }
 0x18d   :  { %5636 = vmatpush3.bf16.msra.mxu1 %v6056_v14 }
 0x18e   :  { %5637 = vmatprep.subr.bf16.mxu1 %v6086_v30  ;;  %p6071_p4 = pnand %p6070_p3, %p6064_p0 }
 0x18f   :  { %5620 = vmatpush3.bf16.msra.mxu0 %v6050_v47 }
 0x190   :  { %5621 = vmatprep.subr.bf16.mxu0 %v6086_v30 }
 0x191   :  { %5638 = vmatpush3.bf16.msra.mxu1 %v6057_v15 }
 0x192   :  { %5639 = vmatprep.subr.bf16.mxu1 %v6086_v30 }
 0x193   :  { %5622 = vmatpush3.bf16.msra.mxu0 %v6051_v48 }
 0x194   :  { %5623 = vmatprep.subr.bf16.mxu0 %v6086_v30 }
 0x195   :  { %5640 = vmatpush3.bf16.msra.mxu1 %v6058_v16 }
 0x196   :  { %5641 = vmatprep.subr.bf16.mxu1 %v6086_v30 }
 0x197   :  { %5624 = vmatpush3.bf16.msra.mxu0 %v6052_v49 }
 0x198   :  { %5625 = vmatprep.subr.bf16.mxu0 %v6086_v30 }
 0x199   :  { %5642 = vmatpush3.bf16.msra.mxu1 %v6059_v17 }
 0x19a   :  { %5643 = vmatprep.subr.bf16.mxu1 %v6086_v30 }
 0x19b   :  { %5626 = vmatpush3.bf16.msra.mxu0 %v6053_v50 }
 0x19c   :  { %5627 = vmatprep.subr.bf16.mxu0 %v6086_v30 }
 0x19d   :  { %5644 = vmatpush3.bf16.msra.mxu1 %v6060_v18 }
 0x19e   :  { %5645 = vmatprep.subr.bf16.mxu1 %v6086_v30 }
 0x19f   :  { %5628 = vmatpush3.bf16.msra.mxu0 %v6054_v51 }
 0x1a1   :  { %5646 = vmatpush3.bf16.msra.mxu1 %v6061_v19 }
 0x1a2   :  { %v5347_v54 = vpop.f32.mrf.mxu0  ;;  %5630 = vmatmul.mubr.bf16.vlgmr.msra.gmra.mxu0 %v1134_v53  ;;  %5647 = vmatprep.subr.bf16.mxu1 %v6086_v30 }
 0x1a4   :  { %v5348_v55 = vpop.f32.mrf.mxu0  ;;  %v5369_v56 = vpop.f32.mrf.mxu1 }
 0x1a5   :  { %v5349_v57 = vadd.f32 %v5348_v55, %v5347_v54  ;;  %5648 = vmatpush3.bf16.msra.mxu1 %v6062_v23 }
 0x1a6   :  { %v5350_v58 = vpop.f32.mrf.mxu0  ;;  %v5370_v59 = vpop.f32.mrf.mxu1 }
 0x1a7   :  { %v4051_v60 = vadd.f32 %v5349_v57, %v4011_v45  ;;  %v5371_v61 = vadd.f32 %v5370_v59, %v5369_v56 }
 0x1a8   :  { %v5351_v62 = vpop.f32.mrf.mxu0  ;;  %v5372_v63 = vpop.f32.mrf.mxu1 }
 0x1a9   :  { %v4091_v0 = vadd.f32 %v5371_v61, %v4051_v60 }
 0x1aa   :  { %v5373_v1 = vpop.f32.mrf.mxu1 }
 0x1c2   :  { %v5391_v2 = vpop.f32.mrf.mxu0 }
 0x1c4   :  { %v5392_v3 = vpop.f32.mrf.mxu0  ;;  %v5413_v4 = vpop.f32.mrf.mxu1 }
 0x1c5   :  { %v5393_v5 = vadd.f32 %v5392_v3, %v5391_v2 }
 0x1c6   :  { %v5394_v6 = vpop.f32.mrf.mxu0  ;;  %v5414_v41 = vpop.f32.mrf.mxu1 }
 0x1c7   :  { %v4131_v7 = vadd.f32 %v5393_v5, %v4091_v0  ;;  %v5415_v8 = vadd.f32 %v5414_v41, %v5413_v4 }
 0x1c8   :  { %v5395_v9 = vpop.f32.mrf.mxu0  ;;  %v5416_v10 = vpop.f32.mrf.mxu1 }
 0x1c9   :  { %v4171_v12 = vadd.f32 %v5415_v8, %v4131_v7 }
 0x1ca   :  { %v5417_v13 = vpop.f32.mrf.mxu1 }
 0x1e2   :  { %v5435_v20 = vpop.f32.mrf.mxu0 }
 0x1e4   :  { %v5436_v21 = vpop.f32.mrf.mxu0  ;;  %v5457_v22 = vpop.f32.mrf.mxu1 }
 0x1e5   :  { %v5437_v24 = vadd.f32 %v5436_v21, %v5435_v20 }
 0x1e6   :  { %v5438_v25 = vpop.f32.mrf.mxu0  ;;  %v5458_v26 = vpop.f32.mrf.mxu1 }
 0x1e7   :  { %v4211_v27 = vadd.f32 %v5437_v24, %v4171_v12  ;;  %v5459_v28 = vadd.f32 %v5458_v26, %v5457_v22  ;;  %v5058_v12 = vld [vmem:[%s7455_s4] ss:$0 sm:$0xff] }
 0x1e8   :  { %v5439_v29 = vpop.f32.mrf.mxu0  ;;  %v5460_v31 = vpop.f32.mrf.mxu1 }
 0x1e9   :  { %v4251_v32 = vadd.f32 %v5459_v28, %v4211_v27 }
 0x1ea   :  { %v5461_v33 = vpop.f32.mrf.mxu1 }
 0x202   :  { %v5479_v34 = vpop.f32.mrf.mxu0 }
 0x204   :  { %v5480_v35 = vpop.f32.mrf.mxu0  ;;  %v5501_v36 = vpop.f32.mrf.mxu1 }
 0x205   :  { %v5481_v30 = vadd.f32 %v5480_v35, %v5479_v34 }
 0x206   :  { %v5482_v37 = vpop.f32.mrf.mxu0  ;;  %v5502_v38 = vpop.f32.mrf.mxu1 }
 0x207   :  { %v4291_v39 = vadd.f32 %v5481_v30, %v4251_v32  ;;  %v5503_v40 = vadd.f32 %v5502_v38, %v5501_v36 }
 0x208   :  { %v5483_v42 = vpop.f32.mrf.mxu0  ;;  %v5504_v43 = vpop.f32.mrf.mxu1 }
 0x209   :  { %v4331_v44 = vadd.f32 %v5503_v40, %v4291_v39 }
 0x20a   :  { %v5505_v45 = vpop.f32.mrf.mxu1 }
 0x222   :  { %v5523_v46 = vpop.f32.mrf.mxu0 }
 0x224   :  { %v5524_v47 = vpop.f32.mrf.mxu0  ;;  %v5545_v48 = vpop.f32.mrf.mxu1 }
 0x225   :  { %v5525_v62 = vadd.f32 %v5524_v47, %v5523_v46 }
 0x226   :  { %v5526_v49 = vpop.f32.mrf.mxu0  ;;  %v5546_v50 = vpop.f32.mrf.mxu1 }
 0x227   :  { %v4371_v63 = vadd.f32 %v5525_v62, %v4331_v44  ;;  %v5547_v0 = vadd.f32 %v5546_v50, %v5545_v48 }
 0x228   :  { %v5527_v51 = vpop.f32.mrf.mxu0  ;;  %v5548_v52 = vpop.f32.mrf.mxu1 }
 0x229   :  { %v4411_v2 = vadd.f32 %v5547_v0, %v4371_v63 }
 0x22a   :  { %v5549_v53 = vpop.f32.mrf.mxu1 }
 0x242   :  { %v5567_v54 = vpop.f32.mrf.mxu0 }
 0x244   :  { %v5568_v55 = vpop.f32.mrf.mxu0  ;;  %v5589_v56 = vpop.f32.mrf.mxu1 }
 0x245   :  { %v5569_v1 = vadd.f32 %v5568_v55, %v5567_v54 }
 0x246   :  { %v5570_v57 = vpop.f32.mrf.mxu0  ;;  %v5590_v58 = vpop.f32.mrf.mxu1 }
 0x247   :  { %v4451_v3 = vadd.f32 %v5569_v1, %v4411_v2  ;;  %v5591_v4 = vadd.f32 %v5590_v58, %v5589_v56 }
 0x248   :  { %v5571_v59 = vpop.f32.mrf.mxu0  ;;  %v5592_v60 = vpop.f32.mrf.mxu1 }
 0x249   :  { %v4491_v5 = vadd.f32 %v5591_v4, %v4451_v3 }
 0x24a   :  { %v5593_v61 = vpop.f32.mrf.mxu1 }
 0x262   :  { %v4530_v6 = vpop.f32.mrf.mxu0 }
 0x263   :  { %v4531_v41 = vadd.f32 %v4530_v6, %v4491_v5 }
 0x264   :  { %v5631_v7 = vpop.f32.mrf.mxu0 }
 0x265   :  { %v4536_v8 = vmax.f32 %v4531_v41, 0.0 }
 0x266   :  { %v4533_v9 = vpop.f32.mrf.mxu0 }
 0x267   :  { %v4537_v10 = vpack.c.bf16 %v4536_v8, %v4536_v8 }
 0x268   :  { %v5632_v11 = vpop.f32.mrf.mxu0 }
 0x269   :  { %5650 = vmatmul.mubr.bf16.vlgmr.msra.gmra.mxu1 %v4537_v10 }
 0x329   :  { %v4643_v13 = vpop.f32.mrf.mxu1 }
 0x32a   :  { %v4644_v14 = vadd.f32 %v5058_v12, %v4643_v13 }
 0x32b   :  { %v5651_v15 = vpop.f32.mrf.mxu1 }
 0x32c   :  { %4649 = vst [vmem:[#allocation2] sm:$0x3] %v4644_v14 }
 0x32d   :  { %v4646_v16 = vpop.f32.mrf.mxu1 }
 0x32e   :  { %6074 = shalt.err (!%p6071_p4)
}
 0x32f   :  { %4659 = dma.vmem_to_hbm [thread:$0]  %s4657_s20, 32, %s7456_s5, [#allocation3]   ;;  %v5652_v17 = vpop.f32.mrf.mxu1 }
 0x330   :  { %6083 = dma.done.wait [#allocation3], 32  }
 0x331   :  { %6084 = vsyncadd [#allocation3], 4294967264 }
 0x332   :  { %4663 = vsyncpa [#allocation3], 1 }

</bundles_post_ra>
